<compile_context>
chip_gen: v7x
topology: tpu7x:2x2x1
jax: 0.10.0
libtpu: 0.0.40
codegen_flags: <defaults>
</compile_context>

<pallas_src>
import functools
import math

import jax
import jax.numpy as jnp
from jax import lax
from jax.experimental import pallas as pl
from jax.experimental.pallas import tpu as pltpu


def _attention_kernel(tok_ref, emb_hbm, wqkv_ref, bqkv_ref, wo_ref, bo_ref,
                      o_ref, x_buf, attn_buf, copy_sem,
                      *, num_heads, head_dim, block_b, seq_len):
    H, d, S = num_heads, head_dim, seq_len
    E = H * d
    N = block_b * S                       # rows in this grid step's slab
    base = pl.program_id(0) * N           # first flattened token of this block

    # ---- embedding gather: one async row copy per token, HBM -> VMEM scratch ----
    for i in range(N):
        pltpu.make_async_copy(emb_hbm.at[tok_ref[base + i]],
                              x_buf.at[i], copy_sem.at[i]).start()
    for i in range(N):
        pltpu.make_async_copy(emb_hbm.at[tok_ref[base + i]],
                              x_buf.at[i], copy_sem.at[i]).wait()

    # ---- fused q/k/v projection over the whole (N, E) slab (pre-transposed weight) ----
    x = x_buf[...]                                                        # (N, E)
    qkv = jnp.dot(x, wqkv_ref[...],
                  preferred_element_type=jnp.float32) + bqkv_ref[...]     # (N, 3E)
    scale = 1.0 / math.sqrt(d)
    q = qkv[:, 0:E] * scale          # torch MHA scales q by 1/sqrt(head_dim)
    k = qkv[:, E:2 * E]
    v = qkv[:, 2 * E:3 * E]

    # ---- per (batch, head) scaled-dot-product attention; loops are small and static ----
    for b in range(block_b):
        r = slice(b * S, (b + 1) * S)
        for h in range(H):
            c = slice(h * d, (h + 1) * d)
            qh, kh, vh = q[r, c], k[r, c], v[r, c]
            s = lax.dot_general(qh, kh,
                                dimension_numbers=(((1,), (1,)), ((), ())),
                                preferred_element_type=jnp.float32)       # (S, S), no kh.T
            s = s - jnp.max(s, axis=-1, keepdims=True)
            p = jnp.exp(s)
            p = p * pl.reciprocal(jnp.sum(p, axis=-1, keepdims=True), approx=True)
            attn_buf[r, c] = jnp.dot(p, vh, preferred_element_type=jnp.float32)

    # ---- output projection over the whole slab ----
    out = jnp.dot(attn_buf[...], wo_ref[...],
                  preferred_element_type=jnp.float32) + bo_ref[...]       # (N, E)
    o_ref[...] = out


def sparse_text_embedding_forward(tokens, emb_table, in_proj_w, in_proj_b,
                                  out_proj_w, out_proj_b, *, num_heads=8, block_b=None):
    B, S = tokens.shape
    V, E = emb_table.shape
    assert E % num_heads == 0
    head_dim = E // num_heads

    if block_b is None:
        # Process several batch rows per grid step so the qkv / out_proj matmuls run on a
        # larger slab (target ~128 rows); pick the largest divisor of B not exceeding that.
        target = max(1, -(-128 // S))          # ceil(128 / S)
        block_b = 1
        for cand in range(min(B, target), 0, -1):
            if B % cand == 0:
                block_b = cand
                break
    assert B % block_b == 0
    grid = (B // block_b,)

    # torch nn.Embedding raises on out-of-range ids; clamp so the DMA gather stays in bounds.
    tok_flat = jnp.clip(tokens.astype(jnp.int32), 0, V - 1).reshape(B * S)

    # Pre-transpose once in the wrapper so the kernel never does an in-kernel .T relayout.
    wqkv_t = in_proj_w.T                # (E, 3E)
    wo_t = out_proj_w.T                 # (E, E)
    bqkv = in_proj_b.reshape(1, 3 * E)
    bo = out_proj_b.reshape(1, E)

    kernel = functools.partial(_attention_kernel,
                               num_heads=num_heads, head_dim=head_dim,
                               block_b=block_b, seq_len=S)

    out_flat = pl.pallas_call(
        kernel,
        out_shape=jax.ShapeDtypeStruct((B * S, E), jnp.float32),
        grid_spec=pltpu.PrefetchScalarGridSpec(
            num_scalar_prefetch=1,                         # tokens -> SMEM
            grid=grid,
            in_specs=[
                pl.BlockSpec(memory_space=pl.ANY),                      # embedding table stays in HBM
                pl.BlockSpec((E, 3 * E), lambda i, tok: (0, 0)),        # Wqkv^T (resident)
                pl.BlockSpec((1, 3 * E), lambda i, tok: (0, 0)),        # packed qkv bias
                pl.BlockSpec((E, E), lambda i, tok: (0, 0)),            # Wo^T (resident)
                pl.BlockSpec((1, E), lambda i, tok: (0, 0)),            # out_proj bias
            ],
            out_specs=pl.BlockSpec((block_b * S, E), lambda i, tok: (i, 0)),
            scratch_shapes=[
                pltpu.VMEM((block_b * S, E), jnp.float32),              # gathered embeddings
                pltpu.VMEM((block_b * S, E), jnp.float32),              # assembled attention heads
                pltpu.SemaphoreType.DMA((block_b * S,)),                # one sem per gathered row
            ],
        ),
        compiler_params=pltpu.CompilerParams(
            dimension_semantics=("parallel",)),
    )(tok_flat, emb_table, wqkv_t, bqkv, wo_t, bo)

    return out_flat.reshape(B, S, E)


def _reference_forward(tokens, emb_table, in_proj_w, in_proj_b,
                       out_proj_w, out_proj_b, num_heads=8):
    """Pure-JAX reference matching torch.nn.MultiheadAttention(batch_first=True) semantics."""
    B, S = tokens.shape
    V, E = emb_table.shape
    d = E // num_heads
    x = emb_table[tokens]                                           # (B, S, E)
    qkv = jnp.einsum('bse,fe->bsf', x, in_proj_w) + in_proj_b       # (B, S, 3E)
    q, k, v = qkv[..., :E], qkv[..., E:2 * E], qkv[..., 2 * E:]

    def split(t):
        return t.reshape(B, S, num_heads, d).transpose(0, 2, 1, 3)  # (B, H, S, d)

    q, k, v = split(q), split(k), split(v)
    s = jnp.einsum('bhqd,bhkd->bhqk', q, k) / math.sqrt(d)
    p = jax.nn.softmax(s, axis=-1)
    o = jnp.einsum('bhqk,bhkd->bhqd', p, v)
    o = o.transpose(0, 2, 1, 3).reshape(B, S, E)
    return jnp.einsum('bse,fe->bsf', o, out_proj_w) + out_proj_b


if __name__ == "__main__":
    # Small, module-consistent shapes.
    num_tokens = 64   # vocabulary size V
    emb_dim = 32      # E (divisible by 8 heads -> head_dim 4)
    batch = 2
    seq = 8

    key = jax.random.PRNGKey(0)
    k0, k1, k2, k3, k4, k5 = jax.random.split(key, 6)

    tokens = jax.random.randint(k0, (batch, seq), 0, num_tokens, dtype=jnp.int32)
    emb_table = jax.random.normal(k1, (num_tokens, emb_dim), dtype=jnp.float32)
    in_proj_w = jax.random.normal(k2, (3 * emb_dim, emb_dim), dtype=jnp.float32) * 0.1
    in_proj_b = jax.random.normal(k3, (3 * emb_dim,), dtype=jnp.float32) * 0.01
    out_proj_w = jax.random.normal(k4, (emb_dim, emb_dim), dtype=jnp.float32) * 0.1
    out_proj_b = jax.random.normal(k5, (emb_dim,), dtype=jnp.float32) * 0.01

    out = sparse_text_embedding_forward(tokens, emb_table, in_proj_w, in_proj_b,
                                        out_proj_w, out_proj_b, num_heads=8)
    out = jax.block_until_ready(out)

    ref = _reference_forward(tokens, emb_table, in_proj_w, in_proj_b,
                             out_proj_w, out_proj_b, num_heads=8)
    assert out.shape == (batch, seq, emb_dim)
    # approx=True softmax reciprocal (EUP) is ~bf16-accurate; tolerance set accordingly.
    assert jnp.allclose(out, ref, atol=2e-3, rtol=2e-3), "mismatch vs reference"

    print("KERNEL_OK")
</pallas_src>

<mosaic_0001>
module attributes {stable_mosaic.version = 11 : i64} {
  func.func @_attention_kernel(%arg0: i32, %arg1: memref<16xi32, #tpu.memory_space<smem>>, %arg2: memref<64x32xf32, #tpu.memory_space<any>>, %arg3: memref<32x96xf32, #tpu.memory_space<vmem>>, %arg4: memref<1x96xf32, #tpu.memory_space<vmem>>, %arg5: memref<32x32xf32, #tpu.memory_space<vmem>>, %arg6: memref<1x32xf32, #tpu.memory_space<vmem>>, %arg7: memref<16x32xf32, #tpu.memory_space<vmem>>, %arg8: memref<16x32xf32, #tpu.memory_space<vmem>>, %arg9: memref<16x32xf32, #tpu.memory_space<vmem>>, %arg10: memref<16x!tpu.dma_semaphore, #tpu.memory_space<semaphore_mem>>) attributes {dimension_semantics = [#tpu.dimension_semantics<parallel>], iteration_bounds = array<i64: 1>, scalar_prefetch = 1 : i64, scratch_operands = 3 : i64, tpu.core_type = #tpu.core_type<tc>, window_params = [{}, {pipeline_mode = #tpu.pipeline_mode<synchronous>, transform_indices = @transform_1, window_bounds = array<i64: 32, 96>}, {pipeline_mode = #tpu.pipeline_mode<synchronous>, transform_indices = @transform_2, window_bounds = array<i64: 1, 96>}, {pipeline_mode = #tpu.pipeline_mode<synchronous>, transform_indices = @transform_3, window_bounds = array<i64: 32, 32>}, {pipeline_mode = #tpu.pipeline_mode<synchronous>, transform_indices = @transform_4, window_bounds = array<i64: 1, 32>}, {transform_indices = @transform_5, window_bounds = array<i64: 16, 32>}]} {
    %c16_i32 = arith.constant 16 : i32
    %0 = arith.muli %arg0, %c16_i32 : i32
    %c0_i32 = arith.constant 0 : i32
    %1 = arith.addi %0, %c0_i32 : i32
    %2 = arith.index_cast %1 : i32 to index
    %3 = memref.load %arg1[%2] : memref<16xi32, #tpu.memory_space<smem>>
    %c0_i32_0 = arith.constant 0 : i32
    %c0_i32_1 = arith.constant 0 : i32
    %c0_i32_2 = arith.constant 0 : i32
    %4 = tpu.memref_slice %arg2[%3, %c0_i32_2] : memref<64x32xf32, #tpu.memory_space<any>> -> memref<1x32xf32, #tpu.memory_space<any>>
    %5 = tpu.memref_squeeze %4 : memref<1x32xf32, #tpu.memory_space<any>> -> memref<32xf32, #tpu.memory_space<any>>
    %c0_i32_3 = arith.constant 0 : i32
    %6 = tpu.memref_slice %arg8[%c0_i32_0, %c0_i32_3] : memref<16x32xf32, #tpu.memory_space<vmem>> -> memref<1x32xf32, #tpu.memory_space<vmem>>
    %7 = tpu.memref_squeeze %6 : memref<1x32xf32, #tpu.memory_space<vmem>> -> memref<32xf32, #tpu.memory_space<vmem>>
    %8 = tpu.memref_slice %arg10[%c0_i32_1] : memref<16x!tpu.dma_semaphore, #tpu.memory_space<semaphore_mem>> -> memref<1x!tpu.dma_semaphore, #tpu.memory_space<semaphore_mem>>
    %9 = tpu.memref_squeeze %8 : memref<1x!tpu.dma_semaphore, #tpu.memory_space<semaphore_mem>> -> memref<!tpu.dma_semaphore, #tpu.memory_space<semaphore_mem>>
    tpu.enqueue_dma source(%5 : memref<32xf32, #tpu.memory_space<any>>) target(%7 : memref<32xf32, #tpu.memory_space<vmem>>) target_semaphore(%9 : memref<!tpu.dma_semaphore, #tpu.memory_space<semaphore_mem>>)
    %c1_i32 = arith.constant 1 : i32
    %10 = arith.addi %0, %c1_i32 : i32
    %11 = arith.index_cast %10 : i32 to index
    %12 = memref.load %arg1[%11] : memref<16xi32, #tpu.memory_space<smem>>
    %c1_i32_4 = arith.constant 1 : i32
    %c1_i32_5 = arith.constant 1 : i32
    %c0_i32_6 = arith.constant 0 : i32
    %13 = tpu.memref_slice %arg2[%12, %c0_i32_6] : memref<64x32xf32, #tpu.memory_space<any>> -> memref<1x32xf32, #tpu.memory_space<any>>
    %14 = tpu.memref_squeeze %13 : memref<1x32xf32, #tpu.memory_space<any>> -> memref<32xf32, #tpu.memory_space<any>>
    %c0_i32_7 = arith.constant 0 : i32
    %15 = tpu.memref_slice %arg8[%c1_i32_4, %c0_i32_7] : memref<16x32xf32, #tpu.memory_space<vmem>> -> memref<1x32xf32, #tpu.memory_space<vmem>>
    %16 = tpu.memref_squeeze %15 : memref<1x32xf32, #tpu.memory_space<vmem>> -> memref<32xf32, #tpu.memory_space<vmem>>
    %17 = tpu.memref_slice %arg10[%c1_i32_5] : memref<16x!tpu.dma_semaphore, #tpu.memory_space<semaphore_mem>> -> memref<1x!tpu.dma_semaphore, #tpu.memory_space<semaphore_mem>>
    %18 = tpu.memref_squeeze %17 : memref<1x!tpu.dma_semaphore, #tpu.memory_space<semaphore_mem>> -> memref<!tpu.dma_semaphore, #tpu.memory_space<semaphore_mem>>
    tpu.enqueue_dma source(%14 : memref<32xf32, #tpu.memory_space<any>>) target(%16 : memref<32xf32, #tpu.memory_space<vmem>>) target_semaphore(%18 : memref<!tpu.dma_semaphore, #tpu.memory_space<semaphore_mem>>)
    %c2_i32 = arith.constant 2 : i32
    %19 = arith.addi %0, %c2_i32 : i32
    %20 = arith.index_cast %19 : i32 to index
    %21 = memref.load %arg1[%20] : memref<16xi32, #tpu.memory_space<smem>>
    %c2_i32_8 = arith.constant 2 : i32
    %c2_i32_9 = arith.constant 2 : i32
    %c0_i32_10 = arith.constant 0 : i32
    %22 = tpu.memref_slice %arg2[%21, %c0_i32_10] : memref<64x32xf32, #tpu.memory_space<any>> -> memref<1x32xf32, #tpu.memory_space<any>>
    %23 = tpu.memref_squeeze %22 : memref<1x32xf32, #tpu.memory_space<any>> -> memref<32xf32, #tpu.memory_space<any>>
    %c0_i32_11 = arith.constant 0 : i32
    %24 = tpu.memref_slice %arg8[%c2_i32_8, %c0_i32_11] : memref<16x32xf32, #tpu.memory_space<vmem>> -> memref<1x32xf32, #tpu.memory_space<vmem>>
    %25 = tpu.memref_squeeze %24 : memref<1x32xf32, #tpu.memory_space<vmem>> -> memref<32xf32, #tpu.memory_space<vmem>>
    %26 = tpu.memref_slice %arg10[%c2_i32_9] : memref<16x!tpu.dma_semaphore, #tpu.memory_space<semaphore_mem>> -> memref<1x!tpu.dma_semaphore, #tpu.memory_space<semaphore_mem>>
    %27 = tpu.memref_squeeze %26 : memref<1x!tpu.dma_semaphore, #tpu.memory_space<semaphore_mem>> -> memref<!tpu.dma_semaphore, #tpu.memory_space<semaphore_mem>>
    tpu.enqueue_dma source(%23 : memref<32xf32, #tpu.memory_space<any>>) target(%25 : memref<32xf32, #tpu.memory_space<vmem>>) target_semaphore(%27 : memref<!tpu.dma_semaphore, #tpu.memory_space<semaphore_mem>>)
    %c3_i32 = arith.constant 3 : i32
    %28 = arith.addi %0, %c3_i32 : i32
    %29 = arith.index_cast %28 : i32 to index
    %30 = memref.load %arg1[%29] : memref<16xi32, #tpu.memory_space<smem>>
    %c3_i32_12 = arith.constant 3 : i32
    %c3_i32_13 = arith.constant 3 : i32
    %c0_i32_14 = arith.constant 0 : i32
    %31 = tpu.memref_slice %arg2[%30, %c0_i32_14] : memref<64x32xf32, #tpu.memory_space<any>> -> memref<1x32xf32, #tpu.memory_space<any>>
    %32 = tpu.memref_squeeze %31 : memref<1x32xf32, #tpu.memory_space<any>> -> memref<32xf32, #tpu.memory_space<any>>
    %c0_i32_15 = arith.constant 0 : i32
    %33 = tpu.memref_slice %arg8[%c3_i32_12, %c0_i32_15] : memref<16x32xf32, #tpu.memory_space<vmem>> -> memref<1x32xf32, #tpu.memory_space<vmem>>
    %34 = tpu.memref_squeeze %33 : memref<1x32xf32, #tpu.memory_space<vmem>> -> memref<32xf32, #tpu.memory_space<vmem>>
    %35 = tpu.memref_slice %arg10[%c3_i32_13] : memref<16x!tpu.dma_semaphore, #tpu.memory_space<semaphore_mem>> -> memref<1x!tpu.dma_semaphore, #tpu.memory_space<semaphore_mem>>
    %36 = tpu.memref_squeeze %35 : memref<1x!tpu.dma_semaphore, #tpu.memory_space<semaphore_mem>> -> memref<!tpu.dma_semaphore, #tpu.memory_space<semaphore_mem>>
    tpu.enqueue_dma source(%32 : memref<32xf32, #tpu.memory_space<any>>) target(%34 : memref<32xf32, #tpu.memory_space<vmem>>) target_semaphore(%36 : memref<!tpu.dma_semaphore, #tpu.memory_space<semaphore_mem>>)
    %c4_i32 = arith.constant 4 : i32
    %37 = arith.addi %0, %c4_i32 : i32
    %38 = arith.index_cast %37 : i32 to index
    %39 = memref.load %arg1[%38] : memref<16xi32, #tpu.memory_space<smem>>
    %c4_i32_16 = arith.constant 4 : i32
    %c4_i32_17 = arith.constant 4 : i32
    %c0_i32_18 = arith.constant 0 : i32
    %40 = tpu.memref_slice %arg2[%39, %c0_i32_18] : memref<64x32xf32, #tpu.memory_space<any>> -> memref<1x32xf32, #tpu.memory_space<any>>
    %41 = tpu.memref_squeeze %40 : memref<1x32xf32, #tpu.memory_space<any>> -> memref<32xf32, #tpu.memory_space<any>>
    %c0_i32_19 = arith.constant 0 : i32
    %42 = tpu.memref_slice %arg8[%c4_i32_16, %c0_i32_19] : memref<16x32xf32, #tpu.memory_space<vmem>> -> memref<1x32xf32, #tpu.memory_space<vmem>>
    %43 = tpu.memref_squeeze %42 : memref<1x32xf32, #tpu.memory_space<vmem>> -> memref<32xf32, #tpu.memory_space<vmem>>
    %44 = tpu.memref_slice %arg10[%c4_i32_17] : memref<16x!tpu.dma_semaphore, #tpu.memory_space<semaphore_mem>> -> memref<1x!tpu.dma_semaphore, #tpu.memory_space<semaphore_mem>>
    %45 = tpu.memref_squeeze %44 : memref<1x!tpu.dma_semaphore, #tpu.memory_space<semaphore_mem>> -> memref<!tpu.dma_semaphore, #tpu.memory_space<semaphore_mem>>
    tpu.enqueue_dma source(%41 : memref<32xf32, #tpu.memory_space<any>>) target(%43 : memref<32xf32, #tpu.memory_space<vmem>>) target_semaphore(%45 : memref<!tpu.dma_semaphore, #tpu.memory_space<semaphore_mem>>)
    %c5_i32 = arith.constant 5 : i32
    %46 = arith.addi %0, %c5_i32 : i32
    %47 = arith.index_cast %46 : i32 to index
    %48 = memref.load %arg1[%47] : memref<16xi32, #tpu.memory_space<smem>>
    %c5_i32_20 = arith.constant 5 : i32
    %c5_i32_21 = arith.constant 5 : i32
    %c0_i32_22 = arith.constant 0 : i32
    %49 = tpu.memref_slice %arg2[%48, %c0_i32_22] : memref<64x32xf32, #tpu.memory_space<any>> -> memref<1x32xf32, #tpu.memory_space<any>>
    %50 = tpu.memref_squeeze %49 : memref<1x32xf32, #tpu.memory_space<any>> -> memref<32xf32, #tpu.memory_space<any>>
    %c0_i32_23 = arith.constant 0 : i32
    %51 = tpu.memref_slice %arg8[%c5_i32_20, %c0_i32_23] : memref<16x32xf32, #tpu.memory_space<vmem>> -> memref<1x32xf32, #tpu.memory_space<vmem>>
    %52 = tpu.memref_squeeze %51 : memref<1x32xf32, #tpu.memory_space<vmem>> -> memref<32xf32, #tpu.memory_space<vmem>>
    %53 = tpu.memref_slice %arg10[%c5_i32_21] : memref<16x!tpu.dma_semaphore, #tpu.memory_space<semaphore_mem>> -> memref<1x!tpu.dma_semaphore, #tpu.memory_space<semaphore_mem>>
    %54 = tpu.memref_squeeze %53 : memref<1x!tpu.dma_semaphore, #tpu.memory_space<semaphore_mem>> -> memref<!tpu.dma_semaphore, #tpu.memory_space<semaphore_mem>>
    tpu.enqueue_dma source(%50 : memref<32xf32, #tpu.memory_space<any>>) target(%52 : memref<32xf32, #tpu.memory_space<vmem>>) target_semaphore(%54 : memref<!tpu.dma_semaphore, #tpu.memory_space<semaphore_mem>>)
    %c6_i32 = arith.constant 6 : i32
    %55 = arith.addi %0, %c6_i32 : i32
    %56 = arith.index_cast %55 : i32 to index
    %57 = memref.load %arg1[%56] : memref<16xi32, #tpu.memory_space<smem>>
    %c6_i32_24 = arith.constant 6 : i32
    %c6_i32_25 = arith.constant 6 : i32
    %c0_i32_26 = arith.constant 0 : i32
    %58 = tpu.memref_slice %arg2[%57, %c0_i32_26] : memref<64x32xf32, #tpu.memory_space<any>> -> memref<1x32xf32, #tpu.memory_space<any>>
    %59 = tpu.memref_squeeze %58 : memref<1x32xf32, #tpu.memory_space<any>> -> memref<32xf32, #tpu.memory_space<any>>
    %c0_i32_27 = arith.constant 0 : i32
    %60 = tpu.memref_slice %arg8[%c6_i32_24, %c0_i32_27] : memref<16x32xf32, #tpu.memory_space<vmem>> -> memref<1x32xf32, #tpu.memory_space<vmem>>
    %61 = tpu.memref_squeeze %60 : memref<1x32xf32, #tpu.memory_space<vmem>> -> memref<32xf32, #tpu.memory_space<vmem>>
    %62 = tpu.memref_slice %arg10[%c6_i32_25] : memref<16x!tpu.dma_semaphore, #tpu.memory_space<semaphore_mem>> -> memref<1x!tpu.dma_semaphore, #tpu.memory_space<semaphore_mem>>
    %63 = tpu.memref_squeeze %62 : memref<1x!tpu.dma_semaphore, #tpu.memory_space<semaphore_mem>> -> memref<!tpu.dma_semaphore, #tpu.memory_space<semaphore_mem>>
    tpu.enqueue_dma source(%59 : memref<32xf32, #tpu.memory_space<any>>) target(%61 : memref<32xf32, #tpu.memory_space<vmem>>) target_semaphore(%63 : memref<!tpu.dma_semaphore, #tpu.memory_space<semaphore_mem>>)
    %c7_i32 = arith.constant 7 : i32
    %64 = arith.addi %0, %c7_i32 : i32
    %65 = arith.index_cast %64 : i32 to index
    %66 = memref.load %arg1[%65] : memref<16xi32, #tpu.memory_space<smem>>
    %c7_i32_28 = arith.constant 7 : i32
    %c7_i32_29 = arith.constant 7 : i32
    %c0_i32_30 = arith.constant 0 : i32
    %67 = tpu.memref_slice %arg2[%66, %c0_i32_30] : memref<64x32xf32, #tpu.memory_space<any>> -> memref<1x32xf32, #tpu.memory_space<any>>
    %68 = tpu.memref_squeeze %67 : memref<1x32xf32, #tpu.memory_space<any>> -> memref<32xf32, #tpu.memory_space<any>>
    %c0_i32_31 = arith.constant 0 : i32
    %69 = tpu.memref_slice %arg8[%c7_i32_28, %c0_i32_31] : memref<16x32xf32, #tpu.memory_space<vmem>> -> memref<1x32xf32, #tpu.memory_space<vmem>>
    %70 = tpu.memref_squeeze %69 : memref<1x32xf32, #tpu.memory_space<vmem>> -> memref<32xf32, #tpu.memory_space<vmem>>
    %71 = tpu.memref_slice %arg10[%c7_i32_29] : memref<16x!tpu.dma_semaphore, #tpu.memory_space<semaphore_mem>> -> memref<1x!tpu.dma_semaphore, #tpu.memory_space<semaphore_mem>>
    %72 = tpu.memref_squeeze %71 : memref<1x!tpu.dma_semaphore, #tpu.memory_space<semaphore_mem>> -> memref<!tpu.dma_semaphore, #tpu.memory_space<semaphore_mem>>
    tpu.enqueue_dma source(%68 : memref<32xf32, #tpu.memory_space<any>>) target(%70 : memref<32xf32, #tpu.memory_space<vmem>>) target_semaphore(%72 : memref<!tpu.dma_semaphore, #tpu.memory_space<semaphore_mem>>)
    %c8_i32 = arith.constant 8 : i32
    %73 = arith.addi %0, %c8_i32 : i32
    %74 = arith.index_cast %73 : i32 to index
    %75 = memref.load %arg1[%74] : memref<16xi32, #tpu.memory_space<smem>>
    %c8_i32_32 = arith.constant 8 : i32
    %c8_i32_33 = arith.constant 8 : i32
    %c0_i32_34 = arith.constant 0 : i32
    %76 = tpu.memref_slice %arg2[%75, %c0_i32_34] : memref<64x32xf32, #tpu.memory_space<any>> -> memref<1x32xf32, #tpu.memory_space<any>>
    %77 = tpu.memref_squeeze %76 : memref<1x32xf32, #tpu.memory_space<any>> -> memref<32xf32, #tpu.memory_space<any>>
    %c0_i32_35 = arith.constant 0 : i32
    %78 = tpu.memref_slice %arg8[%c8_i32_32, %c0_i32_35] : memref<16x32xf32, #tpu.memory_space<vmem>> -> memref<1x32xf32, #tpu.memory_space<vmem>>
    %79 = tpu.memref_squeeze %78 : memref<1x32xf32, #tpu.memory_space<vmem>> -> memref<32xf32, #tpu.memory_space<vmem>>
    %80 = tpu.memref_slice %arg10[%c8_i32_33] : memref<16x!tpu.dma_semaphore, #tpu.memory_space<semaphore_mem>> -> memref<1x!tpu.dma_semaphore, #tpu.memory_space<semaphore_mem>>
    %81 = tpu.memref_squeeze %80 : memref<1x!tpu.dma_semaphore, #tpu.memory_space<semaphore_mem>> -> memref<!tpu.dma_semaphore, #tpu.memory_space<semaphore_mem>>
    tpu.enqueue_dma source(%77 : memref<32xf32, #tpu.memory_space<any>>) target(%79 : memref<32xf32, #tpu.memory_space<vmem>>) target_semaphore(%81 : memref<!tpu.dma_semaphore, #tpu.memory_space<semaphore_mem>>)
    %c9_i32 = arith.constant 9 : i32
    %82 = arith.addi %0, %c9_i32 : i32
    %83 = arith.index_cast %82 : i32 to index
    %84 = memref.load %arg1[%83] : memref<16xi32, #tpu.memory_space<smem>>
    %c9_i32_36 = arith.constant 9 : i32
    %c9_i32_37 = arith.constant 9 : i32
    %c0_i32_38 = arith.constant 0 : i32
    %85 = tpu.memref_slice %arg2[%84, %c0_i32_38] : memref<64x32xf32, #tpu.memory_space<any>> -> memref<1x32xf32, #tpu.memory_space<any>>
    %86 = tpu.memref_squeeze %85 : memref<1x32xf32, #tpu.memory_space<any>> -> memref<32xf32, #tpu.memory_space<any>>
    %c0_i32_39 = arith.constant 0 : i32
    %87 = tpu.memref_slice %arg8[%c9_i32_36, %c0_i32_39] : memref<16x32xf32, #tpu.memory_space<vmem>> -> memref<1x32xf32, #tpu.memory_space<vmem>>
    %88 = tpu.memref_squeeze %87 : memref<1x32xf32, #tpu.memory_space<vmem>> -> memref<32xf32, #tpu.memory_space<vmem>>
    %89 = tpu.memref_slice %arg10[%c9_i32_37] : memref<16x!tpu.dma_semaphore, #tpu.memory_space<semaphore_mem>> -> memref<1x!tpu.dma_semaphore, #tpu.memory_space<semaphore_mem>>
    %90 = tpu.memref_squeeze %89 : memref<1x!tpu.dma_semaphore, #tpu.memory_space<semaphore_mem>> -> memref<!tpu.dma_semaphore, #tpu.memory_space<semaphore_mem>>
    tpu.enqueue_dma source(%86 : memref<32xf32, #tpu.memory_space<any>>) target(%88 : memref<32xf32, #tpu.memory_space<vmem>>) target_semaphore(%90 : memref<!tpu.dma_semaphore, #tpu.memory_space<semaphore_mem>>)
    %c10_i32 = arith.constant 10 : i32
    %91 = arith.addi %0, %c10_i32 : i32
    %92 = arith.index_cast %91 : i32 to index
    %93 = memref.load %arg1[%92] : memref<16xi32, #tpu.memory_space<smem>>
    %c10_i32_40 = arith.constant 10 : i32
    %c10_i32_41 = arith.constant 10 : i32
    %c0_i32_42 = arith.constant 0 : i32
    %94 = tpu.memref_slice %arg2[%93, %c0_i32_42] : memref<64x32xf32, #tpu.memory_space<any>> -> memref<1x32xf32, #tpu.memory_space<any>>
    %95 = tpu.memref_squeeze %94 : memref<1x32xf32, #tpu.memory_space<any>> -> memref<32xf32, #tpu.memory_space<any>>
    %c0_i32_43 = arith.constant 0 : i32
    %96 = tpu.memref_slice %arg8[%c10_i32_40, %c0_i32_43] : memref<16x32xf32, #tpu.memory_space<vmem>> -> memref<1x32xf32, #tpu.memory_space<vmem>>
    %97 = tpu.memref_squeeze %96 : memref<1x32xf32, #tpu.memory_space<vmem>> -> memref<32xf32, #tpu.memory_space<vmem>>
    %98 = tpu.memref_slice %arg10[%c10_i32_41] : memref<16x!tpu.dma_semaphore, #tpu.memory_space<semaphore_mem>> -> memref<1x!tpu.dma_semaphore, #tpu.memory_space<semaphore_mem>>
    %99 = tpu.memref_squeeze %98 : memref<1x!tpu.dma_semaphore, #tpu.memory_space<semaphore_mem>> -> memref<!tpu.dma_semaphore, #tpu.memory_space<semaphore_mem>>
    tpu.enqueue_dma source(%95 : memref<32xf32, #tpu.memory_space<any>>) target(%97 : memref<32xf32, #tpu.memory_space<vmem>>) target_semaphore(%99 : memref<!tpu.dma_semaphore, #tpu.memory_space<semaphore_mem>>)
    %c11_i32 = arith.constant 11 : i32
    %100 = arith.addi %0, %c11_i32 : i32
    %101 = arith.index_cast %100 : i32 to index
    %102 = memref.load %arg1[%101] : memref<16xi32, #tpu.memory_space<smem>>
    %c11_i32_44 = arith.constant 11 : i32
    %c11_i32_45 = arith.constant 11 : i32
    %c0_i32_46 = arith.constant 0 : i32
    %103 = tpu.memref_slice %arg2[%102, %c0_i32_46] : memref<64x32xf32, #tpu.memory_space<any>> -> memref<1x32xf32, #tpu.memory_space<any>>
    %104 = tpu.memref_squeeze %103 : memref<1x32xf32, #tpu.memory_space<any>> -> memref<32xf32, #tpu.memory_space<any>>
    %c0_i32_47 = arith.constant 0 : i32
    %105 = tpu.memref_slice %arg8[%c11_i32_44, %c0_i32_47] : memref<16x32xf32, #tpu.memory_space<vmem>> -> memref<1x32xf32, #tpu.memory_space<vmem>>
    %106 = tpu.memref_squeeze %105 : memref<1x32xf32, #tpu.memory_space<vmem>> -> memref<32xf32, #tpu.memory_space<vmem>>
    %107 = tpu.memref_slice %arg10[%c11_i32_45] : memref<16x!tpu.dma_semaphore, #tpu.memory_space<semaphore_mem>> -> memref<1x!tpu.dma_semaphore, #tpu.memory_space<semaphore_mem>>
    %108 = tpu.memref_squeeze %107 : memref<1x!tpu.dma_semaphore, #tpu.memory_space<semaphore_mem>> -> memref<!tpu.dma_semaphore, #tpu.memory_space<semaphore_mem>>
    tpu.enqueue_dma source(%104 : memref<32xf32, #tpu.memory_space<any>>) target(%106 : memref<32xf32, #tpu.memory_space<vmem>>) target_semaphore(%108 : memref<!tpu.dma_semaphore, #tpu.memory_space<semaphore_mem>>)
    %c12_i32 = arith.constant 12 : i32
    %109 = arith.addi %0, %c12_i32 : i32
    %110 = arith.index_cast %109 : i32 to index
    %111 = memref.load %arg1[%110] : memref<16xi32, #tpu.memory_space<smem>>
    %c12_i32_48 = arith.constant 12 : i32
    %c12_i32_49 = arith.constant 12 : i32
    %c0_i32_50 = arith.constant 0 : i32
    %112 = tpu.memref_slice %arg2[%111, %c0_i32_50] : memref<64x32xf32, #tpu.memory_space<any>> -> memref<1x32xf32, #tpu.memory_space<any>>
    %113 = tpu.memref_squeeze %112 : memref<1x32xf32, #tpu.memory_space<any>> -> memref<32xf32, #tpu.memory_space<any>>
    %c0_i32_51 = arith.constant 0 : i32
    %114 = tpu.memref_slice %arg8[%c12_i32_48, %c0_i32_51] : memref<16x32xf32, #tpu.memory_space<vmem>> -> memref<1x32xf32, #tpu.memory_space<vmem>>
    %115 = tpu.memref_squeeze %114 : memref<1x32xf32, #tpu.memory_space<vmem>> -> memref<32xf32, #tpu.memory_space<vmem>>
    %116 = tpu.memref_slice %arg10[%c12_i32_49] : memref<16x!tpu.dma_semaphore, #tpu.memory_space<semaphore_mem>> -> memref<1x!tpu.dma_semaphore, #tpu.memory_space<semaphore_mem>>
    %117 = tpu.memref_squeeze %116 : memref<1x!tpu.dma_semaphore, #tpu.memory_space<semaphore_mem>> -> memref<!tpu.dma_semaphore, #tpu.memory_space<semaphore_mem>>
    tpu.enqueue_dma source(%113 : memref<32xf32, #tpu.memory_space<any>>) target(%115 : memref<32xf32, #tpu.memory_space<vmem>>) target_semaphore(%117 : memref<!tpu.dma_semaphore, #tpu.memory_space<semaphore_mem>>)
    %c13_i32 = arith.constant 13 : i32
    %118 = arith.addi %0, %c13_i32 : i32
    %119 = arith.index_cast %118 : i32 to index
    %120 = memref.load %arg1[%119] : memref<16xi32, #tpu.memory_space<smem>>
    %c13_i32_52 = arith.constant 13 : i32
    %c13_i32_53 = arith.constant 13 : i32
    %c0_i32_54 = arith.constant 0 : i32
    %121 = tpu.memref_slice %arg2[%120, %c0_i32_54] : memref<64x32xf32, #tpu.memory_space<any>> -> memref<1x32xf32, #tpu.memory_space<any>>
    %122 = tpu.memref_squeeze %121 : memref<1x32xf32, #tpu.memory_space<any>> -> memref<32xf32, #tpu.memory_space<any>>
    %c0_i32_55 = arith.constant 0 : i32
    %123 = tpu.memref_slice %arg8[%c13_i32_52, %c0_i32_55] : memref<16x32xf32, #tpu.memory_space<vmem>> -> memref<1x32xf32, #tpu.memory_space<vmem>>
    %124 = tpu.memref_squeeze %123 : memref<1x32xf32, #tpu.memory_space<vmem>> -> memref<32xf32, #tpu.memory_space<vmem>>
    %125 = tpu.memref_slice %arg10[%c13_i32_53] : memref<16x!tpu.dma_semaphore, #tpu.memory_space<semaphore_mem>> -> memref<1x!tpu.dma_semaphore, #tpu.memory_space<semaphore_mem>>
    %126 = tpu.memref_squeeze %125 : memref<1x!tpu.dma_semaphore, #tpu.memory_space<semaphore_mem>> -> memref<!tpu.dma_semaphore, #tpu.memory_space<semaphore_mem>>
    tpu.enqueue_dma source(%122 : memref<32xf32, #tpu.memory_space<any>>) target(%124 : memref<32xf32, #tpu.memory_space<vmem>>) target_semaphore(%126 : memref<!tpu.dma_semaphore, #tpu.memory_space<semaphore_mem>>)
    %c14_i32 = arith.constant 14 : i32
    %127 = arith.addi %0, %c14_i32 : i32
    %128 = arith.index_cast %127 : i32 to index
    %129 = memref.load %arg1[%128] : memref<16xi32, #tpu.memory_space<smem>>
    %c14_i32_56 = arith.constant 14 : i32
    %c14_i32_57 = arith.constant 14 : i32
    %c0_i32_58 = arith.constant 0 : i32
    %130 = tpu.memref_slice %arg2[%129, %c0_i32_58] : memref<64x32xf32, #tpu.memory_space<any>> -> memref<1x32xf32, #tpu.memory_space<any>>
    %131 = tpu.memref_squeeze %130 : memref<1x32xf32, #tpu.memory_space<any>> -> memref<32xf32, #tpu.memory_space<any>>
    %c0_i32_59 = arith.constant 0 : i32
    %132 = tpu.memref_slice %arg8[%c14_i32_56, %c0_i32_59] : memref<16x32xf32, #tpu.memory_space<vmem>> -> memref<1x32xf32, #tpu.memory_space<vmem>>
    %133 = tpu.memref_squeeze %132 : memref<1x32xf32, #tpu.memory_space<vmem>> -> memref<32xf32, #tpu.memory_space<vmem>>
    %134 = tpu.memref_slice %arg10[%c14_i32_57] : memref<16x!tpu.dma_semaphore, #tpu.memory_space<semaphore_mem>> -> memref<1x!tpu.dma_semaphore, #tpu.memory_space<semaphore_mem>>
    %135 = tpu.memref_squeeze %134 : memref<1x!tpu.dma_semaphore, #tpu.memory_space<semaphore_mem>> -> memref<!tpu.dma_semaphore, #tpu.memory_space<semaphore_mem>>
    tpu.enqueue_dma source(%131 : memref<32xf32, #tpu.memory_space<any>>) target(%133 : memref<32xf32, #tpu.memory_space<vmem>>) target_semaphore(%135 : memref<!tpu.dma_semaphore, #tpu.memory_space<semaphore_mem>>)
    %c15_i32 = arith.constant 15 : i32
    %136 = arith.addi %0, %c15_i32 : i32
    %137 = arith.index_cast %136 : i32 to index
    %138 = memref.load %arg1[%137] : memref<16xi32, #tpu.memory_space<smem>>
    %c15_i32_60 = arith.constant 15 : i32
    %c15_i32_61 = arith.constant 15 : i32
    %c0_i32_62 = arith.constant 0 : i32
    %139 = tpu.memref_slice %arg2[%138, %c0_i32_62] : memref<64x32xf32, #tpu.memory_space<any>> -> memref<1x32xf32, #tpu.memory_space<any>>
    %140 = tpu.memref_squeeze %139 : memref<1x32xf32, #tpu.memory_space<any>> -> memref<32xf32, #tpu.memory_space<any>>
    %c0_i32_63 = arith.constant 0 : i32
    %141 = tpu.memref_slice %arg8[%c15_i32_60, %c0_i32_63] : memref<16x32xf32, #tpu.memory_space<vmem>> -> memref<1x32xf32, #tpu.memory_space<vmem>>
    %142 = tpu.memref_squeeze %141 : memref<1x32xf32, #tpu.memory_space<vmem>> -> memref<32xf32, #tpu.memory_space<vmem>>
    %143 = tpu.memref_slice %arg10[%c15_i32_61] : memref<16x!tpu.dma_semaphore, #tpu.memory_space<semaphore_mem>> -> memref<1x!tpu.dma_semaphore, #tpu.memory_space<semaphore_mem>>
    %144 = tpu.memref_squeeze %143 : memref<1x!tpu.dma_semaphore, #tpu.memory_space<semaphore_mem>> -> memref<!tpu.dma_semaphore, #tpu.memory_space<semaphore_mem>>
    tpu.enqueue_dma source(%140 : memref<32xf32, #tpu.memory_space<any>>) target(%142 : memref<32xf32, #tpu.memory_space<vmem>>) target_semaphore(%144 : memref<!tpu.dma_semaphore, #tpu.memory_space<semaphore_mem>>)
    %c0_i32_64 = arith.constant 0 : i32
    %145 = arith.addi %0, %c0_i32_64 : i32
    %146 = arith.index_cast %145 : i32 to index
    %147 = memref.load %arg1[%146] : memref<16xi32, #tpu.memory_space<smem>>
    %c0_i32_65 = arith.constant 0 : i32
    %c0_i32_66 = arith.constant 0 : i32
    %c0_i32_67 = arith.constant 0 : i32
    %148 = tpu.memref_slice %arg2[%147, %c0_i32_67] : memref<64x32xf32, #tpu.memory_space<any>> -> memref<1x32xf32, #tpu.memory_space<any>>
    %149 = tpu.memref_squeeze %148 : memref<1x32xf32, #tpu.memory_space<any>> -> memref<32xf32, #tpu.memory_space<any>>
    %c0_i32_68 = arith.constant 0 : i32
    %150 = tpu.memref_slice %arg8[%c0_i32_65, %c0_i32_68] : memref<16x32xf32, #tpu.memory_space<vmem>> -> memref<1x32xf32, #tpu.memory_space<vmem>>
    %151 = tpu.memref_squeeze %150 : memref<1x32xf32, #tpu.memory_space<vmem>> -> memref<32xf32, #tpu.memory_space<vmem>>
    %152 = tpu.memref_slice %arg10[%c0_i32_66] : memref<16x!tpu.dma_semaphore, #tpu.memory_space<semaphore_mem>> -> memref<1x!tpu.dma_semaphore, #tpu.memory_space<semaphore_mem>>
    %153 = tpu.memref_squeeze %152 : memref<1x!tpu.dma_semaphore, #tpu.memory_space<semaphore_mem>> -> memref<!tpu.dma_semaphore, #tpu.memory_space<semaphore_mem>>
    tpu.wait_dma2 semaphore(%153 : memref<!tpu.dma_semaphore, #tpu.memory_space<semaphore_mem>>) src(%149 : memref<32xf32, #tpu.memory_space<any>>) dst(%151 : memref<32xf32, #tpu.memory_space<vmem>>)
    %c1_i32_69 = arith.constant 1 : i32
    %154 = arith.addi %0, %c1_i32_69 : i32
    %155 = arith.index_cast %154 : i32 to index
    %156 = memref.load %arg1[%155] : memref<16xi32, #tpu.memory_space<smem>>
    %c1_i32_70 = arith.constant 1 : i32
    %c1_i32_71 = arith.constant 1 : i32
    %c0_i32_72 = arith.constant 0 : i32
    %157 = tpu.memref_slice %arg2[%156, %c0_i32_72] : memref<64x32xf32, #tpu.memory_space<any>> -> memref<1x32xf32, #tpu.memory_space<any>>
    %158 = tpu.memref_squeeze %157 : memref<1x32xf32, #tpu.memory_space<any>> -> memref<32xf32, #tpu.memory_space<any>>
    %c0_i32_73 = arith.constant 0 : i32
    %159 = tpu.memref_slice %arg8[%c1_i32_70, %c0_i32_73] : memref<16x32xf32, #tpu.memory_space<vmem>> -> memref<1x32xf32, #tpu.memory_space<vmem>>
    %160 = tpu.memref_squeeze %159 : memref<1x32xf32, #tpu.memory_space<vmem>> -> memref<32xf32, #tpu.memory_space<vmem>>
    %161 = tpu.memref_slice %arg10[%c1_i32_71] : memref<16x!tpu.dma_semaphore, #tpu.memory_space<semaphore_mem>> -> memref<1x!tpu.dma_semaphore, #tpu.memory_space<semaphore_mem>>
    %162 = tpu.memref_squeeze %161 : memref<1x!tpu.dma_semaphore, #tpu.memory_space<semaphore_mem>> -> memref<!tpu.dma_semaphore, #tpu.memory_space<semaphore_mem>>
    tpu.wait_dma2 semaphore(%162 : memref<!tpu.dma_semaphore, #tpu.memory_space<semaphore_mem>>) src(%158 : memref<32xf32, #tpu.memory_space<any>>) dst(%160 : memref<32xf32, #tpu.memory_space<vmem>>)
    %c2_i32_74 = arith.constant 2 : i32
    %163 = arith.addi %0, %c2_i32_74 : i32
    %164 = arith.index_cast %163 : i32 to index
    %165 = memref.load %arg1[%164] : memref<16xi32, #tpu.memory_space<smem>>
    %c2_i32_75 = arith.constant 2 : i32
    %c2_i32_76 = arith.constant 2 : i32
    %c0_i32_77 = arith.constant 0 : i32
    %166 = tpu.memref_slice %arg2[%165, %c0_i32_77] : memref<64x32xf32, #tpu.memory_space<any>> -> memref<1x32xf32, #tpu.memory_space<any>>
    %167 = tpu.memref_squeeze %166 : memref<1x32xf32, #tpu.memory_space<any>> -> memref<32xf32, #tpu.memory_space<any>>
    %c0_i32_78 = arith.constant 0 : i32
    %168 = tpu.memref_slice %arg8[%c2_i32_75, %c0_i32_78] : memref<16x32xf32, #tpu.memory_space<vmem>> -> memref<1x32xf32, #tpu.memory_space<vmem>>
    %169 = tpu.memref_squeeze %168 : memref<1x32xf32, #tpu.memory_space<vmem>> -> memref<32xf32, #tpu.memory_space<vmem>>
    %170 = tpu.memref_slice %arg10[%c2_i32_76] : memref<16x!tpu.dma_semaphore, #tpu.memory_space<semaphore_mem>> -> memref<1x!tpu.dma_semaphore, #tpu.memory_space<semaphore_mem>>
    %171 = tpu.memref_squeeze %170 : memref<1x!tpu.dma_semaphore, #tpu.memory_space<semaphore_mem>> -> memref<!tpu.dma_semaphore, #tpu.memory_space<semaphore_mem>>
    tpu.wait_dma2 semaphore(%171 : memref<!tpu.dma_semaphore, #tpu.memory_space<semaphore_mem>>) src(%167 : memref<32xf32, #tpu.memory_space<any>>) dst(%169 : memref<32xf32, #tpu.memory_space<vmem>>)
    %c3_i32_79 = arith.constant 3 : i32
    %172 = arith.addi %0, %c3_i32_79 : i32
    %173 = arith.index_cast %172 : i32 to index
    %174 = memref.load %arg1[%173] : memref<16xi32, #tpu.memory_space<smem>>
    %c3_i32_80 = arith.constant 3 : i32
    %c3_i32_81 = arith.constant 3 : i32
    %c0_i32_82 = arith.constant 0 : i32
    %175 = tpu.memref_slice %arg2[%174, %c0_i32_82] : memref<64x32xf32, #tpu.memory_space<any>> -> memref<1x32xf32, #tpu.memory_space<any>>
    %176 = tpu.memref_squeeze %175 : memref<1x32xf32, #tpu.memory_space<any>> -> memref<32xf32, #tpu.memory_space<any>>
    %c0_i32_83 = arith.constant 0 : i32
    %177 = tpu.memref_slice %arg8[%c3_i32_80, %c0_i32_83] : memref<16x32xf32, #tpu.memory_space<vmem>> -> memref<1x32xf32, #tpu.memory_space<vmem>>
    %178 = tpu.memref_squeeze %177 : memref<1x32xf32, #tpu.memory_space<vmem>> -> memref<32xf32, #tpu.memory_space<vmem>>
    %179 = tpu.memref_slice %arg10[%c3_i32_81] : memref<16x!tpu.dma_semaphore, #tpu.memory_space<semaphore_mem>> -> memref<1x!tpu.dma_semaphore, #tpu.memory_space<semaphore_mem>>
    %180 = tpu.memref_squeeze %179 : memref<1x!tpu.dma_semaphore, #tpu.memory_space<semaphore_mem>> -> memref<!tpu.dma_semaphore, #tpu.memory_space<semaphore_mem>>
    tpu.wait_dma2 semaphore(%180 : memref<!tpu.dma_semaphore, #tpu.memory_space<semaphore_mem>>) src(%176 : memref<32xf32, #tpu.memory_space<any>>) dst(%178 : memref<32xf32, #tpu.memory_space<vmem>>)
    %c4_i32_84 = arith.constant 4 : i32
    %181 = arith.addi %0, %c4_i32_84 : i32
    %182 = arith.index_cast %181 : i32 to index
    %183 = memref.load %arg1[%182] : memref<16xi32, #tpu.memory_space<smem>>
    %c4_i32_85 = arith.constant 4 : i32
    %c4_i32_86 = arith.constant 4 : i32
    %c0_i32_87 = arith.constant 0 : i32
    %184 = tpu.memref_slice %arg2[%183, %c0_i32_87] : memref<64x32xf32, #tpu.memory_space<any>> -> memref<1x32xf32, #tpu.memory_space<any>>
    %185 = tpu.memref_squeeze %184 : memref<1x32xf32, #tpu.memory_space<any>> -> memref<32xf32, #tpu.memory_space<any>>
    %c0_i32_88 = arith.constant 0 : i32
    %186 = tpu.memref_slice %arg8[%c4_i32_85, %c0_i32_88] : memref<16x32xf32, #tpu.memory_space<vmem>> -> memref<1x32xf32, #tpu.memory_space<vmem>>
    %187 = tpu.memref_squeeze %186 : memref<1x32xf32, #tpu.memory_space<vmem>> -> memref<32xf32, #tpu.memory_space<vmem>>
    %188 = tpu.memref_slice %arg10[%c4_i32_86] : memref<16x!tpu.dma_semaphore, #tpu.memory_space<semaphore_mem>> -> memref<1x!tpu.dma_semaphore, #tpu.memory_space<semaphore_mem>>
    %189 = tpu.memref_squeeze %188 : memref<1x!tpu.dma_semaphore, #tpu.memory_space<semaphore_mem>> -> memref<!tpu.dma_semaphore, #tpu.memory_space<semaphore_mem>>
    tpu.wait_dma2 semaphore(%189 : memref<!tpu.dma_semaphore, #tpu.memory_space<semaphore_mem>>) src(%185 : memref<32xf32, #tpu.memory_space<any>>) dst(%187 : memref<32xf32, #tpu.memory_space<vmem>>)
    %c5_i32_89 = arith.constant 5 : i32
    %190 = arith.addi %0, %c5_i32_89 : i32
    %191 = arith.index_cast %190 : i32 to index
    %192 = memref.load %arg1[%191] : memref<16xi32, #tpu.memory_space<smem>>
    %c5_i32_90 = arith.constant 5 : i32
    %c5_i32_91 = arith.constant 5 : i32
    %c0_i32_92 = arith.constant 0 : i32
    %193 = tpu.memref_slice %arg2[%192, %c0_i32_92] : memref<64x32xf32, #tpu.memory_space<any>> -> memref<1x32xf32, #tpu.memory_space<any>>
    %194 = tpu.memref_squeeze %193 : memref<1x32xf32, #tpu.memory_space<any>> -> memref<32xf32, #tpu.memory_space<any>>
    %c0_i32_93 = arith.constant 0 : i32
    %195 = tpu.memref_slice %arg8[%c5_i32_90, %c0_i32_93] : memref<16x32xf32, #tpu.memory_space<vmem>> -> memref<1x32xf32, #tpu.memory_space<vmem>>
    %196 = tpu.memref_squeeze %195 : memref<1x32xf32, #tpu.memory_space<vmem>> -> memref<32xf32, #tpu.memory_space<vmem>>
    %197 = tpu.memref_slice %arg10[%c5_i32_91] : memref<16x!tpu.dma_semaphore, #tpu.memory_space<semaphore_mem>> -> memref<1x!tpu.dma_semaphore, #tpu.memory_space<semaphore_mem>>
    %198 = tpu.memref_squeeze %197 : memref<1x!tpu.dma_semaphore, #tpu.memory_space<semaphore_mem>> -> memref<!tpu.dma_semaphore, #tpu.memory_space<semaphore_mem>>
    tpu.wait_dma2 semaphore(%198 : memref<!tpu.dma_semaphore, #tpu.memory_space<semaphore_mem>>) src(%194 : memref<32xf32, #tpu.memory_space<any>>) dst(%196 : memref<32xf32, #tpu.memory_space<vmem>>)
    %c6_i32_94 = arith.constant 6 : i32
    %199 = arith.addi %0, %c6_i32_94 : i32
    %200 = arith.index_cast %199 : i32 to index
    %201 = memref.load %arg1[%200] : memref<16xi32, #tpu.memory_space<smem>>
    %c6_i32_95 = arith.constant 6 : i32
    %c6_i32_96 = arith.constant 6 : i32
    %c0_i32_97 = arith.constant 0 : i32
    %202 = tpu.memref_slice %arg2[%201, %c0_i32_97] : memref<64x32xf32, #tpu.memory_space<any>> -> memref<1x32xf32, #tpu.memory_space<any>>
    %203 = tpu.memref_squeeze %202 : memref<1x32xf32, #tpu.memory_space<any>> -> memref<32xf32, #tpu.memory_space<any>>
    %c0_i32_98 = arith.constant 0 : i32
    %204 = tpu.memref_slice %arg8[%c6_i32_95, %c0_i32_98] : memref<16x32xf32, #tpu.memory_space<vmem>> -> memref<1x32xf32, #tpu.memory_space<vmem>>
    %205 = tpu.memref_squeeze %204 : memref<1x32xf32, #tpu.memory_space<vmem>> -> memref<32xf32, #tpu.memory_space<vmem>>
    %206 = tpu.memref_slice %arg10[%c6_i32_96] : memref<16x!tpu.dma_semaphore, #tpu.memory_space<semaphore_mem>> -> memref<1x!tpu.dma_semaphore, #tpu.memory_space<semaphore_mem>>
    %207 = tpu.memref_squeeze %206 : memref<1x!tpu.dma_semaphore, #tpu.memory_space<semaphore_mem>> -> memref<!tpu.dma_semaphore, #tpu.memory_space<semaphore_mem>>
    tpu.wait_dma2 semaphore(%207 : memref<!tpu.dma_semaphore, #tpu.memory_space<semaphore_mem>>) src(%203 : memref<32xf32, #tpu.memory_space<any>>) dst(%205 : memref<32xf32, #tpu.memory_space<vmem>>)
    %c7_i32_99 = arith.constant 7 : i32
    %208 = arith.addi %0, %c7_i32_99 : i32
    %209 = arith.index_cast %208 : i32 to index
    %210 = memref.load %arg1[%209] : memref<16xi32, #tpu.memory_space<smem>>
    %c7_i32_100 = arith.constant 7 : i32
    %c7_i32_101 = arith.constant 7 : i32
    %c0_i32_102 = arith.constant 0 : i32
    %211 = tpu.memref_slice %arg2[%210, %c0_i32_102] : memref<64x32xf32, #tpu.memory_space<any>> -> memref<1x32xf32, #tpu.memory_space<any>>
    %212 = tpu.memref_squeeze %211 : memref<1x32xf32, #tpu.memory_space<any>> -> memref<32xf32, #tpu.memory_space<any>>
    %c0_i32_103 = arith.constant 0 : i32
    %213 = tpu.memref_slice %arg8[%c7_i32_100, %c0_i32_103] : memref<16x32xf32, #tpu.memory_space<vmem>> -> memref<1x32xf32, #tpu.memory_space<vmem>>
    %214 = tpu.memref_squeeze %213 : memref<1x32xf32, #tpu.memory_space<vmem>> -> memref<32xf32, #tpu.memory_space<vmem>>
    %215 = tpu.memref_slice %arg10[%c7_i32_101] : memref<16x!tpu.dma_semaphore, #tpu.memory_space<semaphore_mem>> -> memref<1x!tpu.dma_semaphore, #tpu.memory_space<semaphore_mem>>
    %216 = tpu.memref_squeeze %215 : memref<1x!tpu.dma_semaphore, #tpu.memory_space<semaphore_mem>> -> memref<!tpu.dma_semaphore, #tpu.memory_space<semaphore_mem>>
    tpu.wait_dma2 semaphore(%216 : memref<!tpu.dma_semaphore, #tpu.memory_space<semaphore_mem>>) src(%212 : memref<32xf32, #tpu.memory_space<any>>) dst(%214 : memref<32xf32, #tpu.memory_space<vmem>>)
    %c8_i32_104 = arith.constant 8 : i32
    %217 = arith.addi %0, %c8_i32_104 : i32
    %218 = arith.index_cast %217 : i32 to index
    %219 = memref.load %arg1[%218] : memref<16xi32, #tpu.memory_space<smem>>
    %c8_i32_105 = arith.constant 8 : i32
    %c8_i32_106 = arith.constant 8 : i32
    %c0_i32_107 = arith.constant 0 : i32
    %220 = tpu.memref_slice %arg2[%219, %c0_i32_107] : memref<64x32xf32, #tpu.memory_space<any>> -> memref<1x32xf32, #tpu.memory_space<any>>
    %221 = tpu.memref_squeeze %220 : memref<1x32xf32, #tpu.memory_space<any>> -> memref<32xf32, #tpu.memory_space<any>>
    %c0_i32_108 = arith.constant 0 : i32
    %222 = tpu.memref_slice %arg8[%c8_i32_105, %c0_i32_108] : memref<16x32xf32, #tpu.memory_space<vmem>> -> memref<1x32xf32, #tpu.memory_space<vmem>>
    %223 = tpu.memref_squeeze %222 : memref<1x32xf32, #tpu.memory_space<vmem>> -> memref<32xf32, #tpu.memory_space<vmem>>
    %224 = tpu.memref_slice %arg10[%c8_i32_106] : memref<16x!tpu.dma_semaphore, #tpu.memory_space<semaphore_mem>> -> memref<1x!tpu.dma_semaphore, #tpu.memory_space<semaphore_mem>>
    %225 = tpu.memref_squeeze %224 : memref<1x!tpu.dma_semaphore, #tpu.memory_space<semaphore_mem>> -> memref<!tpu.dma_semaphore, #tpu.memory_space<semaphore_mem>>
    tpu.wait_dma2 semaphore(%225 : memref<!tpu.dma_semaphore, #tpu.memory_space<semaphore_mem>>) src(%221 : memref<32xf32, #tpu.memory_space<any>>) dst(%223 : memref<32xf32, #tpu.memory_space<vmem>>)
    %c9_i32_109 = arith.constant 9 : i32
    %226 = arith.addi %0, %c9_i32_109 : i32
    %227 = arith.index_cast %226 : i32 to index
    %228 = memref.load %arg1[%227] : memref<16xi32, #tpu.memory_space<smem>>
    %c9_i32_110 = arith.constant 9 : i32
    %c9_i32_111 = arith.constant 9 : i32
    %c0_i32_112 = arith.constant 0 : i32
    %229 = tpu.memref_slice %arg2[%228, %c0_i32_112] : memref<64x32xf32, #tpu.memory_space<any>> -> memref<1x32xf32, #tpu.memory_space<any>>
    %230 = tpu.memref_squeeze %229 : memref<1x32xf32, #tpu.memory_space<any>> -> memref<32xf32, #tpu.memory_space<any>>
    %c0_i32_113 = arith.constant 0 : i32
    %231 = tpu.memref_slice %arg8[%c9_i32_110, %c0_i32_113] : memref<16x32xf32, #tpu.memory_space<vmem>> -> memref<1x32xf32, #tpu.memory_space<vmem>>
    %232 = tpu.memref_squeeze %231 : memref<1x32xf32, #tpu.memory_space<vmem>> -> memref<32xf32, #tpu.memory_space<vmem>>
    %233 = tpu.memref_slice %arg10[%c9_i32_111] : memref<16x!tpu.dma_semaphore, #tpu.memory_space<semaphore_mem>> -> memref<1x!tpu.dma_semaphore, #tpu.memory_space<semaphore_mem>>
    %234 = tpu.memref_squeeze %233 : memref<1x!tpu.dma_semaphore, #tpu.memory_space<semaphore_mem>> -> memref<!tpu.dma_semaphore, #tpu.memory_space<semaphore_mem>>
    tpu.wait_dma2 semaphore(%234 : memref<!tpu.dma_semaphore, #tpu.memory_space<semaphore_mem>>) src(%230 : memref<32xf32, #tpu.memory_space<any>>) dst(%232 : memref<32xf32, #tpu.memory_space<vmem>>)
    %c10_i32_114 = arith.constant 10 : i32
    %235 = arith.addi %0, %c10_i32_114 : i32
    %236 = arith.index_cast %235 : i32 to index
    %237 = memref.load %arg1[%236] : memref<16xi32, #tpu.memory_space<smem>>
    %c10_i32_115 = arith.constant 10 : i32
    %c10_i32_116 = arith.constant 10 : i32
    %c0_i32_117 = arith.constant 0 : i32
    %238 = tpu.memref_slice %arg2[%237, %c0_i32_117] : memref<64x32xf32, #tpu.memory_space<any>> -> memref<1x32xf32, #tpu.memory_space<any>>
    %239 = tpu.memref_squeeze %238 : memref<1x32xf32, #tpu.memory_space<any>> -> memref<32xf32, #tpu.memory_space<any>>
    %c0_i32_118 = arith.constant 0 : i32
    %240 = tpu.memref_slice %arg8[%c10_i32_115, %c0_i32_118] : memref<16x32xf32, #tpu.memory_space<vmem>> -> memref<1x32xf32, #tpu.memory_space<vmem>>
    %241 = tpu.memref_squeeze %240 : memref<1x32xf32, #tpu.memory_space<vmem>> -> memref<32xf32, #tpu.memory_space<vmem>>
    %242 = tpu.memref_slice %arg10[%c10_i32_116] : memref<16x!tpu.dma_semaphore, #tpu.memory_space<semaphore_mem>> -> memref<1x!tpu.dma_semaphore, #tpu.memory_space<semaphore_mem>>
    %243 = tpu.memref_squeeze %242 : memref<1x!tpu.dma_semaphore, #tpu.memory_space<semaphore_mem>> -> memref<!tpu.dma_semaphore, #tpu.memory_space<semaphore_mem>>
    tpu.wait_dma2 semaphore(%243 : memref<!tpu.dma_semaphore, #tpu.memory_space<semaphore_mem>>) src(%239 : memref<32xf32, #tpu.memory_space<any>>) dst(%241 : memref<32xf32, #tpu.memory_space<vmem>>)
    %c11_i32_119 = arith.constant 11 : i32
    %244 = arith.addi %0, %c11_i32_119 : i32
    %245 = arith.index_cast %244 : i32 to index
    %246 = memref.load %arg1[%245] : memref<16xi32, #tpu.memory_space<smem>>
    %c11_i32_120 = arith.constant 11 : i32
    %c11_i32_121 = arith.constant 11 : i32
    %c0_i32_122 = arith.constant 0 : i32
    %247 = tpu.memref_slice %arg2[%246, %c0_i32_122] : memref<64x32xf32, #tpu.memory_space<any>> -> memref<1x32xf32, #tpu.memory_space<any>>
    %248 = tpu.memref_squeeze %247 : memref<1x32xf32, #tpu.memory_space<any>> -> memref<32xf32, #tpu.memory_space<any>>
    %c0_i32_123 = arith.constant 0 : i32
    %249 = tpu.memref_slice %arg8[%c11_i32_120, %c0_i32_123] : memref<16x32xf32, #tpu.memory_space<vmem>> -> memref<1x32xf32, #tpu.memory_space<vmem>>
    %250 = tpu.memref_squeeze %249 : memref<1x32xf32, #tpu.memory_space<vmem>> -> memref<32xf32, #tpu.memory_space<vmem>>
    %251 = tpu.memref_slice %arg10[%c11_i32_121] : memref<16x!tpu.dma_semaphore, #tpu.memory_space<semaphore_mem>> -> memref<1x!tpu.dma_semaphore, #tpu.memory_space<semaphore_mem>>
    %252 = tpu.memref_squeeze %251 : memref<1x!tpu.dma_semaphore, #tpu.memory_space<semaphore_mem>> -> memref<!tpu.dma_semaphore, #tpu.memory_space<semaphore_mem>>
    tpu.wait_dma2 semaphore(%252 : memref<!tpu.dma_semaphore, #tpu.memory_space<semaphore_mem>>) src(%248 : memref<32xf32, #tpu.memory_space<any>>) dst(%250 : memref<32xf32, #tpu.memory_space<vmem>>)
    %c12_i32_124 = arith.constant 12 : i32
    %253 = arith.addi %0, %c12_i32_124 : i32
    %254 = arith.index_cast %253 : i32 to index
    %255 = memref.load %arg1[%254] : memref<16xi32, #tpu.memory_space<smem>>
    %c12_i32_125 = arith.constant 12 : i32
    %c12_i32_126 = arith.constant 12 : i32
    %c0_i32_127 = arith.constant 0 : i32
    %256 = tpu.memref_slice %arg2[%255, %c0_i32_127] : memref<64x32xf32, #tpu.memory_space<any>> -> memref<1x32xf32, #tpu.memory_space<any>>
    %257 = tpu.memref_squeeze %256 : memref<1x32xf32, #tpu.memory_space<any>> -> memref<32xf32, #tpu.memory_space<any>>
    %c0_i32_128 = arith.constant 0 : i32
    %258 = tpu.memref_slice %arg8[%c12_i32_125, %c0_i32_128] : memref<16x32xf32, #tpu.memory_space<vmem>> -> memref<1x32xf32, #tpu.memory_space<vmem>>
    %259 = tpu.memref_squeeze %258 : memref<1x32xf32, #tpu.memory_space<vmem>> -> memref<32xf32, #tpu.memory_space<vmem>>
    %260 = tpu.memref_slice %arg10[%c12_i32_126] : memref<16x!tpu.dma_semaphore, #tpu.memory_space<semaphore_mem>> -> memref<1x!tpu.dma_semaphore, #tpu.memory_space<semaphore_mem>>
    %261 = tpu.memref_squeeze %260 : memref<1x!tpu.dma_semaphore, #tpu.memory_space<semaphore_mem>> -> memref<!tpu.dma_semaphore, #tpu.memory_space<semaphore_mem>>
    tpu.wait_dma2 semaphore(%261 : memref<!tpu.dma_semaphore, #tpu.memory_space<semaphore_mem>>) src(%257 : memref<32xf32, #tpu.memory_space<any>>) dst(%259 : memref<32xf32, #tpu.memory_space<vmem>>)
    %c13_i32_129 = arith.constant 13 : i32
    %262 = arith.addi %0, %c13_i32_129 : i32
    %263 = arith.index_cast %262 : i32 to index
    %264 = memref.load %arg1[%263] : memref<16xi32, #tpu.memory_space<smem>>
    %c13_i32_130 = arith.constant 13 : i32
    %c13_i32_131 = arith.constant 13 : i32
    %c0_i32_132 = arith.constant 0 : i32
    %265 = tpu.memref_slice %arg2[%264, %c0_i32_132] : memref<64x32xf32, #tpu.memory_space<any>> -> memref<1x32xf32, #tpu.memory_space<any>>
    %266 = tpu.memref_squeeze %265 : memref<1x32xf32, #tpu.memory_space<any>> -> memref<32xf32, #tpu.memory_space<any>>
    %c0_i32_133 = arith.constant 0 : i32
    %267 = tpu.memref_slice %arg8[%c13_i32_130, %c0_i32_133] : memref<16x32xf32, #tpu.memory_space<vmem>> -> memref<1x32xf32, #tpu.memory_space<vmem>>
    %268 = tpu.memref_squeeze %267 : memref<1x32xf32, #tpu.memory_space<vmem>> -> memref<32xf32, #tpu.memory_space<vmem>>
    %269 = tpu.memref_slice %arg10[%c13_i32_131] : memref<16x!tpu.dma_semaphore, #tpu.memory_space<semaphore_mem>> -> memref<1x!tpu.dma_semaphore, #tpu.memory_space<semaphore_mem>>
    %270 = tpu.memref_squeeze %269 : memref<1x!tpu.dma_semaphore, #tpu.memory_space<semaphore_mem>> -> memref<!tpu.dma_semaphore, #tpu.memory_space<semaphore_mem>>
    tpu.wait_dma2 semaphore(%270 : memref<!tpu.dma_semaphore, #tpu.memory_space<semaphore_mem>>) src(%266 : memref<32xf32, #tpu.memory_space<any>>) dst(%268 : memref<32xf32, #tpu.memory_space<vmem>>)
    %c14_i32_134 = arith.constant 14 : i32
    %271 = arith.addi %0, %c14_i32_134 : i32
    %272 = arith.index_cast %271 : i32 to index
    %273 = memref.load %arg1[%272] : memref<16xi32, #tpu.memory_space<smem>>
    %c14_i32_135 = arith.constant 14 : i32
    %c14_i32_136 = arith.constant 14 : i32
    %c0_i32_137 = arith.constant 0 : i32
    %274 = tpu.memref_slice %arg2[%273, %c0_i32_137] : memref<64x32xf32, #tpu.memory_space<any>> -> memref<1x32xf32, #tpu.memory_space<any>>
    %275 = tpu.memref_squeeze %274 : memref<1x32xf32, #tpu.memory_space<any>> -> memref<32xf32, #tpu.memory_space<any>>
    %c0_i32_138 = arith.constant 0 : i32
    %276 = tpu.memref_slice %arg8[%c14_i32_135, %c0_i32_138] : memref<16x32xf32, #tpu.memory_space<vmem>> -> memref<1x32xf32, #tpu.memory_space<vmem>>
    %277 = tpu.memref_squeeze %276 : memref<1x32xf32, #tpu.memory_space<vmem>> -> memref<32xf32, #tpu.memory_space<vmem>>
    %278 = tpu.memref_slice %arg10[%c14_i32_136] : memref<16x!tpu.dma_semaphore, #tpu.memory_space<semaphore_mem>> -> memref<1x!tpu.dma_semaphore, #tpu.memory_space<semaphore_mem>>
    %279 = tpu.memref_squeeze %278 : memref<1x!tpu.dma_semaphore, #tpu.memory_space<semaphore_mem>> -> memref<!tpu.dma_semaphore, #tpu.memory_space<semaphore_mem>>
    tpu.wait_dma2 semaphore(%279 : memref<!tpu.dma_semaphore, #tpu.memory_space<semaphore_mem>>) src(%275 : memref<32xf32, #tpu.memory_space<any>>) dst(%277 : memref<32xf32, #tpu.memory_space<vmem>>)
    %c15_i32_139 = arith.constant 15 : i32
    %280 = arith.addi %0, %c15_i32_139 : i32
    %281 = arith.index_cast %280 : i32 to index
    %282 = memref.load %arg1[%281] : memref<16xi32, #tpu.memory_space<smem>>
    %c15_i32_140 = arith.constant 15 : i32
    %c15_i32_141 = arith.constant 15 : i32
    %c0_i32_142 = arith.constant 0 : i32
    %283 = tpu.memref_slice %arg2[%282, %c0_i32_142] : memref<64x32xf32, #tpu.memory_space<any>> -> memref<1x32xf32, #tpu.memory_space<any>>
    %284 = tpu.memref_squeeze %283 : memref<1x32xf32, #tpu.memory_space<any>> -> memref<32xf32, #tpu.memory_space<any>>
    %c0_i32_143 = arith.constant 0 : i32
    %285 = tpu.memref_slice %arg8[%c15_i32_140, %c0_i32_143] : memref<16x32xf32, #tpu.memory_space<vmem>> -> memref<1x32xf32, #tpu.memory_space<vmem>>
    %286 = tpu.memref_squeeze %285 : memref<1x32xf32, #tpu.memory_space<vmem>> -> memref<32xf32, #tpu.memory_space<vmem>>
    %287 = tpu.memref_slice %arg10[%c15_i32_141] : memref<16x!tpu.dma_semaphore, #tpu.memory_space<semaphore_mem>> -> memref<1x!tpu.dma_semaphore, #tpu.memory_space<semaphore_mem>>
    %288 = tpu.memref_squeeze %287 : memref<1x!tpu.dma_semaphore, #tpu.memory_space<semaphore_mem>> -> memref<!tpu.dma_semaphore, #tpu.memory_space<semaphore_mem>>
    tpu.wait_dma2 semaphore(%288 : memref<!tpu.dma_semaphore, #tpu.memory_space<semaphore_mem>>) src(%284 : memref<32xf32, #tpu.memory_space<any>>) dst(%286 : memref<32xf32, #tpu.memory_space<vmem>>)
    %c0 = arith.constant 0 : index
    %c0_144 = arith.constant 0 : index
    %289 = vector.load %arg8[%c0, %c0_144] : memref<16x32xf32, #tpu.memory_space<vmem>>, vector<16x32xf32>
    %c0_145 = arith.constant 0 : index
    %c0_146 = arith.constant 0 : index
    %290 = vector.load %arg3[%c0_145, %c0_146] : memref<32x96xf32, #tpu.memory_space<vmem>>, vector<32x96xf32>
    %cst = arith.constant dense<0.000000e+00> : vector<16x96xf32>
    %291 = tpu.matmul %289, %290, %cst {dimension_numbers = #tpu.dot_dimension_numbers<[1], [0], [0], [1], [0, 0, 1, 1], [], []>} : vector<16x32xf32>, vector<32x96xf32>, vector<16x96xf32> -> vector<16x96xf32>
    %c0_147 = arith.constant 0 : index
    %c0_148 = arith.constant 0 : index
    %292 = vector.load %arg4[%c0_147, %c0_148] : memref<1x96xf32, #tpu.memory_space<vmem>>, vector<1x96xf32>
    %293 = vector.broadcast %292 : vector<1x96xf32> to vector<16x96xf32>
    %294 = arith.addf %291, %293 : vector<16x96xf32>
    %295 = vector.extract_strided_slice %294 {offsets = [0, 0], sizes = [16, 32], strides = [1, 1]} : vector<16x96xf32> to vector<16x32xf32>
    %cst_149 = arith.constant 5.000000e-01 : f32
    %296 = vector.broadcast %cst_149 : f32 to vector<16x32xf32>
    %297 = arith.mulf %295, %296 : vector<16x32xf32>
    %298 = vector.extract_strided_slice %294 {offsets = [0, 32], sizes = [16, 32], strides = [1, 1]} : vector<16x96xf32> to vector<16x32xf32>
    %299 = vector.extract_strided_slice %294 {offsets = [0, 64], sizes = [16, 32], strides = [1, 1]} : vector<16x96xf32> to vector<16x32xf32>
    %300 = vector.extract_strided_slice %297 {offsets = [0, 0], sizes = [8, 4], strides = [1, 1]} : vector<16x32xf32> to vector<8x4xf32>
    %301 = vector.extract_strided_slice %298 {offsets = [0, 0], sizes = [8, 4], strides = [1, 1]} : vector<16x32xf32> to vector<8x4xf32>
    %302 = vector.extract_strided_slice %299 {offsets = [0, 0], sizes = [8, 4], strides = [1, 1]} : vector<16x32xf32> to vector<8x4xf32>
    %cst_150 = arith.constant dense<0.000000e+00> : vector<8x8xf32>
    %303 = tpu.matmul %300, %301, %cst_150 {dimension_numbers = #tpu.dot_dimension_numbers<[1], [1], [0], [0], [0, 0, 1, 0], [], []>} : vector<8x4xf32>, vector<8x4xf32>, vector<8x8xf32> -> vector<8x8xf32>
    %cst_151 = arith.constant dense<0xFF800000> : vector<8xf32>
    %304 = vector.multi_reduction <maximumf>, %303, %cst_151 [1] : vector<8x8xf32> to vector<8xf32>
    %305 = vector.shape_cast %304 : vector<8xf32> to vector<8x1xf32>
    %306 = vector.broadcast %305 : vector<8x1xf32> to vector<8x8xf32>
    %307 = arith.subf %303, %306 : vector<8x8xf32>
    %308 = math.exp %307 : vector<8x8xf32>
    %cst_152 = arith.constant dense<0.000000e+00> : vector<8xf32>
    %309 = vector.multi_reduction <add>, %308, %cst_152 [1] : vector<8x8xf32> to vector<8xf32>
    %310 = vector.shape_cast %309 : vector<8xf32> to vector<8x1xf32>
    %311 = tpu.reciprocal %310 {approx = true} : vector<8x1xf32> -> vector<8x1xf32>
    %312 = vector.broadcast %311 : vector<8x1xf32> to vector<8x8xf32>
    %313 = arith.mulf %308, %312 : vector<8x8xf32>
    %cst_153 = arith.constant dense<0.000000e+00> : vector<8x4xf32>
    %314 = tpu.matmul %313, %302, %cst_153 {dimension_numbers = #tpu.dot_dimension_numbers<[1], [0], [0], [1], [0, 0, 1, 1], [], []>} : vector<8x8xf32>, vector<8x4xf32>, vector<8x4xf32> -> vector<8x4xf32>
    %c0_154 = arith.constant 0 : index
    %c0_155 = arith.constant 0 : index
    %315 = vector.load %arg9[%c0_154, %c0_155] : memref<16x32xf32, #tpu.memory_space<vmem>>, vector<8x4xf32>
    tpu.vector_store %arg9[%c0_154, %c0_155], %314 {strides = array<i32>} : memref<16x32xf32, #tpu.memory_space<vmem>>, vector<8x4xf32>,
    %316 = vector.extract_strided_slice %297 {offsets = [0, 4], sizes = [8, 4], strides = [1, 1]} : vector<16x32xf32> to vector<8x4xf32>
    %317 = vector.extract_strided_slice %298 {offsets = [0, 4], sizes = [8, 4], strides = [1, 1]} : vector<16x32xf32> to vector<8x4xf32>
    %318 = vector.extract_strided_slice %299 {offsets = [0, 4], sizes = [8, 4], strides = [1, 1]} : vector<16x32xf32> to vector<8x4xf32>
    %cst_156 = arith.constant dense<0.000000e+00> : vector<8x8xf32>
    %319 = tpu.matmul %316, %317, %cst_156 {dimension_numbers = #tpu.dot_dimension_numbers<[1], [1], [0], [0], [0, 0, 1, 0], [], []>} : vector<8x4xf32>, vector<8x4xf32>, vector<8x8xf32> -> vector<8x8xf32>
    %cst_157 = arith.constant dense<0xFF800000> : vector<8xf32>
    %320 = vector.multi_reduction <maximumf>, %319, %cst_157 [1] : vector<8x8xf32> to vector<8xf32>
    %321 = vector.shape_cast %320 : vector<8xf32> to vector<8x1xf32>
    %322 = vector.broadcast %321 : vector<8x1xf32> to vector<8x8xf32>
    %323 = arith.subf %319, %322 : vector<8x8xf32>
    %324 = math.exp %323 : vector<8x8xf32>
    %cst_158 = arith.constant dense<0.000000e+00> : vector<8xf32>
    %325 = vector.multi_reduction <add>, %324, %cst_158 [1] : vector<8x8xf32> to vector<8xf32>
    %326 = vector.shape_cast %325 : vector<8xf32> to vector<8x1xf32>
    %327 = tpu.reciprocal %326 {approx = true} : vector<8x1xf32> -> vector<8x1xf32>
    %328 = vector.broadcast %327 : vector<8x1xf32> to vector<8x8xf32>
    %329 = arith.mulf %324, %328 : vector<8x8xf32>
    %cst_159 = arith.constant dense<0.000000e+00> : vector<8x4xf32>
    %330 = tpu.matmul %329, %318, %cst_159 {dimension_numbers = #tpu.dot_dimension_numbers<[1], [0], [0], [1], [0, 0, 1, 1], [], []>} : vector<8x8xf32>, vector<8x4xf32>, vector<8x4xf32> -> vector<8x4xf32>
    %c0_160 = arith.constant 0 : index
    %c4 = arith.constant 4 : index
    %331 = vector.load %arg9[%c0_160, %c4] : memref<16x32xf32, #tpu.memory_space<vmem>>, vector<8x4xf32>
    tpu.vector_store %arg9[%c0_160, %c4], %330 {strides = array<i32>} : memref<16x32xf32, #tpu.memory_space<vmem>>, vector<8x4xf32>,
    %332 = vector.extract_strided_slice %297 {offsets = [0, 8], sizes = [8, 4], strides = [1, 1]} : vector<16x32xf32> to vector<8x4xf32>
    %333 = vector.extract_strided_slice %298 {offsets = [0, 8], sizes = [8, 4], strides = [1, 1]} : vector<16x32xf32> to vector<8x4xf32>
    %334 = vector.extract_strided_slice %299 {offsets = [0, 8], sizes = [8, 4], strides = [1, 1]} : vector<16x32xf32> to vector<8x4xf32>
    %cst_161 = arith.constant dense<0.000000e+00> : vector<8x8xf32>
    %335 = tpu.matmul %332, %333, %cst_161 {dimension_numbers = #tpu.dot_dimension_numbers<[1], [1], [0], [0], [0, 0, 1, 0], [], []>} : vector<8x4xf32>, vector<8x4xf32>, vector<8x8xf32> -> vector<8x8xf32>
    %cst_162 = arith.constant dense<0xFF800000> : vector<8xf32>
    %336 = vector.multi_reduction <maximumf>, %335, %cst_162 [1] : vector<8x8xf32> to vector<8xf32>
    %337 = vector.shape_cast %336 : vector<8xf32> to vector<8x1xf32>
    %338 = vector.broadcast %337 : vector<8x1xf32> to vector<8x8xf32>
    %339 = arith.subf %335, %338 : vector<8x8xf32>
    %340 = math.exp %339 : vector<8x8xf32>
    %cst_163 = arith.constant dense<0.000000e+00> : vector<8xf32>
    %341 = vector.multi_reduction <add>, %340, %cst_163 [1] : vector<8x8xf32> to vector<8xf32>
    %342 = vector.shape_cast %341 : vector<8xf32> to vector<8x1xf32>
    %343 = tpu.reciprocal %342 {approx = true} : vector<8x1xf32> -> vector<8x1xf32>
    %344 = vector.broadcast %343 : vector<8x1xf32> to vector<8x8xf32>
    %345 = arith.mulf %340, %344 : vector<8x8xf32>
    %cst_164 = arith.constant dense<0.000000e+00> : vector<8x4xf32>
    %346 = tpu.matmul %345, %334, %cst_164 {dimension_numbers = #tpu.dot_dimension_numbers<[1], [0], [0], [1], [0, 0, 1, 1], [], []>} : vector<8x8xf32>, vector<8x4xf32>, vector<8x4xf32> -> vector<8x4xf32>
    %c0_165 = arith.constant 0 : index
    %c8 = arith.constant 8 : index
    %347 = vector.load %arg9[%c0_165, %c8] : memref<16x32xf32, #tpu.memory_space<vmem>>, vector<8x4xf32>
    tpu.vector_store %arg9[%c0_165, %c8], %346 {strides = array<i32>} : memref<16x32xf32, #tpu.memory_space<vmem>>, vector<8x4xf32>,
    %348 = vector.extract_strided_slice %297 {offsets = [0, 12], sizes = [8, 4], strides = [1, 1]} : vector<16x32xf32> to vector<8x4xf32>
    %349 = vector.extract_strided_slice %298 {offsets = [0, 12], sizes = [8, 4], strides = [1, 1]} : vector<16x32xf32> to vector<8x4xf32>
    %350 = vector.extract_strided_slice %299 {offsets = [0, 12], sizes = [8, 4], strides = [1, 1]} : vector<16x32xf32> to vector<8x4xf32>
    %cst_166 = arith.constant dense<0.000000e+00> : vector<8x8xf32>
    %351 = tpu.matmul %348, %349, %cst_166 {dimension_numbers = #tpu.dot_dimension_numbers<[1], [1], [0], [0], [0, 0, 1, 0], [], []>} : vector<8x4xf32>, vector<8x4xf32>, vector<8x8xf32> -> vector<8x8xf32>
    %cst_167 = arith.constant dense<0xFF800000> : vector<8xf32>
    %352 = vector.multi_reduction <maximumf>, %351, %cst_167 [1] : vector<8x8xf32> to vector<8xf32>
    %353 = vector.shape_cast %352 : vector<8xf32> to vector<8x1xf32>
    %354 = vector.broadcast %353 : vector<8x1xf32> to vector<8x8xf32>
    %355 = arith.subf %351, %354 : vector<8x8xf32>
    %356 = math.exp %355 : vector<8x8xf32>
    %cst_168 = arith.constant dense<0.000000e+00> : vector<8xf32>
    %357 = vector.multi_reduction <add>, %356, %cst_168 [1] : vector<8x8xf32> to vector<8xf32>
    %358 = vector.shape_cast %357 : vector<8xf32> to vector<8x1xf32>
    %359 = tpu.reciprocal %358 {approx = true} : vector<8x1xf32> -> vector<8x1xf32>
    %360 = vector.broadcast %359 : vector<8x1xf32> to vector<8x8xf32>
    %361 = arith.mulf %356, %360 : vector<8x8xf32>
    %cst_169 = arith.constant dense<0.000000e+00> : vector<8x4xf32>
    %362 = tpu.matmul %361, %350, %cst_169 {dimension_numbers = #tpu.dot_dimension_numbers<[1], [0], [0], [1], [0, 0, 1, 1], [], []>} : vector<8x8xf32>, vector<8x4xf32>, vector<8x4xf32> -> vector<8x4xf32>
    %c0_170 = arith.constant 0 : index
    %c12 = arith.constant 12 : index
    %363 = vector.load %arg9[%c0_170, %c12] : memref<16x32xf32, #tpu.memory_space<vmem>>, vector<8x4xf32>
    tpu.vector_store %arg9[%c0_170, %c12], %362 {strides = array<i32>} : memref<16x32xf32, #tpu.memory_space<vmem>>, vector<8x4xf32>,
    %364 = vector.extract_strided_slice %297 {offsets = [0, 16], sizes = [8, 4], strides = [1, 1]} : vector<16x32xf32> to vector<8x4xf32>
    %365 = vector.extract_strided_slice %298 {offsets = [0, 16], sizes = [8, 4], strides = [1, 1]} : vector<16x32xf32> to vector<8x4xf32>
    %366 = vector.extract_strided_slice %299 {offsets = [0, 16], sizes = [8, 4], strides = [1, 1]} : vector<16x32xf32> to vector<8x4xf32>
    %cst_171 = arith.constant dense<0.000000e+00> : vector<8x8xf32>
    %367 = tpu.matmul %364, %365, %cst_171 {dimension_numbers = #tpu.dot_dimension_numbers<[1], [1], [0], [0], [0, 0, 1, 0], [], []>} : vector<8x4xf32>, vector<8x4xf32>, vector<8x8xf32> -> vector<8x8xf32>
    %cst_172 = arith.constant dense<0xFF800000> : vector<8xf32>
    %368 = vector.multi_reduction <maximumf>, %367, %cst_172 [1] : vector<8x8xf32> to vector<8xf32>
    %369 = vector.shape_cast %368 : vector<8xf32> to vector<8x1xf32>
    %370 = vector.broadcast %369 : vector<8x1xf32> to vector<8x8xf32>
    %371 = arith.subf %367, %370 : vector<8x8xf32>
    %372 = math.exp %371 : vector<8x8xf32>
    %cst_173 = arith.constant dense<0.000000e+00> : vector<8xf32>
    %373 = vector.multi_reduction <add>, %372, %cst_173 [1] : vector<8x8xf32> to vector<8xf32>
    %374 = vector.shape_cast %373 : vector<8xf32> to vector<8x1xf32>
    %375 = tpu.reciprocal %374 {approx = true} : vector<8x1xf32> -> vector<8x1xf32>
    %376 = vector.broadcast %375 : vector<8x1xf32> to vector<8x8xf32>
    %377 = arith.mulf %372, %376 : vector<8x8xf32>
    %cst_174 = arith.constant dense<0.000000e+00> : vector<8x4xf32>
    %378 = tpu.matmul %377, %366, %cst_174 {dimension_numbers = #tpu.dot_dimension_numbers<[1], [0], [0], [1], [0, 0, 1, 1], [], []>} : vector<8x8xf32>, vector<8x4xf32>, vector<8x4xf32> -> vector<8x4xf32>
    %c0_175 = arith.constant 0 : index
    %c16 = arith.constant 16 : index
    %379 = vector.load %arg9[%c0_175, %c16] : memref<16x32xf32, #tpu.memory_space<vmem>>, vector<8x4xf32>
    tpu.vector_store %arg9[%c0_175, %c16], %378 {strides = array<i32>} : memref<16x32xf32, #tpu.memory_space<vmem>>, vector<8x4xf32>,
    %380 = vector.extract_strided_slice %297 {offsets = [0, 20], sizes = [8, 4], strides = [1, 1]} : vector<16x32xf32> to vector<8x4xf32>
    %381 = vector.extract_strided_slice %298 {offsets = [0, 20], sizes = [8, 4], strides = [1, 1]} : vector<16x32xf32> to vector<8x4xf32>
    %382 = vector.extract_strided_slice %299 {offsets = [0, 20], sizes = [8, 4], strides = [1, 1]} : vector<16x32xf32> to vector<8x4xf32>
    %cst_176 = arith.constant dense<0.000000e+00> : vector<8x8xf32>
    %383 = tpu.matmul %380, %381, %cst_176 {dimension_numbers = #tpu.dot_dimension_numbers<[1], [1], [0], [0], [0, 0, 1, 0], [], []>} : vector<8x4xf32>, vector<8x4xf32>, vector<8x8xf32> -> vector<8x8xf32>
    %cst_177 = arith.constant dense<0xFF800000> : vector<8xf32>
    %384 = vector.multi_reduction <maximumf>, %383, %cst_177 [1] : vector<8x8xf32> to vector<8xf32>
    %385 = vector.shape_cast %384 : vector<8xf32> to vector<8x1xf32>
    %386 = vector.broadcast %385 : vector<8x1xf32> to vector<8x8xf32>
    %387 = arith.subf %383, %386 : vector<8x8xf32>
    %388 = math.exp %387 : vector<8x8xf32>
    %cst_178 = arith.constant dense<0.000000e+00> : vector<8xf32>
    %389 = vector.multi_reduction <add>, %388, %cst_178 [1] : vector<8x8xf32> to vector<8xf32>
    %390 = vector.shape_cast %389 : vector<8xf32> to vector<8x1xf32>
    %391 = tpu.reciprocal %390 {approx = true} : vector<8x1xf32> -> vector<8x1xf32>
    %392 = vector.broadcast %391 : vector<8x1xf32> to vector<8x8xf32>
    %393 = arith.mulf %388, %392 : vector<8x8xf32>
    %cst_179 = arith.constant dense<0.000000e+00> : vector<8x4xf32>
    %394 = tpu.matmul %393, %382, %cst_179 {dimension_numbers = #tpu.dot_dimension_numbers<[1], [0], [0], [1], [0, 0, 1, 1], [], []>} : vector<8x8xf32>, vector<8x4xf32>, vector<8x4xf32> -> vector<8x4xf32>
    %c0_180 = arith.constant 0 : index
    %c20 = arith.constant 20 : index
    %395 = vector.load %arg9[%c0_180, %c20] : memref<16x32xf32, #tpu.memory_space<vmem>>, vector<8x4xf32>
    tpu.vector_store %arg9[%c0_180, %c20], %394 {strides = array<i32>} : memref<16x32xf32, #tpu.memory_space<vmem>>, vector<8x4xf32>,
    %396 = vector.extract_strided_slice %297 {offsets = [0, 24], sizes = [8, 4], strides = [1, 1]} : vector<16x32xf32> to vector<8x4xf32>
    %397 = vector.extract_strided_slice %298 {offsets = [0, 24], sizes = [8, 4], strides = [1, 1]} : vector<16x32xf32> to vector<8x4xf32>
    %398 = vector.extract_strided_slice %299 {offsets = [0, 24], sizes = [8, 4], strides = [1, 1]} : vector<16x32xf32> to vector<8x4xf32>
    %cst_181 = arith.constant dense<0.000000e+00> : vector<8x8xf32>
    %399 = tpu.matmul %396, %397, %cst_181 {dimension_numbers = #tpu.dot_dimension_numbers<[1], [1], [0], [0], [0, 0, 1, 0], [], []>} : vector<8x4xf32>, vector<8x4xf32>, vector<8x8xf32> -> vector<8x8xf32>
    %cst_182 = arith.constant dense<0xFF800000> : vector<8xf32>
    %400 = vector.multi_reduction <maximumf>, %399, %cst_182 [1] : vector<8x8xf32> to vector<8xf32>
    %401 = vector.shape_cast %400 : vector<8xf32> to vector<8x1xf32>
    %402 = vector.broadcast %401 : vector<8x1xf32> to vector<8x8xf32>
    %403 = arith.subf %399, %402 : vector<8x8xf32>
    %404 = math.exp %403 : vector<8x8xf32>
    %cst_183 = arith.constant dense<0.000000e+00> : vector<8xf32>
    %405 = vector.multi_reduction <add>, %404, %cst_183 [1] : vector<8x8xf32> to vector<8xf32>
    %406 = vector.shape_cast %405 : vector<8xf32> to vector<8x1xf32>
    %407 = tpu.reciprocal %406 {approx = true} : vector<8x1xf32> -> vector<8x1xf32>
    %408 = vector.broadcast %407 : vector<8x1xf32> to vector<8x8xf32>
    %409 = arith.mulf %404, %408 : vector<8x8xf32>
    %cst_184 = arith.constant dense<0.000000e+00> : vector<8x4xf32>
    %410 = tpu.matmul %409, %398, %cst_184 {dimension_numbers = #tpu.dot_dimension_numbers<[1], [0], [0], [1], [0, 0, 1, 1], [], []>} : vector<8x8xf32>, vector<8x4xf32>, vector<8x4xf32> -> vector<8x4xf32>
    %c0_185 = arith.constant 0 : index
    %c24 = arith.constant 24 : index
    %411 = vector.load %arg9[%c0_185, %c24] : memref<16x32xf32, #tpu.memory_space<vmem>>, vector<8x4xf32>
    tpu.vector_store %arg9[%c0_185, %c24], %410 {strides = array<i32>} : memref<16x32xf32, #tpu.memory_space<vmem>>, vector<8x4xf32>,
    %412 = vector.extract_strided_slice %297 {offsets = [0, 28], sizes = [8, 4], strides = [1, 1]} : vector<16x32xf32> to vector<8x4xf32>
    %413 = vector.extract_strided_slice %298 {offsets = [0, 28], sizes = [8, 4], strides = [1, 1]} : vector<16x32xf32> to vector<8x4xf32>
    %414 = vector.extract_strided_slice %299 {offsets = [0, 28], sizes = [8, 4], strides = [1, 1]} : vector<16x32xf32> to vector<8x4xf32>
    %cst_186 = arith.constant dense<0.000000e+00> : vector<8x8xf32>
    %415 = tpu.matmul %412, %413, %cst_186 {dimension_numbers = #tpu.dot_dimension_numbers<[1], [1], [0], [0], [0, 0, 1, 0], [], []>} : vector<8x4xf32>, vector<8x4xf32>, vector<8x8xf32> -> vector<8x8xf32>
    %cst_187 = arith.constant dense<0xFF800000> : vector<8xf32>
    %416 = vector.multi_reduction <maximumf>, %415, %cst_187 [1] : vector<8x8xf32> to vector<8xf32>
    %417 = vector.shape_cast %416 : vector<8xf32> to vector<8x1xf32>
    %418 = vector.broadcast %417 : vector<8x1xf32> to vector<8x8xf32>
    %419 = arith.subf %415, %418 : vector<8x8xf32>
    %420 = math.exp %419 : vector<8x8xf32>
    %cst_188 = arith.constant dense<0.000000e+00> : vector<8xf32>
    %421 = vector.multi_reduction <add>, %420, %cst_188 [1] : vector<8x8xf32> to vector<8xf32>
    %422 = vector.shape_cast %421 : vector<8xf32> to vector<8x1xf32>
    %423 = tpu.reciprocal %422 {approx = true} : vector<8x1xf32> -> vector<8x1xf32>
    %424 = vector.broadcast %423 : vector<8x1xf32> to vector<8x8xf32>
    %425 = arith.mulf %420, %424 : vector<8x8xf32>
    %cst_189 = arith.constant dense<0.000000e+00> : vector<8x4xf32>
    %426 = tpu.matmul %425, %414, %cst_189 {dimension_numbers = #tpu.dot_dimension_numbers<[1], [0], [0], [1], [0, 0, 1, 1], [], []>} : vector<8x8xf32>, vector<8x4xf32>, vector<8x4xf32> -> vector<8x4xf32>
    %c0_190 = arith.constant 0 : index
    %c28 = arith.constant 28 : index
    %427 = vector.load %arg9[%c0_190, %c28] : memref<16x32xf32, #tpu.memory_space<vmem>>, vector<8x4xf32>
    tpu.vector_store %arg9[%c0_190, %c28], %426 {strides = array<i32>} : memref<16x32xf32, #tpu.memory_space<vmem>>, vector<8x4xf32>,
    %428 = vector.extract_strided_slice %297 {offsets = [8, 0], sizes = [8, 4], strides = [1, 1]} : vector<16x32xf32> to vector<8x4xf32>
    %429 = vector.extract_strided_slice %298 {offsets = [8, 0], sizes = [8, 4], strides = [1, 1]} : vector<16x32xf32> to vector<8x4xf32>
    %430 = vector.extract_strided_slice %299 {offsets = [8, 0], sizes = [8, 4], strides = [1, 1]} : vector<16x32xf32> to vector<8x4xf32>
    %cst_191 = arith.constant dense<0.000000e+00> : vector<8x8xf32>
    %431 = tpu.matmul %428, %429, %cst_191 {dimension_numbers = #tpu.dot_dimension_numbers<[1], [1], [0], [0], [0, 0, 1, 0], [], []>} : vector<8x4xf32>, vector<8x4xf32>, vector<8x8xf32> -> vector<8x8xf32>
    %cst_192 = arith.constant dense<0xFF800000> : vector<8xf32>
    %432 = vector.multi_reduction <maximumf>, %431, %cst_192 [1] : vector<8x8xf32> to vector<8xf32>
    %433 = vector.shape_cast %432 : vector<8xf32> to vector<8x1xf32>
    %434 = vector.broadcast %433 : vector<8x1xf32> to vector<8x8xf32>
    %435 = arith.subf %431, %434 : vector<8x8xf32>
    %436 = math.exp %435 : vector<8x8xf32>
    %cst_193 = arith.constant dense<0.000000e+00> : vector<8xf32>
    %437 = vector.multi_reduction <add>, %436, %cst_193 [1] : vector<8x8xf32> to vector<8xf32>
    %438 = vector.shape_cast %437 : vector<8xf32> to vector<8x1xf32>
    %439 = tpu.reciprocal %438 {approx = true} : vector<8x1xf32> -> vector<8x1xf32>
    %440 = vector.broadcast %439 : vector<8x1xf32> to vector<8x8xf32>
    %441 = arith.mulf %436, %440 : vector<8x8xf32>
    %cst_194 = arith.constant dense<0.000000e+00> : vector<8x4xf32>
    %442 = tpu.matmul %441, %430, %cst_194 {dimension_numbers = #tpu.dot_dimension_numbers<[1], [0], [0], [1], [0, 0, 1, 1], [], []>} : vector<8x8xf32>, vector<8x4xf32>, vector<8x4xf32> -> vector<8x4xf32>
    %c8_195 = arith.constant 8 : index
    %c0_196 = arith.constant 0 : index
    %443 = vector.load %arg9[%c8_195, %c0_196] : memref<16x32xf32, #tpu.memory_space<vmem>>, vector<8x4xf32>
    tpu.vector_store %arg9[%c8_195, %c0_196], %442 {strides = array<i32>} : memref<16x32xf32, #tpu.memory_space<vmem>>, vector<8x4xf32>,
    %444 = vector.extract_strided_slice %297 {offsets = [8, 4], sizes = [8, 4], strides = [1, 1]} : vector<16x32xf32> to vector<8x4xf32>
    %445 = vector.extract_strided_slice %298 {offsets = [8, 4], sizes = [8, 4], strides = [1, 1]} : vector<16x32xf32> to vector<8x4xf32>
    %446 = vector.extract_strided_slice %299 {offsets = [8, 4], sizes = [8, 4], strides = [1, 1]} : vector<16x32xf32> to vector<8x4xf32>
    %cst_197 = arith.constant dense<0.000000e+00> : vector<8x8xf32>
    %447 = tpu.matmul %444, %445, %cst_197 {dimension_numbers = #tpu.dot_dimension_numbers<[1], [1], [0], [0], [0, 0, 1, 0], [], []>} : vector<8x4xf32>, vector<8x4xf32>, vector<8x8xf32> -> vector<8x8xf32>
    %cst_198 = arith.constant dense<0xFF800000> : vector<8xf32>
    %448 = vector.multi_reduction <maximumf>, %447, %cst_198 [1] : vector<8x8xf32> to vector<8xf32>
    %449 = vector.shape_cast %448 : vector<8xf32> to vector<8x1xf32>
    %450 = vector.broadcast %449 : vector<8x1xf32> to vector<8x8xf32>
    %451 = arith.subf %447, %450 : vector<8x8xf32>
    %452 = math.exp %451 : vector<8x8xf32>
    %cst_199 = arith.constant dense<0.000000e+00> : vector<8xf32>
    %453 = vector.multi_reduction <add>, %452, %cst_199 [1] : vector<8x8xf32> to vector<8xf32>
    %454 = vector.shape_cast %453 : vector<8xf32> to vector<8x1xf32>
    %455 = tpu.reciprocal %454 {approx = true} : vector<8x1xf32> -> vector<8x1xf32>
    %456 = vector.broadcast %455 : vector<8x1xf32> to vector<8x8xf32>
    %457 = arith.mulf %452, %456 : vector<8x8xf32>
    %cst_200 = arith.constant dense<0.000000e+00> : vector<8x4xf32>
    %458 = tpu.matmul %457, %446, %cst_200 {dimension_numbers = #tpu.dot_dimension_numbers<[1], [0], [0], [1], [0, 0, 1, 1], [], []>} : vector<8x8xf32>, vector<8x4xf32>, vector<8x4xf32> -> vector<8x4xf32>
    %c8_201 = arith.constant 8 : index
    %c4_202 = arith.constant 4 : index
    %459 = vector.load %arg9[%c8_201, %c4_202] : memref<16x32xf32, #tpu.memory_space<vmem>>, vector<8x4xf32>
    tpu.vector_store %arg9[%c8_201, %c4_202], %458 {strides = array<i32>} : memref<16x32xf32, #tpu.memory_space<vmem>>, vector<8x4xf32>,
    %460 = vector.extract_strided_slice %297 {offsets = [8, 8], sizes = [8, 4], strides = [1, 1]} : vector<16x32xf32> to vector<8x4xf32>
    %461 = vector.extract_strided_slice %298 {offsets = [8, 8], sizes = [8, 4], strides = [1, 1]} : vector<16x32xf32> to vector<8x4xf32>
    %462 = vector.extract_strided_slice %299 {offsets = [8, 8], sizes = [8, 4], strides = [1, 1]} : vector<16x32xf32> to vector<8x4xf32>
    %cst_203 = arith.constant dense<0.000000e+00> : vector<8x8xf32>
    %463 = tpu.matmul %460, %461, %cst_203 {dimension_numbers = #tpu.dot_dimension_numbers<[1], [1], [0], [0], [0, 0, 1, 0], [], []>} : vector<8x4xf32>, vector<8x4xf32>, vector<8x8xf32> -> vector<8x8xf32>
    %cst_204 = arith.constant dense<0xFF800000> : vector<8xf32>
    %464 = vector.multi_reduction <maximumf>, %463, %cst_204 [1] : vector<8x8xf32> to vector<8xf32>
    %465 = vector.shape_cast %464 : vector<8xf32> to vector<8x1xf32>
    %466 = vector.broadcast %465 : vector<8x1xf32> to vector<8x8xf32>
    %467 = arith.subf %463, %466 : vector<8x8xf32>
    %468 = math.exp %467 : vector<8x8xf32>
    %cst_205 = arith.constant dense<0.000000e+00> : vector<8xf32>
    %469 = vector.multi_reduction <add>, %468, %cst_205 [1] : vector<8x8xf32> to vector<8xf32>
    %470 = vector.shape_cast %469 : vector<8xf32> to vector<8x1xf32>
    %471 = tpu.reciprocal %470 {approx = true} : vector<8x1xf32> -> vector<8x1xf32>
    %472 = vector.broadcast %471 : vector<8x1xf32> to vector<8x8xf32>
    %473 = arith.mulf %468, %472 : vector<8x8xf32>
    %cst_206 = arith.constant dense<0.000000e+00> : vector<8x4xf32>
    %474 = tpu.matmul %473, %462, %cst_206 {dimension_numbers = #tpu.dot_dimension_numbers<[1], [0], [0], [1], [0, 0, 1, 1], [], []>} : vector<8x8xf32>, vector<8x4xf32>, vector<8x4xf32> -> vector<8x4xf32>
    %c8_207 = arith.constant 8 : index
    %c8_208 = arith.constant 8 : index
    %475 = vector.load %arg9[%c8_207, %c8_208] : memref<16x32xf32, #tpu.memory_space<vmem>>, vector<8x4xf32>
    tpu.vector_store %arg9[%c8_207, %c8_208], %474 {strides = array<i32>} : memref<16x32xf32, #tpu.memory_space<vmem>>, vector<8x4xf32>,
    %476 = vector.extract_strided_slice %297 {offsets = [8, 12], sizes = [8, 4], strides = [1, 1]} : vector<16x32xf32> to vector<8x4xf32>
    %477 = vector.extract_strided_slice %298 {offsets = [8, 12], sizes = [8, 4], strides = [1, 1]} : vector<16x32xf32> to vector<8x4xf32>
    %478 = vector.extract_strided_slice %299 {offsets = [8, 12], sizes = [8, 4], strides = [1, 1]} : vector<16x32xf32> to vector<8x4xf32>
    %cst_209 = arith.constant dense<0.000000e+00> : vector<8x8xf32>
    %479 = tpu.matmul %476, %477, %cst_209 {dimension_numbers = #tpu.dot_dimension_numbers<[1], [1], [0], [0], [0, 0, 1, 0], [], []>} : vector<8x4xf32>, vector<8x4xf32>, vector<8x8xf32> -> vector<8x8xf32>
    %cst_210 = arith.constant dense<0xFF800000> : vector<8xf32>
    %480 = vector.multi_reduction <maximumf>, %479, %cst_210 [1] : vector<8x8xf32> to vector<8xf32>
    %481 = vector.shape_cast %480 : vector<8xf32> to vector<8x1xf32>
    %482 = vector.broadcast %481 : vector<8x1xf32> to vector<8x8xf32>
    %483 = arith.subf %479, %482 : vector<8x8xf32>
    %484 = math.exp %483 : vector<8x8xf32>
    %cst_211 = arith.constant dense<0.000000e+00> : vector<8xf32>
    %485 = vector.multi_reduction <add>, %484, %cst_211 [1] : vector<8x8xf32> to vector<8xf32>
    %486 = vector.shape_cast %485 : vector<8xf32> to vector<8x1xf32>
    %487 = tpu.reciprocal %486 {approx = true} : vector<8x1xf32> -> vector<8x1xf32>
    %488 = vector.broadcast %487 : vector<8x1xf32> to vector<8x8xf32>
    %489 = arith.mulf %484, %488 : vector<8x8xf32>
    %cst_212 = arith.constant dense<0.000000e+00> : vector<8x4xf32>
    %490 = tpu.matmul %489, %478, %cst_212 {dimension_numbers = #tpu.dot_dimension_numbers<[1], [0], [0], [1], [0, 0, 1, 1], [], []>} : vector<8x8xf32>, vector<8x4xf32>, vector<8x4xf32> -> vector<8x4xf32>
    %c8_213 = arith.constant 8 : index
    %c12_214 = arith.constant 12 : index
    %491 = vector.load %arg9[%c8_213, %c12_214] : memref<16x32xf32, #tpu.memory_space<vmem>>, vector<8x4xf32>
    tpu.vector_store %arg9[%c8_213, %c12_214], %490 {strides = array<i32>} : memref<16x32xf32, #tpu.memory_space<vmem>>, vector<8x4xf32>,
    %492 = vector.extract_strided_slice %297 {offsets = [8, 16], sizes = [8, 4], strides = [1, 1]} : vector<16x32xf32> to vector<8x4xf32>
    %493 = vector.extract_strided_slice %298 {offsets = [8, 16], sizes = [8, 4], strides = [1, 1]} : vector<16x32xf32> to vector<8x4xf32>
    %494 = vector.extract_strided_slice %299 {offsets = [8, 16], sizes = [8, 4], strides = [1, 1]} : vector<16x32xf32> to vector<8x4xf32>
    %cst_215 = arith.constant dense<0.000000e+00> : vector<8x8xf32>
    %495 = tpu.matmul %492, %493, %cst_215 {dimension_numbers = #tpu.dot_dimension_numbers<[1], [1], [0], [0], [0, 0, 1, 0], [], []>} : vector<8x4xf32>, vector<8x4xf32>, vector<8x8xf32> -> vector<8x8xf32>
    %cst_216 = arith.constant dense<0xFF800000> : vector<8xf32>
    %496 = vector.multi_reduction <maximumf>, %495, %cst_216 [1] : vector<8x8xf32> to vector<8xf32>
    %497 = vector.shape_cast %496 : vector<8xf32> to vector<8x1xf32>
    %498 = vector.broadcast %497 : vector<8x1xf32> to vector<8x8xf32>
    %499 = arith.subf %495, %498 : vector<8x8xf32>
    %500 = math.exp %499 : vector<8x8xf32>
    %cst_217 = arith.constant dense<0.000000e+00> : vector<8xf32>
    %501 = vector.multi_reduction <add>, %500, %cst_217 [1] : vector<8x8xf32> to vector<8xf32>
    %502 = vector.shape_cast %501 : vector<8xf32> to vector<8x1xf32>
    %503 = tpu.reciprocal %502 {approx = true} : vector<8x1xf32> -> vector<8x1xf32>
    %504 = vector.broadcast %503 : vector<8x1xf32> to vector<8x8xf32>
    %505 = arith.mulf %500, %504 : vector<8x8xf32>
    %cst_218 = arith.constant dense<0.000000e+00> : vector<8x4xf32>
    %506 = tpu.matmul %505, %494, %cst_218 {dimension_numbers = #tpu.dot_dimension_numbers<[1], [0], [0], [1], [0, 0, 1, 1], [], []>} : vector<8x8xf32>, vector<8x4xf32>, vector<8x4xf32> -> vector<8x4xf32>
    %c8_219 = arith.constant 8 : index
    %c16_220 = arith.constant 16 : index
    %507 = vector.load %arg9[%c8_219, %c16_220] : memref<16x32xf32, #tpu.memory_space<vmem>>, vector<8x4xf32>
    tpu.vector_store %arg9[%c8_219, %c16_220], %506 {strides = array<i32>} : memref<16x32xf32, #tpu.memory_space<vmem>>, vector<8x4xf32>,
    %508 = vector.extract_strided_slice %297 {offsets = [8, 20], sizes = [8, 4], strides = [1, 1]} : vector<16x32xf32> to vector<8x4xf32>
    %509 = vector.extract_strided_slice %298 {offsets = [8, 20], sizes = [8, 4], strides = [1, 1]} : vector<16x32xf32> to vector<8x4xf32>
    %510 = vector.extract_strided_slice %299 {offsets = [8, 20], sizes = [8, 4], strides = [1, 1]} : vector<16x32xf32> to vector<8x4xf32>
    %cst_221 = arith.constant dense<0.000000e+00> : vector<8x8xf32>
    %511 = tpu.matmul %508, %509, %cst_221 {dimension_numbers = #tpu.dot_dimension_numbers<[1], [1], [0], [0], [0, 0, 1, 0], [], []>} : vector<8x4xf32>, vector<8x4xf32>, vector<8x8xf32> -> vector<8x8xf32>
    %cst_222 = arith.constant dense<0xFF800000> : vector<8xf32>
    %512 = vector.multi_reduction <maximumf>, %511, %cst_222 [1] : vector<8x8xf32> to vector<8xf32>
    %513 = vector.shape_cast %512 : vector<8xf32> to vector<8x1xf32>
    %514 = vector.broadcast %513 : vector<8x1xf32> to vector<8x8xf32>
    %515 = arith.subf %511, %514 : vector<8x8xf32>
    %516 = math.exp %515 : vector<8x8xf32>
    %cst_223 = arith.constant dense<0.000000e+00> : vector<8xf32>
    %517 = vector.multi_reduction <add>, %516, %cst_223 [1] : vector<8x8xf32> to vector<8xf32>
    %518 = vector.shape_cast %517 : vector<8xf32> to vector<8x1xf32>
    %519 = tpu.reciprocal %518 {approx = true} : vector<8x1xf32> -> vector<8x1xf32>
    %520 = vector.broadcast %519 : vector<8x1xf32> to vector<8x8xf32>
    %521 = arith.mulf %516, %520 : vector<8x8xf32>
    %cst_224 = arith.constant dense<0.000000e+00> : vector<8x4xf32>
    %522 = tpu.matmul %521, %510, %cst_224 {dimension_numbers = #tpu.dot_dimension_numbers<[1], [0], [0], [1], [0, 0, 1, 1], [], []>} : vector<8x8xf32>, vector<8x4xf32>, vector<8x4xf32> -> vector<8x4xf32>
    %c8_225 = arith.constant 8 : index
    %c20_226 = arith.constant 20 : index
    %523 = vector.load %arg9[%c8_225, %c20_226] : memref<16x32xf32, #tpu.memory_space<vmem>>, vector<8x4xf32>
    tpu.vector_store %arg9[%c8_225, %c20_226], %522 {strides = array<i32>} : memref<16x32xf32, #tpu.memory_space<vmem>>, vector<8x4xf32>,
    %524 = vector.extract_strided_slice %297 {offsets = [8, 24], sizes = [8, 4], strides = [1, 1]} : vector<16x32xf32> to vector<8x4xf32>
    %525 = vector.extract_strided_slice %298 {offsets = [8, 24], sizes = [8, 4], strides = [1, 1]} : vector<16x32xf32> to vector<8x4xf32>
    %526 = vector.extract_strided_slice %299 {offsets = [8, 24], sizes = [8, 4], strides = [1, 1]} : vector<16x32xf32> to vector<8x4xf32>
    %cst_227 = arith.constant dense<0.000000e+00> : vector<8x8xf32>
    %527 = tpu.matmul %524, %525, %cst_227 {dimension_numbers = #tpu.dot_dimension_numbers<[1], [1], [0], [0], [0, 0, 1, 0], [], []>} : vector<8x4xf32>, vector<8x4xf32>, vector<8x8xf32> -> vector<8x8xf32>
    %cst_228 = arith.constant dense<0xFF800000> : vector<8xf32>
    %528 = vector.multi_reduction <maximumf>, %527, %cst_228 [1] : vector<8x8xf32> to vector<8xf32>
    %529 = vector.shape_cast %528 : vector<8xf32> to vector<8x1xf32>
    %530 = vector.broadcast %529 : vector<8x1xf32> to vector<8x8xf32>
    %531 = arith.subf %527, %530 : vector<8x8xf32>
    %532 = math.exp %531 : vector<8x8xf32>
    %cst_229 = arith.constant dense<0.000000e+00> : vector<8xf32>
    %533 = vector.multi_reduction <add>, %532, %cst_229 [1] : vector<8x8xf32> to vector<8xf32>
    %534 = vector.shape_cast %533 : vector<8xf32> to vector<8x1xf32>
    %535 = tpu.reciprocal %534 {approx = true} : vector<8x1xf32> -> vector<8x1xf32>
    %536 = vector.broadcast %535 : vector<8x1xf32> to vector<8x8xf32>
    %537 = arith.mulf %532, %536 : vector<8x8xf32>
    %cst_230 = arith.constant dense<0.000000e+00> : vector<8x4xf32>
    %538 = tpu.matmul %537, %526, %cst_230 {dimension_numbers = #tpu.dot_dimension_numbers<[1], [0], [0], [1], [0, 0, 1, 1], [], []>} : vector<8x8xf32>, vector<8x4xf32>, vector<8x4xf32> -> vector<8x4xf32>
    %c8_231 = arith.constant 8 : index
    %c24_232 = arith.constant 24 : index
    %539 = vector.load %arg9[%c8_231, %c24_232] : memref<16x32xf32, #tpu.memory_space<vmem>>, vector<8x4xf32>
    tpu.vector_store %arg9[%c8_231, %c24_232], %538 {strides = array<i32>} : memref<16x32xf32, #tpu.memory_space<vmem>>, vector<8x4xf32>,
    %540 = vector.extract_strided_slice %297 {offsets = [8, 28], sizes = [8, 4], strides = [1, 1]} : vector<16x32xf32> to vector<8x4xf32>
    %541 = vector.extract_strided_slice %298 {offsets = [8, 28], sizes = [8, 4], strides = [1, 1]} : vector<16x32xf32> to vector<8x4xf32>
    %542 = vector.extract_strided_slice %299 {offsets = [8, 28], sizes = [8, 4], strides = [1, 1]} : vector<16x32xf32> to vector<8x4xf32>
    %cst_233 = arith.constant dense<0.000000e+00> : vector<8x8xf32>
    %543 = tpu.matmul %540, %541, %cst_233 {dimension_numbers = #tpu.dot_dimension_numbers<[1], [1], [0], [0], [0, 0, 1, 0], [], []>} : vector<8x4xf32>, vector<8x4xf32>, vector<8x8xf32> -> vector<8x8xf32>
    %cst_234 = arith.constant dense<0xFF800000> : vector<8xf32>
    %544 = vector.multi_reduction <maximumf>, %543, %cst_234 [1] : vector<8x8xf32> to vector<8xf32>
    %545 = vector.shape_cast %544 : vector<8xf32> to vector<8x1xf32>
    %546 = vector.broadcast %545 : vector<8x1xf32> to vector<8x8xf32>
    %547 = arith.subf %543, %546 : vector<8x8xf32>
    %548 = math.exp %547 : vector<8x8xf32>
    %cst_235 = arith.constant dense<0.000000e+00> : vector<8xf32>
    %549 = vector.multi_reduction <add>, %548, %cst_235 [1] : vector<8x8xf32> to vector<8xf32>
    %550 = vector.shape_cast %549 : vector<8xf32> to vector<8x1xf32>
    %551 = tpu.reciprocal %550 {approx = true} : vector<8x1xf32> -> vector<8x1xf32>
    %552 = vector.broadcast %551 : vector<8x1xf32> to vector<8x8xf32>
    %553 = arith.mulf %548, %552 : vector<8x8xf32>
    %cst_236 = arith.constant dense<0.000000e+00> : vector<8x4xf32>
    %554 = tpu.matmul %553, %542, %cst_236 {dimension_numbers = #tpu.dot_dimension_numbers<[1], [0], [0], [1], [0, 0, 1, 1], [], []>} : vector<8x8xf32>, vector<8x4xf32>, vector<8x4xf32> -> vector<8x4xf32>
    %c8_237 = arith.constant 8 : index
    %c28_238 = arith.constant 28 : index
    %555 = vector.load %arg9[%c8_237, %c28_238] : memref<16x32xf32, #tpu.memory_space<vmem>>, vector<8x4xf32>
    tpu.vector_store %arg9[%c8_237, %c28_238], %554 {strides = array<i32>} : memref<16x32xf32, #tpu.memory_space<vmem>>, vector<8x4xf32>,
    %c0_239 = arith.constant 0 : index
    %c0_240 = arith.constant 0 : index
    %556 = vector.load %arg9[%c0_239, %c0_240] : memref<16x32xf32, #tpu.memory_space<vmem>>, vector<16x32xf32>
    %c0_241 = arith.constant 0 : index
    %c0_242 = arith.constant 0 : index
    %557 = vector.load %arg5[%c0_241, %c0_242] : memref<32x32xf32, #tpu.memory_space<vmem>>, vector<32x32xf32>
    %cst_243 = arith.constant dense<0.000000e+00> : vector<16x32xf32>
    %558 = tpu.matmul %556, %557, %cst_243 {dimension_numbers = #tpu.dot_dimension_numbers<[1], [0], [0], [1], [0, 0, 1, 1], [], []>} : vector<16x32xf32>, vector<32x32xf32>, vector<16x32xf32> -> vector<16x32xf32>
    %c0_244 = arith.constant 0 : index
    %c0_245 = arith.constant 0 : index
    %559 = vector.load %arg6[%c0_244, %c0_245] : memref<1x32xf32, #tpu.memory_space<vmem>>, vector<1x32xf32>
    %560 = vector.broadcast %559 : vector<1x32xf32> to vector<16x32xf32>
    %561 = arith.addf %558, %560 : vector<16x32xf32>
    %c0_246 = arith.constant 0 : index
    %c0_247 = arith.constant 0 : index
    %562 = vector.load %arg7[%c0_246, %c0_247] : memref<16x32xf32, #tpu.memory_space<vmem>>, vector<16x32xf32>
    tpu.vector_store %arg7[%c0_246, %c0_247], %561 {strides = array<i32>} : memref<16x32xf32, #tpu.memory_space<vmem>>, vector<16x32xf32>,
    return
  }
  func.func @transform_1(%arg0: i32, %arg1: memref<16xi32, #tpu.memory_space<smem>>) -> (i32, i32) {
    %c0_i32 = arith.constant 0 : i32
    %c0_i32_0 = arith.constant 0 : i32
    %c0_i32_1 = arith.constant 0 : i32
    return %c0_i32, %c0_i32_0 : i32, i32
  }
  func.func @transform_2(%arg0: i32, %arg1: memref<16xi32, #tpu.memory_space<smem>>) -> (i32, i32) {
    %c0_i32 = arith.constant 0 : i32
    %c0_i32_0 = arith.constant 0 : i32
    %c0_i32_1 = arith.constant 0 : i32
    return %c0_i32, %c0_i32_0 : i32, i32
  }
  func.func @transform_3(%arg0: i32, %arg1: memref<16xi32, #tpu.memory_space<smem>>) -> (i32, i32) {
    %c0_i32 = arith.constant 0 : i32
    %c0_i32_0 = arith.constant 0 : i32
    %c0_i32_1 = arith.constant 0 : i32
    return %c0_i32, %c0_i32_0 : i32, i32
  }
  func.func @transform_4(%arg0: i32, %arg1: memref<16xi32, #tpu.memory_space<smem>>) -> (i32, i32) {
    %c0_i32 = arith.constant 0 : i32
    %c0_i32_0 = arith.constant 0 : i32
    %c0_i32_1 = arith.constant 0 : i32
    return %c0_i32, %c0_i32_0 : i32, i32
  }
  func.func @transform_5(%arg0: i32, %arg1: memref<16xi32, #tpu.memory_space<smem>>) -> (i32, i32) {
    %c0_i32 = arith.constant 0 : i32
    %c0_i32_0 = arith.constant 0 : i32
    return %arg0, %c0_i32 : i32, i32
  }
}

</mosaic_0001>

<bundles_post_ra>
// kernel: tpu_custom_call.1
= control target key start
LH: loop header
LB: loop body
LE: loop exit
PB: predicated region body
PF: predicated region fallthrough
CT: control target
= control target key end

     0   :  { %s5205_s0 = inlined_call_operand.vmem [shape: s32[16], index: 0, kind: input, shape index: {}]   ;;  %s5206_s1 = inlined_call_operand.vmem [shape: f32[64,32], index: 1, kind: input, shape index: {}]   ;;  %s5207_s2 = inlined_call_operand.vmem [shape: f32[32,96], index: 2, kind: input, shape index: {}]   ;;  %s5208_s3 = inlined_call_operand.vmem [shape: f32[1,96], index: 3, kind: input, shape index: {}]   ;;  %s5209_s4 = inlined_call_operand.vmem [shape: f32[32,32], index: 4, kind: input, shape index: {}]   ;;  %s5210_s5 = inlined_call_operand.vmem [shape: f32[1,32], index: 5, kind: input, shape index: {}]   ;;  %s5211_s6 = inlined_call_operand.hbm [shape: f32[16,32], index: 6, kind: output, shape index: {}]  }
   0x1   :  { %s11_s23 = sshll.u32 %s5205_s0, 4  ;;  %s12_s23 = int_to_ptr.vmem [resolvable:$true] %s11_s23 }
   0x2   :  { %s4546_s24 = scalar_lea.vmem %s12_s23, 16  ;;  %p4551_p1 = scmp.lt.s32.totalorder %s12_s23, %s12_s23 }
   0x3   :  { %p4547_p0 = scmp.ne.s32.totalorder %s12_s23, %s4546_s24  ;;  %p4552_p2 = scmp.lt.s32.totalorder %s4546_s24, %s4546_s24 }
   0x5   :  { %p4553_p3 = por %p4552_p2, %p4551_p1 }
   0x7   :  { %p4554_p4 = pnand %p4553_p3, %p4547_p0 }
   0x9   :  { %4557 = shalt.err (!%p4554_p4)  }
   0xa   :  { %s4616_s25 = smov [#allocation6]  }
   0xb   :  { %14 = dma.vmem_to_smem %s12_s23, 16, %s4616_s25, [#allocation5] }
   0xc   :  { %4580 = dma.done.wait [#allocation5], 16 }
   0xd   :  { %4581 = vsyncadd [#allocation5], 4294967280 }
   0xe   :  { %16 = sfence }
   0xf   :  { %17 = vsyncpa [#allocation8], 0  ;;  %s27_s26 = sld [smem:[#allocation6]] }
  0x15   :  { %s28_s29 = scalar_lea.vmem %s5206_s1, %s27_s26 }
  0x16   :  { %v46_v0 = vld [vmem:[%s28_s29] sm:$0x1] }
  0x17   :  { %47 = vst [vmem:[#allocation2] sm:$0x1] %v46_v0 }
  0x18   :  { %72 = vsyncadd [#allocation4], 16  ;;  %s4088_s0 = sld [smem:[#allocation6 + $0x1]] }
  0x1e   :  { %s75_s8 = scalar_lea.vmem %s5206_s1, %s4088_s0 }
  0x1f   :  { %v95_v1 = vld [vmem:[%s75_s8] sm:$0x1] }
  0x20   :  { %96 = vst [vmem:[#allocation2 + $0x1] sm:$0x1] %v95_v1 }
  0x21   :  { %121 = vsyncadd [#allocation4 + $0x1], 16  ;;  %s4089_s9 = sld [smem:[#allocation6 + $0x2]] }
  0x27   :  { %s124_s12 = scalar_lea.vmem %s5206_s1, %s4089_s9 }
  0x28   :  { %v144_v2 = vld [vmem:[%s124_s12] sm:$0x1] }
  0x29   :  { %145 = vst [vmem:[#allocation2 + $0x2] sm:$0x1] %v144_v2 }
  0x2a   :  { %170 = vsyncadd [#allocation4 + $0x2], 16  ;;  %s4090_s13 = sld [smem:[#allocation6 + $0x3]] }
  0x30   :  { %s173_s16 = scalar_lea.vmem %s5206_s1, %s4090_s13 }
  0x31   :  { %v193_v3 = vld [vmem:[%s173_s16] sm:$0x1] }
  0x32   :  { %194 = vst [vmem:[#allocation2 + $0x3] sm:$0x1] %v193_v3 }
  0x33   :  { %219 = vsyncadd [#allocation4 + $0x3], 16  ;;  %s4091_s17 = sld [smem:[#allocation6 + $0x4]] }
  0x39   :  { %s222_s20 = scalar_lea.vmem %s5206_s1, %s4091_s17 }
  0x3a   :  { %v242_v4 = vld [vmem:[%s222_s20] sm:$0x1] }
  0x3b   :  { %243 = vst [vmem:[#allocation2 + $0x4] sm:$0x1] %v242_v4 }
  0x3c   :  { %268 = vsyncadd [#allocation4 + $0x4], 16  ;;  %s4092_s21 = sld [smem:[#allocation6 + $0x5]] }
  0x42   :  { %s271_s24 = scalar_lea.vmem %s5206_s1, %s4092_s21 }
  0x43   :  { %v291_v5 = vld [vmem:[%s271_s24] sm:$0x1] }
  0x44   :  { %292 = vst [vmem:[#allocation2 + $0x5] sm:$0x1] %v291_v5 }
  0x45   :  { %317 = vsyncadd [#allocation4 + $0x5], 16  ;;  %s4093_s25 = sld [smem:[#allocation6 + $0x6]] }
  0x4b   :  { %s320_s28 = scalar_lea.vmem %s5206_s1, %s4093_s25 }
  0x4c   :  { %v340_v6 = vld [vmem:[%s320_s28] sm:$0x1] }
  0x4d   :  { %341 = vst [vmem:[#allocation2 + $0x6] sm:$0x1] %v340_v6 }
  0x4e   :  { %366 = vsyncadd [#allocation4 + $0x6], 16  ;;  %s4094_s29 = sld [smem:[#allocation6 + $0x7]] }
  0x54   :  { %s369_s7 = scalar_lea.vmem %s5206_s1, %s4094_s29 }
  0x55   :  { %v389_v7 = vld [vmem:[%s369_s7] sm:$0x1] }
  0x56   :  { %390 = vst [vmem:[#allocation2 + $0x7] sm:$0x1] %v389_v7 }
  0x57   :  { %415 = vsyncadd [#allocation4 + $0x7], 16  ;;  %s4095_s8 = sld [smem:[#allocation6 + $0x8]] }
  0x5d   :  { %s418_s11 = scalar_lea.vmem %s5206_s1, %s4095_s8 }
  0x5e   :  { %v438_v8 = vld [vmem:[%s418_s11] sm:$0x1] }
  0x5f   :  { %439 = vst [vmem:[#allocation2 + $0x8] sm:$0x1] %v438_v8 }
  0x60   :  { %464 = vsyncadd [#allocation4 + $0x8], 16  ;;  %s4096_s12 = sld [smem:[#allocation6 + $0x9]] }
  0x66   :  { %s467_s15 = scalar_lea.vmem %s5206_s1, %s4096_s12 }
  0x67   :  { %v487_v9 = vld [vmem:[%s467_s15] sm:$0x1] }
  0x68   :  { %488 = vst [vmem:[#allocation2 + $0x9] sm:$0x1] %v487_v9 }
  0x69   :  { %513 = vsyncadd [#allocation4 + $0x9], 16  ;;  %s4097_s16 = sld [smem:[#allocation6 + $0xa]] }
  0x6f   :  { %s516_s19 = scalar_lea.vmem %s5206_s1, %s4097_s16 }
  0x70   :  { %v536_v10 = vld [vmem:[%s516_s19] sm:$0x1] }
  0x71   :  { %537 = vst [vmem:[#allocation2 + $0xa] sm:$0x1] %v536_v10 }
  0x72   :  { %562 = vsyncadd [#allocation4 + $0xa], 16  ;;  %s4098_s20 = sld [smem:[#allocation6 + $0xb]] }
  0x78   :  { %s565_s23 = scalar_lea.vmem %s5206_s1, %s4098_s20 }
  0x79   :  { %v585_v11 = vld [vmem:[%s565_s23] sm:$0x1] }
  0x7a   :  { %586 = vst [vmem:[#allocation2 + $0xb] sm:$0x1] %v585_v11 }
  0x7b   :  { %611 = vsyncadd [#allocation4 + $0xb], 16  ;;  %s4099_s24 = sld [smem:[#allocation6 + $0xc]] }
  0x81   :  { %s614_s27 = scalar_lea.vmem %s5206_s1, %s4099_s24 }
  0x82   :  { %v634_v12 = vld [vmem:[%s614_s27] sm:$0x1] }
  0x83   :  { %635 = vst [vmem:[#allocation2 + $0xc] sm:$0x1] %v634_v12 }
  0x84   :  { %660 = vsyncadd [#allocation4 + $0xc], 16  ;;  %s4100_s28 = sld [smem:[#allocation6 + $0xd]] }
  0x8a   :  { %s663_s30 = scalar_lea.vmem %s5206_s1, %s4100_s28 }
  0x8b   :  { %v683_v13 = vld [vmem:[%s663_s30] sm:$0x1] }
  0x8c   :  { %684 = vst [vmem:[#allocation2 + $0xd] sm:$0x1] %v683_v13 }
  0x8d   :  { %709 = vsyncadd [#allocation4 + $0xd], 16  ;;  %s4101_s7 = sld [smem:[#allocation6 + $0xe]] }
  0x93   :  { %s712_s10 = scalar_lea.vmem %s5206_s1, %s4101_s7 }
  0x94   :  { %v732_v14 = vld [vmem:[%s712_s10] sm:$0x1] }
  0x95   :  { %733 = vst [vmem:[#allocation2 + $0xe] sm:$0x1] %v732_v14 }
  0x96   :  { %758 = vsyncadd [#allocation4 + $0xe], 16  ;;  %s4102_s11 = sld [smem:[#allocation6 + $0xf]] }
  0x9c   :  { %s761_s14 = scalar_lea.vmem %s5206_s1, %s4102_s11 }
  0x9d   :  { %v781_v15 = vld [vmem:[%s761_s14] sm:$0x1] }
  0x9e   :  { %782 = vst [vmem:[#allocation2 + $0xf] sm:$0x1] %v781_v15 }
  0x9f   :  { %807 = vsyncadd [#allocation4 + $0xf], 16 }
  0xa0   :  { %4582 = dma.done.wait [#allocation4], 16 }
  0xa1   :  { %4583 = vsyncadd [#allocation4], 4294967280 }
  0xa2   :  { %4584 = dma.done.wait [#allocation4 + $0x1], 16 }
  0xa3   :  { %4585 = vsyncadd [#allocation4 + $0x1], 4294967280 }
  0xa4   :  { %4586 = dma.done.wait [#allocation4 + $0x2], 16 }
  0xa5   :  { %4587 = vsyncadd [#allocation4 + $0x2], 4294967280 }
  0xa6   :  { %4588 = dma.done.wait [#allocation4 + $0x3], 16 }
  0xa7   :  { %4589 = vsyncadd [#allocation4 + $0x3], 4294967280 }
  0xa8   :  { %4590 = dma.done.wait [#allocation4 + $0x4], 16 }
  0xa9   :  { %4591 = vsyncadd [#allocation4 + $0x4], 4294967280 }
  0xaa   :  { %4592 = dma.done.wait [#allocation4 + $0x5], 16 }
  0xab   :  { %4593 = vsyncadd [#allocation4 + $0x5], 4294967280 }
  0xac   :  { %4594 = dma.done.wait [#allocation4 + $0x6], 16 }
  0xad   :  { %4595 = vsyncadd [#allocation4 + $0x6], 4294967280 }
  0xae   :  { %4596 = dma.done.wait [#allocation4 + $0x7], 16 }
  0xaf   :  { %4597 = vsyncadd [#allocation4 + $0x7], 4294967280 }
  0xb0   :  { %4598 = dma.done.wait [#allocation4 + $0x8], 16 }
  0xb1   :  { %4599 = vsyncadd [#allocation4 + $0x8], 4294967280 }
  0xb2   :  { %4600 = dma.done.wait [#allocation4 + $0x9], 16 }
  0xb3   :  { %4601 = vsyncadd [#allocation4 + $0x9], 4294967280 }
  0xb4   :  { %4602 = dma.done.wait [#allocation4 + $0xa], 16 }
  0xb5   :  { %4603 = vsyncadd [#allocation4 + $0xa], 4294967280 }
  0xb6   :  { %4604 = dma.done.wait [#allocation4 + $0xb], 16 }
  0xb7   :  { %4605 = vsyncadd [#allocation4 + $0xb], 4294967280 }
  0xb8   :  { %4606 = dma.done.wait [#allocation4 + $0xc], 16 }
  0xb9   :  { %4607 = vsyncadd [#allocation4 + $0xc], 4294967280 }
  0xba   :  { %4608 = dma.done.wait [#allocation4 + $0xd], 16 }
  0xbb   :  { %4609 = vsyncadd [#allocation4 + $0xd], 4294967280 }
  0xbc   :  { %4610 = dma.done.wait [#allocation4 + $0xe], 16 }
  0xbd   :  { %4611 = vsyncadd [#allocation4 + $0xe], 4294967280 }
  0xbe   :  { %4612 = dma.done.wait [#allocation4 + $0xf], 16 }
  0xbf   :  { %4613 = vsyncadd [#allocation4 + $0xf], 4294967280  ;;  %vm869_vm0 = vcmask 261120   ;;  %v858_v16 = vld [vmem:[%s5207_s2] sm:$0xff]  ;;  %v859_v17 = vld [vmem:[%s5207_s2 + $0x8] sm:$0xff]  ;;  %v4617_v24 = vmov 0.0  }
  0xc0   :  { %v860_v18 = vld [vmem:[%s5207_s2 + $0x10] sm:$0xff]  ;;  %v4431_v19 = vpack.c.bf16 %v859_v17, %v858_v16  ;;  %v861_v20 = vld [vmem:[%s5207_s2 + $0x18] sm:$0xff]  ;;  %v856_v21 = vld [vmem:[#allocation2] sm:$0xff]  ;;  %4260 = vmatprep.subr.mxu1 %v4617_v24  ;;  %vm4618_vm1 = vmmov 0   ;;  %s4619_s23 = smov 64   ;;  %s4620_s24 = smov 96  }
  0xc1   :  { %v4435_v22 = vpack.c.bf16 %v861_v20, %v860_v18  ;;  %4257 = vmatprep.mubr.msk.f32.mxu0 %vm869_vm0, %v856_v21  ;;  %v857_v23 = vld [vmem:[#allocation2 + $0x8] sm:$0xff]  ;;  %4262 = vmatprep.mubr.msk.f32.mxu1 %vm4618_vm1, %v4617_v24  ;;  %v4103_v25 = vld [vmem:[%s5208_s3] ss:$0 sm:$0xff]  ;;  %s4621_s25 = smov 92   ;;  %s4622_s3 = smov 124   ;;  %vm956_vm2 = vcmask 31744  }
  0xc2   :  { %4432 = vmatprep.subr.bf16.mxu0 %v4431_v19  ;;  %s4623_s26 = smov 88   ;;  %s4624_s27 = smov 120   ;;  %vm1032_vm3 = vcmask 64512   ;;  %vm1290_vm4 = vcmask 64544   ;;  %vm1461_vm5 = vcmask 97344   ;;  %vm1632_vm6 = vcmask 130144  }
  0xc3   :  { %4434 = vmatpush3.bf16.msra.mxu0 %v4431_v19  ;;  %s4625_s28 = smov 116   ;;  %s4626_s29 = smov 84   ;;  %vm1803_vm7 = vcmask 162944   ;;  %vm1974_vm8 = vcmask 195744   ;;  %vm2145_vm9 = vcmask 228544   ;;  %vm2316_vm10 = vcmask 261344  }
  0xc4   :  { %4436 = vmatprep.subr.bf16.mxu0 %v4435_v22  ;;  %s4627_s0 = smov 72   ;;  %s4628_s30 = smov 68  }
  0xc5   :  { %s4629_s7 = smov 112   ;;  %s4630_s8 = smov 108  }
  0xc6   :  { %s4631_s9 = smov 104   ;;  %s4632_s10 = smov 100  }
  0xc7   :  { %4438 = vmatpush3.bf16.msra.mxu0 %v4435_v22  ;;  %s4633_s11 = smov 80   ;;  %s4634_s12 = smov 76  }
  0xc8   :  { %4280 = vmatprep.subr.mxu0 %v4617_v24  ;;  %s4635_s13 = smov 56   ;;  %s4636_s14 = smov 52  }
  0xc9   :  { %s4637_s1 = smov 60   ;;  %s4638_s15 = smov 48  }
  0xca   :  { %4258 = vmatmul.mubr.msk.f32.vlgmr.msra.gmra.mrb[0].mxu0 %vm869_vm0, %v857_v23  ;;  %s4639_s16 = smov 44   ;;  %s4640_s17 = smov 36  }
  0xcb   :  { %4282 = vmatprep.mubr.msk.f32.mxu0 %vm4618_vm1, %v4617_v24  ;;  %s4641_s18 = smov 40   ;;  %s4642_s19 = smov 4  }
  0xcc   :  { %s4643_s20 = smov 8   ;;  %s4644_s21 = smov 12  }
  0xcd   :  { %s4645_s2 = smov 16   ;;  %s4646_s22 = smov 20  }
 0x19d   :  { %v4259_v26 = vpop.f32.mrb[0].mxu0 }
 0x19e   :  { %v4760_v27 = vadd.f32 %v4259_v26, %v4103_v25  ;;  %v942_v28 = vpop.f32.mrb[1].mxu0 }
 0x19f   :  { %v4762_v29 = vadd.f32 %v4103_v25, %v942_v28 }
 0x1a0   :  { %v4809_v42 = vmul.f32 0.5, %v4760_v27 }
 0x1a1   :  { %1044 = vrot.lane.b32.xlu1 %v4762_v29, %s4619_s23  ;;  %954 = vrot.lane.b32.xlu0 %v4762_v29, %s4620_s24  ;;  %v4771_v30 = vmul.f32 0.5, %v4762_v29 }
 0x1a5   :  { %1123 = vrot.lane.b32.xlu1 %v4762_v29, %s4621_s25 }
 0x1a9   :  { %1121 = vrot.lane.b32.xlu1 %v4771_v30, %s4622_s3 }
 0x1ad   :  { %1294 = vrot.lane.b32.xlu1 %v4762_v29, %s4623_s26 }
 0x1b1   :  { %1292 = vrot.lane.b32.xlu1 %v4771_v30, %s4624_s27 }
 0x1b5   :  { %1463 = vrot.lane.b32.xlu1 %v4771_v30, %s4625_s28 }
 0x213   :  { %v1045_v31 = vpop.permute.xlu1 %1044  ;;  %v955_v32 = vpop.permute.xlu0 %954 }
 0x214   :  { %4261 = vmatpush3.xpose.msk.msra.mxu1 %vm956_vm2, %v955_v32 }
 0x215   :  { %4265 = vmatprep.subr.mxu1 %v4617_v24 }
 0x217   :  { %v4783_v33 = vpop.permute.xlu1 %1123  ;;  %4263 = vmatmul.mubr.msk.f32.vlgmr.msra.gmra.mrb[0].mxu1 %vm956_vm2, %v4771_v30 }
 0x218   :  { %4266 = vmatpush3.msra.mxu1 %v1045_v31  ;;  %4267 = vmatprep.mubr.msk.f32.mxu1 %vm4618_vm1, %v4617_v24 }
 0x219   :  { %4270 = vmatprep.subr.mxu1 %v4617_v24 }
 0x21b   :  { %v4790_v34 = vpop.permute.xlu1 %1121 }
 0x21f   :  { %v1295_v35 = vpop.permute.xlu1 %1294 }
 0x220   :  { %4281 = vmatpush3.xpose.msk.msra.mxu0 %vm956_vm2, %v1295_v35 }
 0x221   :  { %4290 = vmatprep.subr.mxu0 %v4617_v24 }
 0x223   :  { %v1293_v36 = vpop.permute.xlu1 %1292 }
 0x224   :  { %4283 = vmatmul.mubr.msk.f32.vlgmr.msra.gmra.mrb[2].mxu0 %vm956_vm2, %v1293_v36 }
 0x225   :  { %4292 = vmatprep.mubr.msk.f32.mxu0 %vm4618_vm1, %v4617_v24 }
 0x227   :  { %v1464_v48 = vpop.permute.xlu1 %1463 }
 0x2ea   :  { %v1028_v37 = vpop.f32.mrb[0].mxu1 }
 0x2eb   :  { %v4264_v38 = vpop.f32.mrb[1].mxu1  ;;  %v1033_v39 = vsel %vm1032_vm3, %v1028_v37, -inf }
 0x2ec   :  { %1034 = vmax.xlane.f32.xlu0 %v1033_v39 }
 0x2f7   :  { %v4798_v40 = vpop.f32.mrb[2].mxu0 }
 0x2f8   :  { %v4284_v41 = vpop.f32.mrb[3].mxu0  ;;  %v1370_v43 = vsel %vm1032_vm3, %v4798_v40, -inf }
 0x302   :  { %1465 = vrot.lane.b32.xlu0 %v4762_v29, %s4626_s29 }
 0x306   :  { %1978 = vrot.lane.b32.xlu0 %v4762_v29, %s4627_s0 }
 0x30a   :  { %2149 = vrot.lane.b32.xlu0 %v4762_v29, %s4628_s30 }
 0x30e   :  { %2319 = vrot.lane.b32.xlu0 %v4760_v27, %s4620_s24  ;;  %s4648_s24 = smov 28  }
 0x312   :  { %2484 = vrot.lane.b32.xlu0 %v4809_v42, %s4622_s3 }
 0x316   :  { %2654 = vrot.lane.b32.xlu0 %v4809_v42, %s4624_s27 }
 0x31a   :  { %2824 = vrot.lane.b32.xlu0 %v4809_v42, %s4625_s28 }
 0x31e   :  { %2994 = vrot.lane.b32.xlu0 %v4809_v42, %s4629_s7 }
 0x322   :  { %3164 = vrot.lane.b32.xlu0 %v4809_v42, %s4630_s8 }
 0x326   :  { %3334 = vrot.lane.b32.xlu0 %v4809_v42, %s4631_s9 }
 0x32a   :  { %3504 = vrot.lane.b32.xlu0 %v4809_v42, %s4632_s10 }
 0x349   :  { %1371 = vmax.xlane.f32.xlu0 %v1370_v43 }
 0x379   :  { %v1035_v44 = vpop.xlane.xlu0 %1034 }
 0x37a   :  { %v1036_v45 = vsub.f32 %v1028_v37, %v1035_v44 }
 0x37c   :  { %v1037_v46 = vmul.f32 1.442695, %v1036_v45 }
 0x37d   :  { %v1466_v47 = vpop.permute.xlu0 %1465 }
 0x37e   :  { %4482 = vpow2.f32 %v1037_v46  ;;  %4291 = vmatpush3.xpose.msk.msra.mxu0 %vm956_vm2, %v1466_v47 }
 0x37f   :  { %4300 = vmatprep.subr.mxu0 %v4617_v24 }
 0x381   :  { %4293 = vmatmul.mubr.msk.f32.vlgmr.msra.gmra.mrb[4].mxu0 %vm956_vm2, %v1464_v48  ;;  %v1979_v52 = vpop.permute.xlu0 %1978 }
 0x382   :  { %4302 = vmatprep.mubr.msk.f32.mxu0 %vm4618_vm1, %v4617_v24 }
 0x385   :  { %v2150_v54 = vpop.permute.xlu0 %2149 }
 0x388   :  { %v4483_v49 = vpop.eup %4482 }
 0x389   :  { %v1039_v50 = vsel %vm1032_vm3, %v4483_v49, 0.0  ;;  %v2320_v59 = vpop.permute.xlu0 %2319 }
 0x38a   :  { %1040 = vadd.xlane.f32.xlu1 %v1039_v50 }
 0x38d   :  { %v2485_v61 = vpop.permute.xlu0 %2484 }
 0x391   :  { %v2655_v0 = vpop.permute.xlu0 %2654 }
 0x395   :  { %v2825_v2 = vpop.permute.xlu0 %2824 }
 0x399   :  { %v2995_v5 = vpop.permute.xlu0 %2994 }
 0x39b   :  { %1636 = vrot.lane.b32.xlu1 %v4762_v29, %s4633_s11 }
 0x39d   :  { %v3165_v7 = vpop.permute.xlu0 %3164 }
 0x39f   :  { %1634 = vrot.lane.b32.xlu1 %v4771_v30, %s4629_s7 }
 0x3a1   :  { %v3335_v10 = vpop.permute.xlu0 %3334 }
 0x3a3   :  { %1807 = vrot.lane.b32.xlu1 %v4762_v29, %s4634_s12 }
 0x3a5   :  { %v3505_v12 = vpop.permute.xlu0 %3504 }
 0x3a7   :  { %1805 = vrot.lane.b32.xlu1 %v4771_v30, %s4630_s8  ;;  %s4649_s8 = smov [#allocation7]  }
 0x3ab   :  { %1976 = vrot.lane.b32.xlu1 %v4771_v30, %s4631_s9  ;;  %s3775_s9 = sshll.u32 %s4649_s8, 4  ;;  %s3776_s9 = int_to_ptr.vmem [resolvable:$true] %s3775_s9 }
 0x3ac   :  { %p4563_p6 = scmp.lt.s32.totalorder %s3776_s9, %s3776_s9 }
 0x3af   :  { %2147 = vrot.lane.b32.xlu1 %v4771_v30, %s4632_s10  ;;  %s4558_s10 = scalar_lea.vmem %s3776_s9, 256 }
 0x3b0   :  { %p4559_p5 = scmp.ne.s32.totalorder %s3776_s9, %s4558_s10  ;;  %p4564_p7 = scmp.lt.s32.totalorder %s4558_s10, %s4558_s10 }
 0x3b2   :  { %p4565_p8 = por %p4564_p7, %p4563_p6 }
 0x3b3   :  { %2486 = vrot.lane.b32.xlu1 %v4760_v27, %s4621_s25 }
 0x3b4   :  { %p4566_p9 = pnand %p4565_p8, %p4559_p5 }
 0x3b7   :  { %2656 = vrot.lane.b32.xlu1 %v4760_v27, %s4623_s26 }
 0x3bb   :  { %2826 = vrot.lane.b32.xlu1 %v4760_v27, %s4626_s29 }
 0x3bf   :  { %2996 = vrot.lane.b32.xlu1 %v4760_v27, %s4633_s11 }
 0x3c3   :  { %3166 = vrot.lane.b32.xlu1 %v4760_v27, %s4634_s12 }
 0x3c7   :  { %3336 = vrot.lane.b32.xlu1 %v4760_v27, %s4627_s0 }
 0x3cb   :  { %3506 = vrot.lane.b32.xlu1 %v4760_v27, %s4628_s30 }
 0x417   :  { %v1041_v51 = vpop.xlane.xlu1 %1040 }
 0x418   :  { %4484 = vrcp.f32 %v1041_v51 }
 0x41b   :  { %v1637_v53 = vpop.permute.xlu1 %1636 }
 0x41c   :  { %4301 = vmatpush3.xpose.msk.msra.mxu0 %vm956_vm2, %v1637_v53 }
 0x41d   :  { %4310 = vmatprep.subr.mxu0 %v4617_v24 }
 0x41f   :  { %v1635_v55 = vpop.permute.xlu1 %1634 }
 0x420   :  { %4303 = vmatmul.mubr.msk.f32.vlgmr.msra.gmra.mrb[6].mxu0 %vm956_vm2, %v1635_v55 }
 0x421   :  { %4312 = vmatprep.mubr.msk.f32.mxu0 %vm4618_vm1, %v4617_v24 }
 0x422   :  { %v4485_v56 = vpop.eup %4484 }
 0x423   :  { %v1808_v57 = vpop.permute.xlu1 %1807  ;;  %v1043_v58 = vmul.f32 %v4485_v56, %v4483_v49 }
 0x424   :  { %4311 = vmatpush3.xpose.msk.msra.mxu0 %vm956_vm2, %v1808_v57 }
 0x425   :  { %4268 = vmatmul.mubr.msk.f32.vlgmr.msra.gmra.mrb[2].mxu1 %vm1032_vm3, %v1043_v58  ;;  %4320 = vmatprep.subr.mxu0 %v4617_v24 }
 0x426   :  { %4271 = vmatpush3.xpose.msk.msra.mxu1 %vm956_vm2, %v4783_v33  ;;  %4272 = vmatprep.mubr.msk.f32.mxu1 %vm4618_vm1, %v4617_v24 }
 0x427   :  { %v1806_v60 = vpop.permute.xlu1 %1805  ;;  %4275 = vmatprep.subr.mxu1 %v4617_v24 }
 0x428   :  { %4313 = vmatmul.mubr.msk.f32.vlgmr.msra.gmra.mrb[8].mxu0 %vm956_vm2, %v1806_v60  ;;  %v1372_v60 = vpop.xlane.xlu0 %1371 }
 0x429   :  { %4321 = vmatpush3.xpose.msk.msra.mxu0 %vm956_vm2, %v1979_v52  ;;  %4273 = vmatmul.mubr.msk.f32.vlgmr.msra.gmra.mrb[4].mxu1 %vm956_vm2, %v4790_v34 }
 0x42a   :  { %4322 = vmatprep.mubr.msk.f32.mxu0 %vm4618_vm1, %v4617_v24  ;;  %4330 = vmatprep.subr.mxu0 %v4617_v24 }
 0x42b   :  { %v1977_v62 = vpop.permute.xlu1 %1976  ;;  %4277 = vmatprep.mubr.msk.f32.mxu1 %vm4618_vm1, %v4617_v24 }
 0x42c   :  { %4323 = vmatmul.mubr.msk.f32.vlgmr.msra.gmra.mrb[10].mxu0 %vm956_vm2, %v1977_v62 }
 0x42d   :  { %4331 = vmatpush3.xpose.msk.msra.mxu0 %vm956_vm2, %v2150_v54  ;;  %4332 = vmatprep.mubr.msk.f32.mxu0 %vm4618_vm1, %v4617_v24 }
 0x42e   :  { %4340 = vmatprep.subr.mxu0 %v4617_v24 }
 0x42f   :  { %v2148_v63 = vpop.permute.xlu1 %2147 }
 0x430   :  { %4333 = vmatmul.mubr.msk.f32.vlgmr.msra.gmra.mrb[12].mxu0 %vm956_vm2, %v2148_v63  ;;  %v1373_v63 = vsub.f32 %v4798_v40, %v1372_v60 }
 0x431   :  { %4341 = vmatpush3.xpose.msk.msra.mxu0 %vm956_vm2, %v2320_v59  ;;  %4342 = vmatprep.mubr.msk.f32.mxu0 %vm4618_vm1, %v4617_v24 }
 0x432   :  { %4350 = vmatprep.subr.mxu0 %v4617_v24 }
 0x433   :  { %v2487_v1 = vpop.permute.xlu1 %2486 }
 0x434   :  { %4343 = vmatmul.mubr.msk.f32.vlgmr.msra.gmra.mrb[14].mxu0 %vm956_vm2, %v4809_v42 }
 0x435   :  { %4351 = vmatpush3.xpose.msk.msra.mxu0 %vm956_vm2, %v2487_v1  ;;  %4352 = vmatprep.mubr.msk.f32.mxu0 %vm4618_vm1, %v4617_v24  ;;  %v1374_v1 = vmul.f32 1.442695, %v1373_v63 }
 0x436   :  { %4360 = vmatprep.subr.mxu0 %v4617_v24 }
 0x437   :  { %v2657_v3 = vpop.permute.xlu1 %2656 }
 0x438   :  { %4353 = vmatmul.mubr.msk.f32.vlgmr.msra.gmra.mrb[16].mxu0 %vm956_vm2, %v2485_v61 }
 0x439   :  { %4361 = vmatpush3.xpose.msk.msra.mxu0 %vm956_vm2, %v2657_v3  ;;  %4362 = vmatprep.mubr.msk.f32.mxu0 %vm4618_vm1, %v4617_v24 }
 0x43a   :  { %4370 = vmatprep.subr.mxu0 %v4617_v24 }
 0x43b   :  { %v2827_v4 = vpop.permute.xlu1 %2826 }
 0x43c   :  { %4363 = vmatmul.mubr.msk.f32.vlgmr.msra.gmra.mrb[18].mxu0 %vm956_vm2, %v2655_v0 }
 0x43d   :  { %4371 = vmatpush3.xpose.msk.msra.mxu0 %vm956_vm2, %v2827_v4  ;;  %4372 = vmatprep.mubr.msk.f32.mxu0 %vm4618_vm1, %v4617_v24 }
 0x43e   :  { %4380 = vmatprep.subr.mxu0 %v4617_v24 }
 0x43f   :  { %v2997_v6 = vpop.permute.xlu1 %2996 }
 0x440   :  { %4373 = vmatmul.mubr.msk.f32.vlgmr.msra.gmra.mrb[20].mxu0 %vm956_vm2, %v2825_v2 }
 0x441   :  { %4381 = vmatpush3.xpose.msk.msra.mxu0 %vm956_vm2, %v2997_v6  ;;  %4382 = vmatprep.mubr.msk.f32.mxu0 %vm4618_vm1, %v4617_v24 }
 0x442   :  { %4390 = vmatprep.subr.mxu0 %v4617_v24 }
 0x443   :  { %v3167_v8 = vpop.permute.xlu1 %3166 }
 0x444   :  { %4383 = vmatmul.mubr.msk.f32.vlgmr.msra.gmra.mrb[22].mxu0 %vm956_vm2, %v2995_v5 }
 0x445   :  { %4391 = vmatpush3.xpose.msk.msra.mxu0 %vm956_vm2, %v3167_v8  ;;  %4392 = vmatprep.mubr.msk.f32.mxu0 %vm4618_vm1, %v4617_v24 }
 0x446   :  { %4400 = vmatprep.subr.mxu0 %v4617_v24 }
 0x447   :  { %v3337_v9 = vpop.permute.xlu1 %3336 }
 0x448   :  { %4393 = vmatmul.mubr.msk.f32.vlgmr.msra.gmra.mrb[24].mxu0 %vm956_vm2, %v3165_v7 }
 0x449   :  { %4401 = vmatpush3.xpose.msk.msra.mxu0 %vm956_vm2, %v3337_v9  ;;  %4402 = vmatprep.mubr.msk.f32.mxu0 %vm4618_vm1, %v4617_v24 }
 0x44a   :  { %4410 = vmatprep.subr.mxu0 %v4617_v24 }
 0x44b   :  { %v3507_v11 = vpop.permute.xlu1 %3506 }
 0x44c   :  { %4403 = vmatmul.mubr.msk.f32.vlgmr.msra.gmra.mrb[26].mxu0 %vm956_vm2, %v3335_v10 }
 0x44d   :  { %4411 = vmatpush3.xpose.msk.msra.mxu0 %vm956_vm2, %v3507_v11  ;;  %4412 = vmatprep.mubr.msk.f32.mxu0 %vm4618_vm1, %v4617_v24 }
 0x450   :  { %4413 = vmatmul.mubr.msk.f32.vlgmr.msra.gmra.mrb[28].mxu0 %vm956_vm2, %v3505_v12 }
 0x454   :  { %v4915_v13 = vpop.f32.mrb[4].mxu0 }
 0x455   :  { %v4294_v14 = vpop.f32.mrb[5].mxu0  ;;  %v1541_v15 = vsel %vm1032_vm3, %v4915_v13, -inf }
 0x456   :  { %1542 = vmax.xlane.f32.xlu0 %v1541_v15 }
 0x4e3   :  { %v1543_v61 = vpop.xlane.xlu0 %1542 }
 0x4e4   :  { %v1544_v62 = vsub.f32 %v4915_v13, %v1543_v61 }
 0x4e6   :  { %v1545_v0 = vmul.f32 1.442695, %v1544_v62 }
 0x4e8   :  { %4486 = vpow2.f32 %v1545_v0 }
 0x4e9   :  { %4488 = vpow2.f32 %v1374_v1 }
 0x4f2   :  { %v4980_v2 = vpop.eup %4486 }
 0x4f3   :  { %v4919_v16 = vpop.f32.mrb[6].mxu0  ;;  %v1547_v3 = vsel %vm1032_vm3, %v4980_v2, 0.0  ;;  %v4984_v4 = vpop.eup %4488 }
 0x4f4   :  { %v4304_v17 = vpop.f32.mrb[7].mxu0  ;;  %v1712_v18 = vsel %vm1032_vm3, %v4919_v16, -inf  ;;  %v1376_v5 = vsel %vm1032_vm3, %v4984_v4, 0.0 }
 0x4f5   :  { %1713 = vmax.xlane.f32.xlu1 %v1712_v18 }
 0x4f8   :  { %v1116_v19 = vpop.f32.mrb[2].mxu1 }
 0x4f9   :  { %1120 = vst.msk [vmem:[#allocation3] sm:$0xff] %vm956_vm2, %v1116_v19  ;;  %v4269_v20 = vpop.f32.mrb[3].mxu1 }
 0x4fb   :  { %v4924_v21 = vpop.f32.mrb[8].mxu0 }
 0x4fc   :  { %v4926_v22 = vpop.f32.mrb[4].mxu1  ;;  %v4314_v23 = vpop.f32.mrb[9].mxu0  ;;  %v1883_v25 = vsel %vm1032_vm3, %v4924_v21, -inf }
 0x4fd   :  { %1884 = vmax.xlane.f32.xlu0 %v1883_v25  ;;  %v4274_v26 = vpop.f32.mrb[5].mxu1  ;;  %v1199_v63 = vsel %vm1032_vm3, %v4926_v22, -inf }
 0x4ff   :  { %v4930_v28 = vpop.f32.mrb[10].mxu0 }
 0x500   :  { %v4324_v30 = vpop.f32.mrb[11].mxu0  ;;  %v2054_v31 = vsel %vm1032_vm3, %v4930_v28, -inf }
 0x501   :  { %2055 = vmax.xlane.f32.xlu1 %v2054_v31 }
 0x503   :  { %v4934_v32 = vpop.f32.mrb[12].mxu0 }
 0x504   :  { %v4334_v33 = vpop.f32.mrb[13].mxu0  ;;  %v2225_v34 = vsel %vm1032_vm3, %v4934_v32, -inf }
 0x505   :  { %2226 = vmax.xlane.f32.xlu0 %v2225_v34 }
 0x507   :  { %v4938_v35 = vpop.f32.mrb[14].mxu0 }
 0x508   :  { %v4344_v36 = vpop.f32.mrb[15].mxu0  ;;  %v2396_v37 = vsel %vm1032_vm3, %v4938_v35, -inf }
 0x509   :  { %2397 = vmax.xlane.f32.xlu1 %v2396_v37 }
 0x50b   :  { %v4942_v38 = vpop.f32.mrb[16].mxu0 }
 0x50c   :  { %v4354_v39 = vpop.f32.mrb[17].mxu0  ;;  %v2562_v41 = vsel %vm1032_vm3, %v4942_v38, -inf }
 0x50d   :  { %2563 = vmax.xlane.f32.xlu0 %v2562_v41 }
 0x50f   :  { %v4946_v42 = vpop.f32.mrb[18].mxu0 }
 0x510   :  { %v4364_v43 = vpop.f32.mrb[19].mxu0  ;;  %v2732_v44 = vsel %vm1032_vm3, %v4946_v42, -inf }
 0x511   :  { %2733 = vmax.xlane.f32.xlu1 %v2732_v44 }
 0x513   :  { %v4950_v45 = vpop.f32.mrb[20].mxu0 }
 0x514   :  { %v4374_v46 = vpop.f32.mrb[21].mxu0  ;;  %v2902_v47 = vsel %vm1032_vm3, %v4950_v45, -inf }
 0x515   :  { %2903 = vmax.xlane.f32.xlu0 %v2902_v47 }
 0x517   :  { %v4954_v48 = vpop.f32.mrb[22].mxu0 }
 0x518   :  { %v4384_v49 = vpop.f32.mrb[23].mxu0  ;;  %v3072_v50 = vsel %vm1032_vm3, %v4954_v48, -inf }
 0x519   :  { %3073 = vmax.xlane.f32.xlu1 %v3072_v50 }
 0x51b   :  { %v4958_v51 = vpop.f32.mrb[24].mxu0 }
 0x51c   :  { %v4394_v52 = vpop.f32.mrb[25].mxu0  ;;  %v3242_v53 = vsel %vm1032_vm3, %v4958_v51, -inf }
 0x51d   :  { %3243 = vmax.xlane.f32.xlu0 %v3242_v53 }
 0x51f   :  { %v4962_v54 = vpop.f32.mrb[26].mxu0 }
 0x520   :  { %v4404_v55 = vpop.f32.mrb[27].mxu0  ;;  %v3412_v56 = vsel %vm1032_vm3, %v4962_v54, -inf }
 0x521   :  { %3413 = vmax.xlane.f32.xlu1 %v3412_v56 }
 0x523   :  { %v4966_v57 = vpop.f32.mrb[28].mxu0 }
 0x524   :  { %v4414_v58 = vpop.f32.mrb[29].mxu0  ;;  %v3582_v59 = vsel %vm1032_vm3, %v4966_v57, -inf }
 0x525   :  { %3583 = vmax.xlane.f32.xlu0 %v3582_v59 }
 0x532   :  { %1381 = vrot.lane.b32.xlu1 %v4762_v29, %s4635_s13 }
 0x536   :  { %1552 = vrot.lane.b32.xlu1 %v4762_v29, %s4636_s14 }
 0x53b   :  { %1210 = vrot.lane.b32.xlu0 %v4762_v29, %s4637_s1 }
 0x53f   :  { %1723 = vrot.lane.b32.xlu0 %v4762_v29, %s4638_s15 }
 0x55a   :  { %1548 = vadd.xlane.f32.xlu1 %v1547_v3 }
 0x55e   :  { %1377 = vadd.xlane.f32.xlu0 %v1376_v5 }
 0x582   :  { %v1714_v6 = vpop.xlane.xlu1 %1713 }
 0x583   :  { %v1715_v7 = vsub.f32 %v4919_v16, %v1714_v6 }
 0x585   :  { %v1716_v40 = vmul.f32 1.442695, %v1715_v7 }
 0x587   :  { %4490 = vpow2.f32 %v1716_v40 }
 0x58a   :  { %v1885_v8 = vpop.xlane.xlu0 %1884 }
 0x58b   :  { %v1886_v9 = vsub.f32 %v4924_v21, %v1885_v8 }
 0x58d   :  { %v1887_v10 = vmul.f32 1.442695, %v1886_v9 }
 0x58e   :  { %v2056_v11 = vpop.xlane.xlu1 %2055 }
 0x58f   :  { %4492 = vpow2.f32 %v1887_v10  ;;  %v2057_v12 = vsub.f32 %v4930_v28, %v2056_v11 }
 0x591   :  { %v4991_v13 = vpop.eup %4490  ;;  %v2058_v14 = vmul.f32 1.442695, %v2057_v12 }
 0x592   :  { %v2227_v15 = vpop.xlane.xlu0 %2226  ;;  %v1718_v17 = vsel %vm1032_vm3, %v4991_v13, 0.0 }
 0x593   :  { %4494 = vpow2.f32 %v2058_v14  ;;  %v2228_v16 = vsub.f32 %v4934_v32, %v2227_v15  ;;  %1719 = vadd.xlane.f32.xlu0 %v1718_v17 }
 0x595   :  { %v2229_v18 = vmul.f32 1.442695, %v2228_v16 }
 0x596   :  { %v2398_v19 = vpop.xlane.xlu1 %2397 }
 0x597   :  { %4496 = vpow2.f32 %v2229_v18  ;;  %v2399_v20 = vsub.f32 %v4938_v35, %v2398_v19 }
 0x599   :  { %v4997_v21 = vpop.eup %4492  ;;  %v2400_v23 = vmul.f32 1.442695, %v2399_v20 }
 0x59a   :  { %v2564_v25 = vpop.xlane.xlu0 %2563  ;;  %v1889_v26 = vsel %vm1032_vm3, %v4997_v21, 0.0 }
 0x59b   :  { %4498 = vpow2.f32 %v2400_v23  ;;  %v2565_v28 = vsub.f32 %v4942_v38, %v2564_v25  ;;  %1890 = vadd.xlane.f32.xlu1 %v1889_v26 }
 0x59d   :  { %v5002_v30 = vpop.eup %4494  ;;  %v2566_v31 = vmul.f32 1.442695, %v2565_v28 }
 0x59e   :  { %v2734_v32 = vpop.xlane.xlu1 %2733  ;;  %v2060_v33 = vsel %vm1032_vm3, %v5002_v30, 0.0 }
 0x59f   :  { %4500 = vpow2.f32 %v2566_v31  ;;  %v2735_v34 = vsub.f32 %v4946_v42, %v2734_v32  ;;  %2061 = vadd.xlane.f32.xlu0 %v2060_v33 }
 0x5a1   :  { %v5007_v35 = vpop.eup %4496  ;;  %v2736_v36 = vmul.f32 1.442695, %v2735_v34 }
 0x5a2   :  { %v2904_v37 = vpop.xlane.xlu0 %2903  ;;  %v2231_v39 = vsel %vm1032_vm3, %v5007_v35, 0.0 }
 0x5a3   :  { %4502 = vpow2.f32 %v2736_v36  ;;  %v2905_v38 = vsub.f32 %v4950_v45, %v2904_v37  ;;  %2232 = vadd.xlane.f32.xlu1 %v2231_v39 }
 0x5a5   :  { %v5012_v41 = vpop.eup %4498  ;;  %v2906_v43 = vmul.f32 1.442695, %v2905_v38 }
 0x5a6   :  { %v3074_v44 = vpop.xlane.xlu1 %3073  ;;  %v2402_v46 = vsel %vm1032_vm3, %v5012_v41, 0.0 }
 0x5a7   :  { %4504 = vpow2.f32 %v2906_v43  ;;  %v3075_v42 = vsub.f32 %v4954_v48, %v3074_v44  ;;  %2403 = vadd.xlane.f32.xlu1 %v2402_v46 }
 0x5a9   :  { %v5017_v47 = vpop.eup %4500  ;;  %v3076_v49 = vmul.f32 1.442695, %v3075_v42 }
 0x5aa   :  { %v3244_v50 = vpop.xlane.xlu0 %3243  ;;  %v2568_v52 = vsel %vm1032_vm3, %v5017_v47, 0.0 }
 0x5ab   :  { %4506 = vpow2.f32 %v3076_v49  ;;  %v3245_v45 = vsub.f32 %v4958_v51, %v3244_v50  ;;  %2569 = vadd.xlane.f32.xlu0 %v2568_v52 }
 0x5ad   :  { %v5022_v53 = vpop.eup %4502  ;;  %v3246_v16 = vmul.f32 1.442695, %v3245_v45 }
 0x5ae   :  { %v3414_v55 = vpop.xlane.xlu1 %3413  ;;  %v2738_v56 = vsel %vm1032_vm3, %v5022_v53, 0.0 }
 0x5af   :  { %v3415_v48 = vsub.f32 %v4962_v54, %v3414_v55  ;;  %2739 = vadd.xlane.f32.xlu1 %v2738_v56 }
 0x5b1   :  { %v5027_v58 = vpop.eup %4504  ;;  %v3416_v18 = vmul.f32 1.442695, %v3415_v48 }
 0x5b2   :  { %v3584_v59 = vpop.xlane.xlu0 %3583  ;;  %v2908_v60 = vsel %vm1032_vm3, %v5027_v58, 0.0  ;;  %v1382_v5 = vpop.permute.xlu1 %1381 }
 0x5b3   :  { %2909 = vadd.xlane.f32.xlu1 %v2908_v60  ;;  %v3585_v54 = vsub.f32 %v4966_v57, %v3584_v59 }
 0x5b5   :  { %v5031_v61 = vpop.eup %4506  ;;  %v3586_v0 = vmul.f32 1.442695, %v3585_v54 }
 0x5b6   :  { %v1211_v51 = vpop.permute.xlu0 %1210  ;;  %v3078_v62 = vsel %vm1032_vm3, %v5031_v61, 0.0  ;;  %v1553_v6 = vpop.permute.xlu1 %1552 }
 0x5b7   :  { %3079 = vadd.xlane.f32.xlu0 %v3078_v62  ;;  %4276 = vmatpush3.msra.mxu1 %v1211_v51  ;;  %4508 = vpow2.f32 %v3586_v0 }
 0x5b8   :  { %1200 = vmax.xlane.f32.xlu1 %v1199_v63  ;;  %4285 = vmatprep.subr.mxu1 %v4617_v24 }
 0x5c1   :  { %v5042_v1 = vpop.eup %4508 }
 0x5c2   :  { %v3588_v3 = vsel %vm1032_vm3, %v5042_v1, 0.0 }
 0x5c9   :  { %1894 = vrot.lane.b32.xlu1 %v4762_v29, %s4639_s16 }
 0x5cd   :  { %2236 = vrot.lane.b32.xlu0 %v4762_v29, %s4640_s17 }
 0x5e7   :  { %v1549_v7 = vpop.xlane.xlu1 %1548 }
 0x5ec   :  { %3589 = vadd.xlane.f32.xlu0 %v3588_v3 }
 0x602   :  { %3253 = vrot.lane.b32.xlu0 %v4760_v27, %s4639_s16 }
 0x628   :  { %v1891_v40 = vpop.xlane.xlu1 %1890 }
 0x630   :  { %v2233_v8 = vpop.xlane.xlu1 %2232 }
 0x634   :  { %v5047_v9 = vpop.xlane.xlu1 %2403 }
 0x63c   :  { %v5049_v10 = vpop.xlane.xlu1 %2739 }
 0x640   :  { %v5051_v57 = vpop.xlane.xlu1 %2909 }
 0x645   :  { %v1201_v11 = vpop.xlane.xlu1 %1200 }
 0x646   :  { %v1202_v12 = vsub.f32 %v4926_v22, %v1201_v11 }
 0x648   :  { %v1203_v14 = vmul.f32 1.442695, %v1202_v12 }
 0x649   :  { %v1895_v25 = vpop.permute.xlu1 %1894 }
 0x64a   :  { %4510 = vpow2.f32 %v1203_v14 }
 0x64b   :  { %4512 = vpow2.f32 %v3246_v16 }
 0x64c   :  { %4514 = vpow2.f32 %v3416_v18 }
 0x654   :  { %v4511_v15 = vpop.eup %4510 }
 0x655   :  { %v1205_v17 = vsel %vm1032_vm3, %v4511_v15, 0.0  ;;  %v5056_v19 = vpop.eup %4512 }
 0x656   :  { %1206 = vadd.xlane.f32.xlu1 %v1205_v17  ;;  %v3248_v20 = vsel %vm1032_vm3, %v5056_v19, 0.0  ;;  %v5060_v23 = vpop.eup %4514 }
 0x657   :  { %v3418_v22 = vsel %vm1032_vm3, %v5060_v23, 0.0 }
 0x667   :  { %2065 = vrot.lane.b32.xlu1 %v4762_v29, %s4641_s18  ;;  %v1724_v29 = vpop.permute.xlu0 %1723 }
 0x66b   :  { %v1378_v26 = vpop.xlane.xlu0 %1377 }
 0x66f   :  { %v1720_v31 = vpop.xlane.xlu0 %1719 }
 0x673   :  { %v2062_v36 = vpop.xlane.xlu0 %2061 }
 0x677   :  { %v2570_v43 = vpop.xlane.xlu0 %2569 }
 0x67b   :  { %v3080_v46 = vpop.xlane.xlu0 %3079 }
 0x67f   :  { %v2237_v52 = vpop.permute.xlu0 %2236 }
 0x683   :  { %v3590_v54 = vpop.xlane.xlu0 %3589 }
 0x68b   :  { %3249 = vadd.xlane.f32.xlu1 %v3248_v20 }
 0x68f   :  { %3419 = vadd.xlane.f32.xlu1 %v3418_v22 }
 0x6a0   :  { %2407 = vrot.lane.b32.xlu1 %v4760_v27, %s4619_s23  ;;  %s4647_s23 = smov 24  }
 0x6a4   :  { %2573 = vrot.lane.b32.xlu1 %v4760_v27, %s4637_s1 }
 0x6a8   :  { %2743 = vrot.lane.b32.xlu1 %v4760_v27, %s4635_s13 }
 0x6ac   :  { %2913 = vrot.lane.b32.xlu1 %v4760_v27, %s4636_s14 }
 0x6b0   :  { %3083 = vrot.lane.b32.xlu1 %v4760_v27, %s4638_s15 }
 0x6b4   :  { %3423 = vrot.lane.b32.xlu1 %v4760_v27, %s4641_s18 }
 0x6b8   :  { %3593 = vrot.lane.b32.xlu1 %v4760_v27, %s4640_s17 }
 0x6e3   :  { %v1207_v28 = vpop.xlane.xlu1 %1206 }
 0x6e4   :  { %4516 = vrcp.f32 %v1207_v28 }
 0x6e5   :  { %4518 = vrcp.f32 %v1378_v26 }
 0x6e6   :  { %4520 = vrcp.f32 %v1549_v7  ;;  %v3254_v7 = vpop.permute.xlu0 %3253 }
 0x6e7   :  { %4522 = vrcp.f32 %v1720_v31  ;;  %v2066_v49 = vpop.permute.xlu1 %2065 }
 0x6e8   :  { %4524 = vrcp.f32 %v1891_v40 }
 0x6e9   :  { %4526 = vrcp.f32 %v2062_v36  ;;  %v3676_v36 = vld [vmem:[%s5209_s4] sm:$0xff] }
 0x6ea   :  { %4528 = vrcp.f32 %v2233_v8 }
 0x6eb   :  { %4530 = vrcp.f32 %v5047_v9 }
 0x6ec   :  { %4532 = vrcp.f32 %v2570_v43  ;;  %v3679_v43 = vld [vmem:[%s5209_s4 + $0x18] sm:$0xff] }
 0x6ed   :  { %4534 = vrcp.f32 %v5049_v10 }
 0x6ee   :  { %v4517_v32 = vpop.eup %4516  ;;  %4536 = vrcp.f32 %v5051_v57 }
 0x6ef   :  { %v1209_v33 = vmul.f32 %v4517_v32, %v4511_v15  ;;  %v4519_v34 = vpop.eup %4518  ;;  %4538 = vrcp.f32 %v3080_v46 }
 0x6f0   :  { %v1380_v27 = vmul.f32 %v4519_v34, %v4984_v4  ;;  %v4521_v37 = vpop.eup %4520 }
 0x6f1   :  { %4278 = vmatmul.mubr.msk.f32.vlgmr.msra.gmra.mrb[6].mxu1 %vm1032_vm3, %v1209_v33  ;;  %v1551_v39 = vmul.f32 %v4521_v37, %v4980_v2  ;;  %v4523_v38 = vpop.eup %4522  ;;  %v3677_v37 = vld [vmem:[%s5209_s4 + $0x8] sm:$0xff] }
 0x6f2   :  { %4286 = vmatpush3.msra.mxu1 %v1382_v5  ;;  %4287 = vmatprep.mubr.msk.f32.mxu1 %vm4618_vm1, %v4617_v24  ;;  %v1722_v4 = vmul.f32 %v4523_v38, %v4991_v13  ;;  %v4525_v44 = vpop.eup %4524 }
 0x6f3   :  { %4295 = vmatprep.subr.mxu1 %v4617_v24  ;;  %v1893_v2 = vmul.f32 %v4525_v44, %v4997_v21  ;;  %v4527_v42 = vpop.eup %4526 }
 0x6f4   :  { %v2064_v13 = vmul.f32 %v4527_v42, %v5002_v30  ;;  %v4529_v50 = vpop.eup %4528 }
 0x6f5   :  { %4288 = vmatmul.mubr.msk.f32.vlgmr.msra.gmra.mrb[8].mxu1 %vm1032_vm3, %v1380_v27  ;;  %v2235_v21 = vmul.f32 %v4529_v50, %v5007_v35  ;;  %v4531_v55 = vpop.eup %4530 }
 0x6f6   :  { %4296 = vmatpush3.msra.mxu1 %v1553_v6  ;;  %4297 = vmatprep.mubr.msk.f32.mxu1 %vm4618_vm1, %v4617_v24  ;;  %v2406_v56 = vmul.f32 %v4531_v55, %v5012_v41  ;;  %v4533_v48 = vpop.eup %4532 }
 0x6f7   :  { %4305 = vmatprep.subr.mxu1 %v4617_v24  ;;  %v2572_v59 = vmul.f32 %v4533_v48, %v5017_v47  ;;  %v4535_v51 = vpop.eup %4534 }
 0x6f8   :  { %v2742_v41 = vmul.f32 %v4535_v51, %v5022_v53  ;;  %v4537_v63 = vpop.eup %4536 }
 0x6f9   :  { %4298 = vmatmul.mubr.msk.f32.vlgmr.msra.gmra.mrb[10].mxu1 %vm1032_vm3, %v1551_v39  ;;  %v2912_v47 = vmul.f32 %v4537_v63, %v5027_v58  ;;  %v4539_v3 = vpop.eup %4538  ;;  %v4439_v39 = vpack.c.bf16 %v3677_v37, %v3676_v36 }
 0x6fa   :  { %4306 = vmatpush3.msra.mxu1 %v1724_v29  ;;  %4307 = vmatprep.mubr.msk.f32.mxu1 %vm4618_vm1, %v4617_v24  ;;  %v3082_v53 = vmul.f32 %v4539_v3, %v5031_v61  ;;  %v4154_v3 = vld [vmem:[%s5210_s5] ss:$0 sm:$0xff] }
 0x6fb   :  { %4315 = vmatprep.subr.mxu1 %v4617_v24  ;;  %4440 = vmatprep.subr.bf16.mxu0 %v4439_v39 }
 0x6fc   :  { %4442 = vmatpush3.bf16.msra.mxu0 %v4439_v39 }
 0x6fd   :  { %4308 = vmatmul.mubr.msk.f32.vlgmr.msra.gmra.mrb[12].mxu1 %vm1032_vm3, %v1722_v4  ;;  %v3678_v4 = vld [vmem:[%s5209_s4 + $0x10] sm:$0xff] }
 0x6fe   :  { %4316 = vmatpush3.msra.mxu1 %v1895_v25  ;;  %4317 = vmatprep.mubr.msk.f32.mxu1 %vm4618_vm1, %v4617_v24 }
 0x6ff   :  { %4325 = vmatprep.subr.mxu1 %v4617_v24 }
 0x701   :  { %4318 = vmatmul.mubr.msk.f32.vlgmr.msra.gmra.mrb[14].mxu1 %vm1032_vm3, %v1893_v2  ;;  %v4443_v2 = vpack.c.bf16 %v3679_v43, %v3678_v4 }
 0x702   :  { %4326 = vmatpush3.msra.mxu1 %v2066_v49  ;;  %4327 = vmatprep.mubr.msk.f32.mxu1 %vm4618_vm1, %v4617_v24 }
 0x703   :  { %4335 = vmatprep.subr.mxu1 %v4617_v24  ;;  %4444 = vmatprep.subr.bf16.mxu0 %v4443_v2 }
 0x704   :  { %4446 = vmatpush3.bf16.msra.mxu0 %v4443_v2 }
 0x705   :  { %4328 = vmatmul.mubr.msk.f32.vlgmr.msra.gmra.mrb[16].mxu1 %vm1032_vm3, %v2064_v13 }
 0x706   :  { %4336 = vmatpush3.msra.mxu1 %v2237_v52  ;;  %4337 = vmatprep.mubr.msk.f32.mxu1 %vm4618_vm1, %v4617_v24 }
 0x707   :  { %4345 = vmatprep.subr.mxu1 %v4617_v24 }
 0x709   :  { %4338 = vmatmul.mubr.msk.f32.vlgmr.msra.gmra.mrb[18].mxu1 %vm1032_vm3, %v2235_v21 }
 0x70a   :  { %4347 = vmatprep.mubr.msk.f32.mxu1 %vm4618_vm1, %v4617_v24 }
 0x718   :  { %v3250_v30 = vpop.xlane.xlu1 %3249 }
 0x719   :  { %4540 = vrcp.f32 %v3250_v30 }
 0x71c   :  { %v3420_v45 = vpop.xlane.xlu1 %3419 }
 0x71d   :  { %4542 = vrcp.f32 %v3420_v45 }
 0x71e   :  { %4544 = vrcp.f32 %v3590_v54 }
 0x720   :  { %v2408_v35 = vpop.permute.xlu1 %2407 }
 0x721   :  { %4346 = vmatpush3.msra.mxu1 %v2408_v35 }
 0x722   :  { %4348 = vmatmul.mubr.msk.f32.vlgmr.msra.gmra.mrb[20].mxu1 %vm1032_vm3, %v2406_v56  ;;  %4355 = vmatprep.subr.mxu1 %v4617_v24 }
 0x723   :  { %4357 = vmatprep.mubr.msk.f32.mxu1 %vm4618_vm1, %v4617_v24  ;;  %v4541_v6 = vpop.eup %4540 }
 0x724   :  { %v2574_v60 = vpop.permute.xlu1 %2573  ;;  %v3252_v58 = vmul.f32 %v4541_v6, %v5056_v19 }
 0x725   :  { %4356 = vmatpush3.msra.mxu1 %v2574_v60 }
 0x726   :  { %4358 = vmatmul.mubr.msk.f32.vlgmr.msra.gmra.mrb[22].mxu1 %vm1032_vm3, %v2572_v59  ;;  %4365 = vmatprep.subr.mxu1 %v4617_v24 }
 0x727   :  { %4367 = vmatprep.mubr.msk.f32.mxu1 %vm4618_vm1, %v4617_v24  ;;  %v4543_v8 = vpop.eup %4542 }
 0x728   :  { %v2744_v62 = vpop.permute.xlu1 %2743  ;;  %v3422_v61 = vmul.f32 %v4543_v8, %v5060_v23  ;;  %v4545_v10 = vpop.eup %4544 }
 0x729   :  { %4366 = vmatpush3.msra.mxu1 %v2744_v62  ;;  %v3592_v57 = vmul.f32 %v4545_v10, %v5042_v1 }
 0x72a   :  { %4368 = vmatmul.mubr.msk.f32.vlgmr.msra.gmra.mrb[24].mxu1 %vm1032_vm3, %v2742_v41  ;;  %4375 = vmatprep.subr.mxu1 %v4617_v24 }
 0x72b   :  { %4377 = vmatprep.mubr.msk.f32.mxu1 %vm4618_vm1, %v4617_v24 }
 0x72c   :  { %v2914_v0 = vpop.permute.xlu1 %2913 }
 0x72d   :  { %4376 = vmatpush3.msra.mxu1 %v2914_v0 }
 0x72e   :  { %4378 = vmatmul.mubr.msk.f32.vlgmr.msra.gmra.mrb[26].mxu1 %vm1032_vm3, %v2912_v47  ;;  %4385 = vmatprep.subr.mxu1 %v4617_v24 }
 0x72f   :  { %4387 = vmatprep.mubr.msk.f32.mxu1 %vm4618_vm1, %v4617_v24 }
 0x730   :  { %v3084_v5 = vpop.permute.xlu1 %3083 }
 0x731   :  { %4386 = vmatpush3.msra.mxu1 %v3084_v5 }
 0x732   :  { %4388 = vmatmul.mubr.msk.f32.vlgmr.msra.gmra.mrb[28].mxu1 %vm1032_vm3, %v3082_v53  ;;  %4395 = vmatprep.subr.mxu1 %v4617_v24 }
 0x733   :  { %4396 = vmatpush3.msra.mxu1 %v3254_v7  ;;  %4397 = vmatprep.mubr.msk.f32.mxu1 %vm4618_vm1, %v4617_v24 }
 0x734   :  { %v3424_v40 = vpop.permute.xlu1 %3423  ;;  %4405 = vmatprep.subr.mxu1 %v4617_v24 }
 0x736   :  { %4398 = vmatmul.mubr.msk.f32.vlgmr.msra.gmra.mrb[30].mxu1 %vm1032_vm3, %v3252_v58 }
 0x737   :  { %4406 = vmatpush3.msra.mxu1 %v3424_v40  ;;  %4407 = vmatprep.mubr.msk.f32.mxu1 %vm4618_vm1, %v4617_v24 }
 0x738   :  { %v3594_v9 = vpop.permute.xlu1 %3593  ;;  %4415 = vmatprep.subr.mxu1 %v4617_v24 }
 0x73a   :  { %4408 = vmatmul.mubr.msk.f32.vlgmr.msra.gmra.mrb[32].mxu1 %vm1032_vm3, %v3422_v61 }
 0x73b   :  { %4416 = vmatpush3.msra.mxu1 %v3594_v9  ;;  %4417 = vmatprep.mubr.msk.f32.mxu1 %vm4618_vm1, %v4617_v24 }
 0x73e   :  { %4418 = vmatmul.mubr.msk.f32.vlgmr.msra.gmra.mrb[34].mxu1 %vm1032_vm3, %v3592_v57 }
 0x7c4   :  { %v1282_v11 = vpop.f32.mrb[6].mxu1 }
 0x7c5   :  { %1287 = vrot.lane.b32.xlu1 %v1282_v11, %s4642_s19  ;;  %v4279_v12 = vpop.f32.mrb[7].mxu1 }
 0x7c8   :  { %v1453_v14 = vpop.f32.mrb[8].mxu1 }
 0x7c9   :  { %1458 = vrot.lane.b32.xlu1 %v1453_v14, %s4643_s20  ;;  %v4289_v15 = vpop.f32.mrb[9].mxu1 }
 0x7cc   :  { %v1624_v17 = vpop.f32.mrb[10].mxu1 }
 0x7cd   :  { %1629 = vrot.lane.b32.xlu1 %v1624_v17, %s4644_s21  ;;  %v4299_v16 = vpop.f32.mrb[11].mxu1 }
 0x7d0   :  { %v1795_v18 = vpop.f32.mrb[12].mxu1 }
 0x7d1   :  { %1800 = vrot.lane.b32.xlu1 %v1795_v18, %s4645_s2  ;;  %v4309_v24 = vpop.f32.mrb[13].mxu1 }
 0x7d4   :  { %v1966_v1 = vpop.f32.mrb[14].mxu1 }
 0x7d5   :  { %1971 = vrot.lane.b32.xlu1 %v1966_v1, %s4646_s22  ;;  %v4319_v19 = vpop.f32.mrb[15].mxu1 }
 0x7d8   :  { %v2137_v20 = vpop.f32.mrb[16].mxu1 }
 0x7d9   :  { %2142 = vrot.lane.b32.xlu1 %v2137_v20, %s4647_s23  ;;  %v4329_v23 = vpop.f32.mrb[17].mxu1 }
 0x7dc   :  { %v2308_v22 = vpop.f32.mrb[18].mxu1 }
 0x7dd   :  { %v4339_v29 = vpop.f32.mrb[19].mxu1 }
 0x7f5   :  { %v2479_v25 = vpop.f32.mrb[20].mxu1 }
 0x7f6   :  { %2483 = vst.msk [vmem:[#allocation3 + $0x8] sm:$0xff] %vm956_vm2, %v2479_v25  ;;  %v4349_v26 = vpop.f32.mrb[21].mxu1 }
 0x7f9   :  { %v2645_v28 = vpop.f32.mrb[22].mxu1 }
 0x7fa   :  { %2650 = vrot.lane.b32.xlu1 %v2645_v28, %s4642_s19  ;;  %v4359_v31 = vpop.f32.mrb[23].mxu1 }
 0x7fd   :  { %v2815_v32 = vpop.f32.mrb[24].mxu1 }
 0x7fe   :  { %2313 = vrot.lane.b32.xlu1 %v2308_v22, %s4648_s24  ;;  %2820 = vrot.lane.b32.xlu0 %v2815_v32, %s4643_s20  ;;  %v4369_v33 = vpop.f32.mrb[25].mxu1 }
 0x801   :  { %v2985_v34 = vpop.f32.mrb[26].mxu1 }
 0x802   :  { %2990 = vrot.lane.b32.xlu0 %v2985_v34, %s4644_s21  ;;  %v4379_v27 = vpop.f32.mrb[27].mxu1 }
 0x805   :  { %v3155_v38 = vpop.f32.mrb[28].mxu1 }
 0x806   :  { %3160 = vrot.lane.b32.xlu0 %v3155_v38, %s4645_s2  ;;  %v4389_v44 = vpop.f32.mrb[29].mxu1 }
 0x809   :  { %v3325_v46 = vpop.f32.mrb[30].mxu1 }
 0x80a   :  { %3330 = vrot.lane.b32.xlu0 %v3325_v46, %s4646_s22  ;;  %v4399_v42 = vpop.f32.mrb[31].mxu1 }
 0x80d   :  { %v3495_v49 = vpop.f32.mrb[32].mxu1 }
 0x80e   :  { %3500 = vrot.lane.b32.xlu0 %v3495_v49, %s4647_s23  ;;  %v4409_v13 = vpop.f32.mrb[33].mxu1 }
 0x811   :  { %v3665_v50 = vpop.f32.mrb[34].mxu1 }
 0x812   :  { %3670 = vrot.lane.b32.xlu1 %v3665_v50, %s4648_s24  ;;  %v4419_v52 = vpop.f32.mrb[35].mxu1 }
 0x837   :  { %v1288_v21 = vpop.permute.xlu1 %1287 }
 0x838   :  { %1291 = vst.msk [vmem:[#allocation3] sm:$0xff] %vm1290_vm4, %v1288_v21 }
 0x83b   :  { %v1459_v30 = vpop.permute.xlu1 %1458 }
 0x83c   :  { %1462 = vst.msk [vmem:[#allocation3] sm:$0xff] %vm1461_vm5, %v1459_v30 }
 0x83f   :  { %v1630_v45 = vpop.permute.xlu1 %1629 }
 0x840   :  { %1633 = vst.msk [vmem:[#allocation3] sm:$0xff] %vm1632_vm6, %v1630_v45 }
 0x843   :  { %v1801_v55 = vpop.permute.xlu1 %1800 }
 0x844   :  { %1804 = vst.msk [vmem:[#allocation3] sm:$0xff] %vm1803_vm7, %v1801_v55 }
 0x847   :  { %v1972_v56 = vpop.permute.xlu1 %1971 }
 0x848   :  { %1975 = vst.msk [vmem:[#allocation3] sm:$0xff] %vm1974_vm8, %v1972_v56 }
 0x84b   :  { %v2143_v35 = vpop.permute.xlu1 %2142 }
 0x84c   :  { %2146 = vst.msk [vmem:[#allocation3] sm:$0xff] %vm2145_vm9, %v2143_v35 }
 0x86c   :  { %v2651_v48 = vpop.permute.xlu1 %2650 }
 0x86d   :  { %2653 = vst.msk [vmem:[#allocation3 + $0x8] sm:$0xff] %vm1290_vm4, %v2651_v48 }
 0x870   :  { %v2314_v59 = vpop.permute.xlu1 %2313  ;;  %v2821_v60 = vpop.permute.xlu0 %2820 }
 0x871   :  { %2317 = vst.msk [vmem:[#allocation3] sm:$0xff] %vm2316_vm10, %v2314_v59 }
 0x872   :  { %2823 = vst.msk [vmem:[#allocation3 + $0x8] sm:$0xff] %vm1461_vm5, %v2821_v60 }
 0x874   :  { %v2991_v51 = vpop.permute.xlu0 %2990 }
 0x875   :  { %2993 = vst.msk [vmem:[#allocation3 + $0x8] sm:$0xff] %vm1632_vm6, %v2991_v51 }
 0x878   :  { %v3161_v41 = vpop.permute.xlu0 %3160  ;;  %v3674_v62 = vld [vmem:[#allocation3] sm:$0xff] }
 0x879   :  { %3163 = vst.msk [vmem:[#allocation3 + $0x8] sm:$0xff] %vm1803_vm7, %v3161_v41  ;;  %4428 = vmatprep.mubr.msk.f32.mxu0 %vm869_vm0, %v3674_v62 }
 0x87c   :  { %v3331_v63 = vpop.permute.xlu0 %3330 }
 0x87d   :  { %3333 = vst.msk [vmem:[#allocation3 + $0x8] sm:$0xff] %vm1974_vm8, %v3331_v63 }
 0x880   :  { %v3501_v47 = vpop.permute.xlu0 %3500 }
 0x881   :  { %3503 = vst.msk [vmem:[#allocation3 + $0x8] sm:$0xff] %vm2145_vm9, %v3501_v47 }
 0x884   :  { %v3671_v54 = vpop.permute.xlu1 %3670 }
 0x885   :  { %3673 = vst.msk [vmem:[#allocation3 + $0x8] sm:$0xff] %vm2316_vm10, %v3671_v54 }
 0x88c   :  { %v3675_v0 = vld [vmem:[#allocation3 + $0x8] sm:$0xff] }
 0x88d   :  { %4429 = vmatmul.mubr.msk.f32.vlgmr.msra.gmra.mrb[30].mxu0 %vm869_vm0, %v3675_v0 }
 0x960   :  { %v4430_v53 = vpop.f32.mrb[30].mxu0 }
 0x961   :  { %v3765_v5 = vadd.f32 %v4430_v53, %v4154_v3  ;;  %v3759_v6 = vpop.f32.mrb[31].mxu0 }
 0x962   :  { %v3760_v7 = vadd.f32 %v4154_v3, %v3759_v6 }
 0x963   :  { %3769 = vst.msk [vmem:[#allocation7 + $0x8] sm:$0xff] %vm869_vm0, %v3765_v5 }
 0x964   :  { %3768 = vst.msk [vmem:[#allocation7] sm:$0xff] %vm869_vm0, %v3760_v7 }
 0x965   :  { %4569 = shalt.err (!%p4566_p9)
}
 0x966   :  { %s4570_s12 = scalar_lea.hbm %s5211_s6, 256 }
 0x967   :  { %p4571_p10 = scmp.ne.s32.totalorder %s5211_s6, %s4570_s12  ;;  %p4574_p11 = scmp.lt.u32.totalorder %s4570_s12, %s5211_s6 }
 0x969   :  { %p4576_p12 = pnand %p4574_p11, %p4571_p10 }
 0x96b   :  { %4579 = shalt.err (!%p4576_p12)
}
 0x96c   :  { %s4650_s16 = smov 128  }
 0x96d   :  { %3781 = dma.vmem_to_hbm [thread:$0]  %s3776_s9, 256, %s5211_s6, [#allocation8], %s4650_s16, %s4650_s16, %s4643_s20  }
 0x96e   :  { %4614 = dma.done.wait [#allocation8], 256  }
 0x96f   :  { %4615 = vsyncadd [#allocation8], 4294967040 }
 0x970   :  { %3785 = vsyncpa [#allocation8], 1 }
 0x971   :  { %3786 = vsyncmov [#allocation4] }
 0x974   :  { %s3787_s19 = vpop.sfrf %3786 }
 0x975   :  { %p4157_p13 = scmp.ne.s32.totalorder %s3787_s19, 0 }
 0x977   :  { %3791 = shalt.err (%p4157_p13)  }
 0x978   :  { %3793 = vsyncmov [#allocation4 + $0x1] }
 0x97b   :  { %s3794_s21 = vpop.sfrf %3793 }
 0x97c   :  { %p4158_p0 = scmp.ne.s32.totalorder %s3794_s21, 0 }
 0x97e   :  { %3798 = shalt.err (%p4158_p0)  }
 0x97f   :  { %3800 = vsyncmov [#allocation4 + $0x2] }
 0x982   :  { %s3801_s2 = vpop.sfrf %3800 }
 0x983   :  { %p4159_p1 = scmp.ne.s32.totalorder %s3801_s2, 0 }
 0x985   :  { %3805 = shalt.err (%p4159_p1)  }
 0x986   :  { %3807 = vsyncmov [#allocation4 + $0x3] }
 0x989   :  { %s3808_s22 = vpop.sfrf %3807 }
 0x98a   :  { %p4160_p2 = scmp.ne.s32.totalorder %s3808_s22, 0 }
 0x98c   :  { %3812 = shalt.err (%p4160_p2)  }
 0x98d   :  { %3814 = vsyncmov [#allocation4 + $0x4] }
 0x990   :  { %s3815_s6 = vpop.sfrf %3814 }
 0x991   :  { %p4161_p3 = scmp.ne.s32.totalorder %s3815_s6, 0 }
 0x993   :  { %3819 = shalt.err (%p4161_p3)  }
 0x994   :  { %3821 = vsyncmov [#allocation4 + $0x5] }
 0x997   :  { %s3822_s20 = vpop.sfrf %3821 }
 0x998   :  { %p4162_p4 = scmp.ne.s32.totalorder %s3822_s20, 0 }
 0x99a   :  { %3826 = shalt.err (%p4162_p4)  }
 0x99b   :  { %3828 = vsyncmov [#allocation4 + $0x6] }
 0x99e   :  { %s3829_s23 = vpop.sfrf %3828 }
 0x99f   :  { %p4163_p5 = scmp.ne.s32.totalorder %s3829_s23, 0 }
 0x9a1   :  { %3833 = shalt.err (%p4163_p5)  }
 0x9a2   :  { %3835 = vsyncmov [#allocation4 + $0x7] }
 0x9a5   :  { %s3836_s24 = vpop.sfrf %3835 }
 0x9a6   :  { %p4164_p6 = scmp.ne.s32.totalorder %s3836_s24, 0 }
 0x9a8   :  { %3840 = shalt.err (%p4164_p6)  }
 0x9a9   :  { %3842 = vsyncmov [#allocation4 + $0x8] }
 0x9ac   :  { %s3843_s25 = vpop.sfrf %3842 }
 0x9ad   :  { %p4165_p7 = scmp.ne.s32.totalorder %s3843_s25, 0 }
 0x9af   :  { %3847 = shalt.err (%p4165_p7)  }
 0x9b0   :  { %3849 = vsyncmov [#allocation4 + $0x9] }
 0x9b3   :  { %s3850_s3 = vpop.sfrf %3849 }
 0x9b4   :  { %p4166_p8 = scmp.ne.s32.totalorder %s3850_s3, 0 }
 0x9b6   :  { %3854 = shalt.err (%p4166_p8)  }
 0x9b7   :  { %3856 = vsyncmov [#allocation4 + $0xa] }
 0x9ba   :  { %s3857_s26 = vpop.sfrf %3856 }
 0x9bb   :  { %p4167_p9 = scmp.ne.s32.totalorder %s3857_s26, 0 }
 0x9bd   :  { %3861 = shalt.err (%p4167_p9)  }
 0x9be   :  { %3863 = vsyncmov [#allocation4 + $0xb] }
 0x9c1   :  { %s3864_s27 = vpop.sfrf %3863 }
 0x9c2   :  { %p4168_p10 = scmp.ne.s32.totalorder %s3864_s27, 0 }
 0x9c4   :  { %3868 = shalt.err (%p4168_p10)  }
 0x9c5   :  { %3870 = vsyncmov [#allocation4 + $0xc] }
 0x9c8   :  { %s3871_s28 = vpop.sfrf %3870 }
 0x9c9   :  { %p4169_p11 = scmp.ne.s32.totalorder %s3871_s28, 0 }
 0x9cb   :  { %3875 = shalt.err (%p4169_p11)  }
 0x9cc   :  { %3877 = vsyncmov [#allocation4 + $0xd] }
 0x9cf   :  { %s3878_s29 = vpop.sfrf %3877 }
 0x9d0   :  { %p4170_p12 = scmp.ne.s32.totalorder %s3878_s29, 0 }
 0x9d2   :  { %3882 = shalt.err (%p4170_p12)  }
 0x9d3   :  { %3884 = vsyncmov [#allocation4 + $0xe] }
 0x9d6   :  { %s3885_s0 = vpop.sfrf %3884 }
 0x9d7   :  { %p4171_p13 = scmp.ne.s32.totalorder %s3885_s0, 0 }
 0x9d9   :  { %3889 = shalt.err (%p4171_p13)  }
 0x9da   :  { %3891 = vsyncmov [#allocation4 + $0xf] }
 0x9dd   :  { %s3892_s30 = vpop.sfrf %3891 }
 0x9de   :  { %p4172_p0 = scmp.ne.s32.totalorder %s3892_s30, 0 }
 0x9e0   :  { %3896 = shalt.err (%p4172_p0)  }

</bundles_post_ra>
